<compile_context>
chip_gen: v7x
topology: tpu7x:2x2x1
jax: 0.10.0
libtpu: 0.0.40
codegen_flags: <defaults>
</compile_context>

<pallas_src>
import functools
import math

import jax
import jax.numpy as jnp
from jax.experimental import pallas as pl
from jax.experimental.pallas import tpu as pltpu

_F = 3                         # persistent zero-frame rows (>= max conv pad = 7 // 2)
_C_IN = 32                     # input image channels padded 3 -> 32
_C_L1 = 64                     # PAF head channels padded 38 -> 64
_C_L2 = 32                     # heatmap head channels padded 19 -> 32
_C_CAT = _C_L1 + _C_L2 + 128   # stage >= 2 input layout (185 real channels)


def _round_up(x, m):
    return ((x + m - 1) // m) * m


def _wf(wd):
    """Framed width for `wd` valid pixels (>= 3 zero spare columns, 16-aligned)."""
    return _round_up(wd + _F, 16)


# ----------------------------- per-generation VMEM budget -----------------------------

def _detect_vmem_bytes():
    try:
        info = pltpu.get_tpu_info()
        cap = int(getattr(info, "vmem_capacity_bytes", 0) or 0)
        if cap > 0:
            return cap
    except Exception:
        pass
    return 64 * 1024 * 1024            # conservative default (v7x-sized)


_VMEM_CAP = _detect_vmem_bytes()
_VMEM_LIMIT = max(32 * 1024 * 1024,
                  min(int(_VMEM_CAP * 0.85), _VMEM_CAP - 4 * 1024 * 1024))
_TILE_BUDGET = int(_VMEM_LIMIT * 0.6)


# ----------------------------- width-shift (XLU roll) -----------------------------

_ROLL_MODE = None              # "tpu" (pltpu.roll / XLU) or "jnp" (slice+concat fallback)
_ROLL_SIGN = 1


def _init_roll_mode():
    """Probe pltpu.roll (bf16, sublane axis) once; record its direction or fall back."""
    global _ROLL_MODE, _ROLL_SIGN
    if _ROLL_MODE is not None:
        return
    x = (jnp.arange(6 * 16 * 128, dtype=jnp.int32) % 127).astype(jnp.bfloat16)
    x = x.reshape(6, 16, 128)

    def kern(x_ref, o_ref):
        o_ref[...] = pltpu.roll(x_ref[...], 1, axis=1)

    try:
        y = pl.pallas_call(kern, out_shape=jax.ShapeDtypeStruct(x.shape, x.dtype))(x)
        y = jax.device_get(y)
        if (y == jax.device_get(jnp.roll(x, 1, axis=1))).all():
            _ROLL_MODE, _ROLL_SIGN = "tpu", 1
        elif (y == jax.device_get(jnp.roll(x, -1, axis=1))).all():
            _ROLL_MODE, _ROLL_SIGN = "tpu", -1
        else:
            _ROLL_MODE = "jnp"
    except Exception:
        _ROLL_MODE = "jnp"


def _wshift(x, shift):
    """jnp.roll(x, shift, axis=1) semantics, using the XLU rotate when available."""
    if shift == 0:
        return x
    if _ROLL_MODE == "tpu":
        return pltpu.roll(x, (_ROLL_SIGN * shift) % x.shape[1], axis=1)
    return jnp.roll(x, shift, axis=1)   # fallback: correct, costs a sublane relayout


# ----------------------------- Pallas conv kernel -----------------------------

@functools.lru_cache(maxsize=None)
def _make_conv_kernel(k, h, wd, relu, pool, out_w):
    """Framed NHWC conv (stride 1, 'same') with fused bias / ReLU / optional 2x2 max-pool.
        x_ref: (h + 2F, Wf, Cin)     framed input rows (frame rows = zeros or row halo)
        w_ref: (k*k, Cin, Ct)        taps in kh*k + kw order
        b_ref: (1, Ct)               bias (f32)
        o_ref: (ho + 2F, out_w, Ct)  framed output (frame rows written as zeros)
    """
    p = k // 2

    def kernel(x_ref, w_ref, b_ref, o_ref):
        wf, cin = x_ref.shape[-2], x_ref.shape[-1]
        ct = o_ref.shape[-1]
        rows = h + 2 * p
        # One load of the row window; every kh tap is a free leading-axis slice of it.
        base = x_ref[pl.ds(_F - p, rows), :, :]
        acc = jnp.zeros((h * wf, ct), jnp.float32)
        for kw in range(k):                       # fully unrolled (LLO-visible)
            # Width tap: one rotation per kw.  The >= p zero spare columns make the
            # wraparound reproduce zero 'same' padding on both edges.
            shifted = _wshift(base, p - kw)
            for kh in range(k):
                xs = shifted[kh:kh + h]           # leading-axis slice: free
                acc = acc + jnp.dot(xs.reshape(h * wf, cin), w_ref[kh * k + kw],
                                    preferred_element_type=jnp.float32)
                # TODO(synk): on v6e/v7x pack two taps per dot (K = 2*Cin = 256) to fill
                # the 256-deep MXU for the 128-channel 7x7 stage convs.
        acc = acc + b_ref[...]
        if relu:
            acc = jnp.maximum(acc, 0.0)
        y = acc.reshape(h, wf, ct)
        # Re-zero the spare columns so the next layer's wraparound stays a zero pad.
        col = jax.lax.broadcasted_iota(jnp.int32, (1, wf, ct), 1)
        y = jnp.where(col < wd, y, 0.0).astype(o_ref.dtype)
        if pool:                                  # fused MaxPool2d(2, 2)
            y = jnp.maximum(y[0::2], y[1::2])
            y = jnp.max(y.reshape(h // 2, wf // 2, 2, ct), axis=2)
        ho = h // 2 if pool else h
        wo = wf // 2 if pool else wf
        if out_w < wo:                            # only ever trims zero spare columns
            y = y[:, :out_w, :]
        elif out_w > wo:
            y = jnp.concatenate(
                [y, jnp.zeros((ho, out_w - wo, ct), y.dtype)], axis=1)
        zrow = jnp.zeros((_F, out_w, ct), o_ref.dtype)
        o_ref[pl.ds(0, _F), :, :] = zrow
        o_ref[pl.ds(_F, ho), :, :] = y
        o_ref[pl.ds(_F + ho, _F), :, :] = zrow

    return kernel


def _conv_framed(x, w, b, *, k, H, wd, relu, pool, out_w, ct):
    """Conv over a framed activation: (B, H + 2F, Wf, Cin) -> (B, Ho + 2F, out_w, Cout)."""
    B, _, Wf, cin = x.shape
    cout = w.shape[-1]
    ncout = cout // ct
    p = k // 2

    def tile_bytes(th):
        tho = th // 2 if pool else th
        return (2 * (th + 2 * _F) * Wf * cin * 2          # double-buffered input block
                + 2 * k * k * cin * ct * 2                # double-buffered weight tile
                + 2 * (tho + 2 * _F) * out_w * ct * 2     # double-buffered output block
                + th * Wf * ct * 4                        # f32 accumulator
                + 2 * (th + 2 * p) * Wf * cin * 2)        # shifted-slab temporaries

    th = H
    if tile_bytes(th) > _TILE_BUDGET:
        step = 2 if pool else 1
        cands = [d for d in range(H - 1, 0, -1)
                 if H % d == 0 and d % step == 0 and tile_bytes(d) <= _TILE_BUDGET]
        th = cands[0] if cands else step
    tho = th // 2 if pool else th
    hfo_t = tho + 2 * _F
    kern = _make_conv_kernel(k, th, wd, relu, pool, out_w)

    def call(xt):
        nb = xt.shape[0]
        return pl.pallas_call(
            kern,
            grid=(nb, ncout),
            in_specs=[
                pl.BlockSpec((None, th + 2 * _F, Wf, cin), lambda i, j: (i, 0, 0, 0)),
                pl.BlockSpec((k * k, cin, ct), lambda i, j: (0, 0, j)),
                pl.BlockSpec((1, ct), lambda i, j: (0, j)),
            ],
            out_specs=pl.BlockSpec((None, hfo_t, out_w, ct), lambda i, j: (i, 0, 0, j)),
            out_shape=jax.ShapeDtypeStruct((nb, hfo_t, out_w, cout), jnp.bfloat16),
            compiler_params=pltpu.CompilerParams(
                dimension_semantics=("parallel", "parallel"),
                vmem_limit_bytes=_VMEM_LIMIT),
        )(xt, w, b)

    if th == H:
        # Fast path: whole framed image per block -> zero wrapper-side HBM traffic.
        return call(x)

    # Fallback for very large inputs: overlapping row-halo tiles staged through HBM.
    # TODO(synk): replace with memory_space=pl.ANY + in-kernel make_async_copy of the
    # (th + 2F) row window to avoid this extra HBM copy.
    ntiles = H // th
    Ho = H // 2 if pool else H
    tiles = jnp.stack([x[:, i * th: i * th + th + 2 * _F] for i in range(ntiles)], axis=1)
    out = call(tiles.reshape(B * ntiles, th + 2 * _F, Wf, cin))
    out = out.reshape(B, ntiles, hfo_t, out_w, cout)[:, :, _F:_F + tho]
    out = out.reshape(B, Ho, out_w, cout)
    return jnp.pad(out, ((0, 0), (_F, _F), (0, 0), (0, 0)))


def _apply_conv(x, param, *, k, relu, pool, h, wd):
    w, b = param
    cout = w.shape[-1]
    ct = 128 if (cout > 128 and cout % 128 == 0) else cout
    out_wd = wd // 2 if pool else wd
    out_w = _wf(out_wd) if pool else x.shape[2]
    y = _conv_framed(x, w, b, k=k, H=h, wd=wd, relu=relu, pool=pool, out_w=out_w, ct=ct)
    return y, (h // 2 if pool else h), out_wd


# ----------------------------- model configuration -----------------------------

# VGG trunk + CPM adaptation: (cin_pad, cout, k, fused 2x2 max-pool after ReLU)
_BASE = [
    (_C_IN, 64, 3, False), (64, 64, 3, True),
    (64, 128, 3, False), (128, 128, 3, True),
    (128, 256, 3, False), (256, 256, 3, False), (256, 256, 3, False), (256, 256, 3, True),
    (256, 512, 3, False), (512, 512, 3, False),
    (512, 256, 3, False), (256, 128, 3, False),
]
# Branch convs 2..last (conv1 of both branches is the fused 256-out conv):
# (cin, cout (None = final 38/19 head), k, relu)
_S1_BRANCH = [(128, 128, 3, True), (128, 128, 3, True), (128, 512, 1, True),
              (512, None, 1, False)]
_SX_BRANCH = [(128, 128, 7, True)] * 4 + [(128, 128, 1, True), (128, None, 1, False)]

# Real 185 stage-input channels -> padded 224-channel concat layout [h1 | h2 | feature].
_CAT_ROW_MAP = ((0, 0, 38), (_C_L1, 38, 19), (_C_L1 + _C_L2, 57, 128))


# ----------------------------- parameters -----------------------------

def _conv_param(key, k, cin_real, cout_real, cin_pad, cout_pad, row_map=None):
    bound = 1.0 / math.sqrt(cin_real * k * k)    # PyTorch Conv2d default init bound
    w = jax.random.uniform(key, (k * k, cin_real, cout_real), jnp.float32,
                           minval=-bound, maxval=bound)
    wp = jnp.zeros((k * k, cin_pad, cout_pad), jnp.float32)
    if row_map is None:
        wp = wp.at[:, :cin_real, :cout_real].set(w)
    else:
        for dst, src, ln in row_map:             # scatter real Cin rows into the padding
            wp = wp.at[:, dst:dst + ln, :cout_real].set(w[:, src:src + ln])
    b = jnp.zeros((1, cout_pad), jnp.float32)    # init.constant_(m.bias, 0)
    return wp.astype(jnp.bfloat16), b


def _branch_params(keys, cfg, c_final_real, c_final_pad):
    ps = []
    for cin, cout, k, _ in cfg:
        if cout is None:
            ps.append(_conv_param(next(keys), k, cin, c_final_real, cin, c_final_pad))
        else:
            ps.append(_conv_param(next(keys), k, cin, cout, cin, cout))
    return ps


def init_params(key):
    keys = iter(jax.random.split(key, 128))
    base = []
    for i, (cin_p, cout, k, _) in enumerate(_BASE):
        cin_real = 3 if i == 0 else cin_p
        base.append(_conv_param(next(keys), k, cin_real, cout, cin_p, cout))

    def stage(is_first):
        if is_first:
            fused = _conv_param(next(keys), 3, 128, 256, 128, 256)   # L1|L2 conv1 fused
            cfg = _S1_BRANCH
        else:
            fused = _conv_param(next(keys), 7, 185, 256, _C_CAT, 256,
                                row_map=_CAT_ROW_MAP)
            cfg = _SX_BRANCH
        return {"fused": fused,
                "L1": _branch_params(keys, cfg, 38, _C_L1),
                "L2": _branch_params(keys, cfg, 19, _C_L2)}

    stage1 = stage(True)
    rest = [stage(False) for _ in range(5)]
    rest = jax.tree_util.tree_map(lambda *a: jnp.stack(a, 0), *rest)
    return {"base": base, "stage1": stage1, "rest": rest}


# ----------------------------- forward pass -----------------------------

def _run_branch(x, cfg, plist, *, h, wd):
    for (_, _, k, rl), p in zip(cfg, plist):
        x, _, _ = _apply_conv(x, p, k=k, relu=rl, pool=False, h=h, wd=wd)
    return x


def coco_pose_net(params, x_nchw):
    n, c, h0, w0 = x_nchw.shape
    assert h0 % 8 == 0 and w0 % 8 == 0, "spatial dims must be divisible by 8"
    x = jnp.transpose(x_nchw, (0, 2, 3, 1)).astype(jnp.bfloat16)
    cur_h, cur_w = h0, w0
    # One-time framing of the input image (the only wrapper-side pad in the network).
    x = jnp.pad(x, ((0, 0), (_F, _F), (0, _wf(cur_w) - cur_w), (0, _C_IN - c)))

    for (_, _, k, pool), p in zip(_BASE, params["base"]):
        x, cur_h, cur_w = _apply_conv(x, p, k=k, relu=True, pool=pool, h=cur_h, wd=cur_w)
    feat = x                                            # framed, 128 channels, H/8 x W/8

    # ---- stage 1 ----
    sp = params["stage1"]
    hf, _, _ = _apply_conv(feat, sp["fused"], k=3, relu=True, pool=False,
                           h=cur_h, wd=cur_w)
    b1 = _run_branch(hf[..., :128], _S1_BRANCH, sp["L1"], h=cur_h, wd=cur_w)
    b2 = _run_branch(hf[..., 128:], _S1_BRANCH, sp["L2"], h=cur_h, wd=cur_w)
    pafs, heatmaps = [b1], [b2]

    # ---- stages 2..6 (identical structure -> single compile via lax.scan) ----
    def stage_body(xin, spx):
        hfx, _, _ = _apply_conv(xin, spx["fused"], k=7, relu=True, pool=False,
                                h=cur_h, wd=cur_w)
        h1 = _run_branch(hfx[..., :128], _SX_BRANCH, spx["L1"], h=cur_h, wd=cur_w)
        h2 = _run_branch(hfx[..., 128:], _SX_BRANCH, spx["L2"], h=cur_h, wd=cur_w)
        nxt = jnp.concatenate([h1, h2, feat], axis=-1)  # 64 + 32 + 128 = 224 channels
        return nxt, (h1, h2)

    xin0 = jnp.concatenate([b1, b2, feat], axis=-1)
    _, (h1s, h2s) = jax.lax.scan(stage_body, xin0, params["rest"])
    pafs += [h1s[i] for i in range(5)]
    heatmaps += [h2s[i] for i in range(5)]

    def unframe(t, c_real):
        t = t[:, _F:_F + cur_h, :cur_w, :c_real].astype(jnp.float32)
        return jnp.transpose(t, (0, 3, 1, 2))           # NHWC -> NCHW

    return [unframe(t, 38) for t in pafs], [unframe(t, 19) for t in heatmaps]


# ----------------------------- self-check -----------------------------

def _self_check():
    """Validate the Pallas conv (framing, roll taps, fused pool) against lax.conv."""
    key = jax.random.PRNGKey(42)
    k_x, k_w = jax.random.split(key)
    n, hh, wd, cin, cout = 1, 8, 8, 32, 64
    wf = _wf(wd)
    x = jax.random.normal(k_x, (n, hh, wd, cin), jnp.float32).astype(jnp.bfloat16)
    xf = jnp.pad(x, ((0, 0), (_F, _F), (0, wf - wd), (0, 0)))
    for k, pool in ((7, False), (3, True)):
        p = k // 2
        w = jax.random.uniform(k_w, (k * k, cin, cout), jnp.float32,
                               minval=-0.1, maxval=0.1).astype(jnp.bfloat16)
        b = jnp.zeros((1, cout), jnp.float32)
        out_wd = wd // 2 if pool else wd
        out_w = _wf(out_wd) if pool else wf
        y = _conv_framed(xf, w, b, k=k, H=hh, wd=wd, relu=True, pool=pool,
                         out_w=out_w, ct=cout)
        ho = hh // 2 if pool else hh
        y = y[:, _F:_F + ho, :out_wd, :].astype(jnp.float32)
        ref = jax.lax.conv_general_dilated(
            x.astype(jnp.float32), w.astype(jnp.float32).reshape(k, k, cin, cout),
            window_strides=(1, 1), padding=[(p, p), (p, p)],
            dimension_numbers=("NHWC", "HWIO", "NHWC"))
        ref = jnp.maximum(ref, 0.0)
        if pool:
            ref = jax.lax.reduce_window(ref, -jnp.inf, jax.lax.max,
                                        (1, 2, 2, 1), (1, 2, 2, 1), "VALID")
        err = float(jnp.max(jnp.abs(y - ref)))
        scale = float(jnp.max(jnp.abs(ref))) + 1e-6
        assert err <= 0.05 * scale + 0.05, (
            f"conv self-check failed (k={k}, pool={pool}): max err {err}, scale {scale}")


# ----------------------------- main -----------------------------

if __name__ == "__main__":
    _init_roll_mode()     # decide pltpu.roll vs jnp.roll shifting before anything traces
    _self_check()         # numeric check of the conv kernel against lax.conv

    key = jax.random.PRNGKey(0)
    pkey, xkey = jax.random.split(key)
    params = init_params(pkey)
    # Small NCHW input (insize=368 in the original; spatial must be divisible by 8).
    x = jax.random.normal(xkey, (2, 3, 32, 32), jnp.float32)

    fwd = jax.jit(coco_pose_net)
    pafs, heatmaps = jax.block_until_ready(fwd(params, x))

    assert len(pafs) == 6 and len(heatmaps) == 6
    assert all(p.shape == (2, 38, 4, 4) for p in pafs)
    assert all(hm.shape == (2, 19, 4, 4) for hm in heatmaps)
    assert all(bool(jnp.all(jnp.isfinite(t))) for t in pafs + heatmaps)
    print("KERNEL_OK")
</pallas_src>

<mosaic_0001>
module attributes {stable_mosaic.version = 11 : i64} {
  func.func @kern(%arg0: memref<6x16x128xbf16, #tpu.memory_space<vmem>>, %arg1: memref<6x16x128xbf16, #tpu.memory_space<vmem>>) attributes {dimension_semantics = [], scalar_prefetch = 0 : i64, scratch_operands = 0 : i64, tpu.core_type = #tpu.core_type<tc>} {
    %c0 = arith.constant 0 : index
    %c0_0 = arith.constant 0 : index
    %c0_1 = arith.constant 0 : index
    %0 = vector.load %arg0[%c0, %c0_0, %c0_1] : memref<6x16x128xbf16, #tpu.memory_space<vmem>>, vector<6x16x128xbf16>
    %c1_i32 = arith.constant 1 : i32
    %1 = tpu.dynamic_rotate %0 by %c1_i32 dim 1 : vector<6x16x128xbf16>, i32 -> vector<6x16x128xbf16>
    %c0_2 = arith.constant 0 : index
    %c0_3 = arith.constant 0 : index
    %c0_4 = arith.constant 0 : index
    %2 = vector.load %arg1[%c0_2, %c0_3, %c0_4] : memref<6x16x128xbf16, #tpu.memory_space<vmem>>, vector<6x16x128xbf16>
    tpu.vector_store %arg1[%c0_2, %c0_3, %c0_4], %1 {strides = array<i32>} : memref<6x16x128xbf16, #tpu.memory_space<vmem>>, vector<6x16x128xbf16>,
    return
  }
}

module attributes {stable_mosaic.version = 11 : i64} {
  func.func @kernel(%arg0: i32, %arg1: i32, %arg2: memref<1x14x16x32xbf16, #tpu.memory_space<vmem>>, %arg3: memref<49x32x64xbf16, #tpu.memory_space<vmem>>, %arg4: memref<1x64xf32, #tpu.memory_space<vmem>>, %arg5: memref<1x14x16x64xbf16, #tpu.memory_space<vmem>>) attributes {dimension_semantics = [#tpu.dimension_semantics<parallel>, #tpu.dimension_semantics<parallel>], iteration_bounds = array<i64: 1, 1>, scalar_prefetch = 0 : i64, scratch_operands = 0 : i64, tpu.core_type = #tpu.core_type<tc>, window_params = [{transform_indices = @transform_0, window_bounds = array<i64: 1, 14, 16, 32>}, {transform_indices = @transform_1, window_bounds = array<i64: 49, 32, 64>}, {transform_indices = @transform_2, window_bounds = array<i64: 1, 64>}, {transform_indices = @transform_3, window_bounds = array<i64: 1, 14, 16, 64>}]} {
    %c0 = arith.constant 0 : index
    %c0_0 = arith.constant 0 : index
    %c0_1 = arith.constant 0 : index
    %c0_2 = arith.constant 0 : index
    %0 = vector.load %arg2[%c0, %c0_0, %c0_1, %c0_2] : memref<1x14x16x32xbf16, #tpu.memory_space<vmem>>, vector<1x14x16x32xbf16>
    %1 = vector.shape_cast %0 : vector<1x14x16x32xbf16> to vector<14x16x32xbf16>
    %cst = arith.constant 0.000000e+00 : f32
    %2 = vector.broadcast %cst : f32 to vector<128x64xf32>
    %3 = vector.extract_strided_slice %1 {offsets = [0, 13, 0], sizes = [14, 3, 32], strides = [1, 1, 1]} : vector<14x16x32xbf16> to vector<14x3x32xbf16>
    %4 = vector.extract_strided_slice %1 {offsets = [0, 0, 0], sizes = [14, 13, 32], strides = [1, 1, 1]} : vector<14x16x32xbf16> to vector<14x13x32xbf16>
    %5 = tpu.concatenate %3, %4 in 1 : vector<14x3x32xbf16>, vector<14x13x32xbf16> -> vector<14x16x32xbf16>
    %6 = vector.extract_strided_slice %5 {offsets = [0, 0, 0], sizes = [8, 16, 32], strides = [1, 1, 1]} : vector<14x16x32xbf16> to vector<8x16x32xbf16>
    %7 = vector.shape_cast %6 : vector<8x16x32xbf16> to vector<128x32xbf16>
    %c0_3 = arith.constant 0 : index
    %c0_4 = arith.constant 0 : index
    %c0_5 = arith.constant 0 : index
    %8 = vector.load %arg3[%c0_3, %c0_4, %c0_5] : memref<49x32x64xbf16, #tpu.memory_space<vmem>>, vector<1x32x64xbf16>
    %9 = vector.shape_cast %8 : vector<1x32x64xbf16> to vector<32x64xbf16>
    %cst_6 = arith.constant dense<0.000000e+00> : vector<128x64xf32>
    %10 = tpu.matmul %7, %9, %cst_6 {dimension_numbers = #tpu.dot_dimension_numbers<[1], [0], [0], [1], [0, 0, 1, 1], [], []>} : vector<128x32xbf16>, vector<32x64xbf16>, vector<128x64xf32> -> vector<128x64xf32>
    %11 = arith.addf %2, %10 : vector<128x64xf32>
    %12 = vector.extract_strided_slice %5 {offsets = [1, 0, 0], sizes = [8, 16, 32], strides = [1, 1, 1]} : vector<14x16x32xbf16> to vector<8x16x32xbf16>
    %13 = vector.shape_cast %12 : vector<8x16x32xbf16> to vector<128x32xbf16>
    %c7 = arith.constant 7 : index
    %c0_7 = arith.constant 0 : index
    %c0_8 = arith.constant 0 : index
    %14 = vector.load %arg3[%c7, %c0_7, %c0_8] : memref<49x32x64xbf16, #tpu.memory_space<vmem>>, vector<1x32x64xbf16>
    %15 = vector.shape_cast %14 : vector<1x32x64xbf16> to vector<32x64xbf16>
    %cst_9 = arith.constant dense<0.000000e+00> : vector<128x64xf32>
    %16 = tpu.matmul %13, %15, %cst_9 {dimension_numbers = #tpu.dot_dimension_numbers<[1], [0], [0], [1], [0, 0, 1, 1], [], []>} : vector<128x32xbf16>, vector<32x64xbf16>, vector<128x64xf32> -> vector<128x64xf32>
    %17 = arith.addf %11, %16 : vector<128x64xf32>
    %18 = vector.extract_strided_slice %5 {offsets = [2, 0, 0], sizes = [8, 16, 32], strides = [1, 1, 1]} : vector<14x16x32xbf16> to vector<8x16x32xbf16>
    %19 = vector.shape_cast %18 : vector<8x16x32xbf16> to vector<128x32xbf16>
    %c14 = arith.constant 14 : index
    %c0_10 = arith.constant 0 : index
    %c0_11 = arith.constant 0 : index
    %20 = vector.load %arg3[%c14, %c0_10, %c0_11] : memref<49x32x64xbf16, #tpu.memory_space<vmem>>, vector<1x32x64xbf16>
    %21 = vector.shape_cast %20 : vector<1x32x64xbf16> to vector<32x64xbf16>
    %cst_12 = arith.constant dense<0.000000e+00> : vector<128x64xf32>
    %22 = tpu.matmul %19, %21, %cst_12 {dimension_numbers = #tpu.dot_dimension_numbers<[1], [0], [0], [1], [0, 0, 1, 1], [], []>} : vector<128x32xbf16>, vector<32x64xbf16>, vector<128x64xf32> -> vector<128x64xf32>
    %23 = arith.addf %17, %22 : vector<128x64xf32>
    %24 = vector.extract_strided_slice %5 {offsets = [3, 0, 0], sizes = [8, 16, 32], strides = [1, 1, 1]} : vector<14x16x32xbf16> to vector<8x16x32xbf16>
    %25 = vector.shape_cast %24 : vector<8x16x32xbf16> to vector<128x32xbf16>
    %c21 = arith.constant 21 : index
    %c0_13 = arith.constant 0 : index
    %c0_14 = arith.constant 0 : index
    %26 = vector.load %arg3[%c21, %c0_13, %c0_14] : memref<49x32x64xbf16, #tpu.memory_space<vmem>>, vector<1x32x64xbf16>
    %27 = vector.shape_cast %26 : vector<1x32x64xbf16> to vector<32x64xbf16>
    %cst_15 = arith.constant dense<0.000000e+00> : vector<128x64xf32>
    %28 = tpu.matmul %25, %27, %cst_15 {dimension_numbers = #tpu.dot_dimension_numbers<[1], [0], [0], [1], [0, 0, 1, 1], [], []>} : vector<128x32xbf16>, vector<32x64xbf16>, vector<128x64xf32> -> vector<128x64xf32>
    %29 = arith.addf %23, %28 : vector<128x64xf32>
    %30 = vector.extract_strided_slice %5 {offsets = [4, 0, 0], sizes = [8, 16, 32], strides = [1, 1, 1]} : vector<14x16x32xbf16> to vector<8x16x32xbf16>
    %31 = vector.shape_cast %30 : vector<8x16x32xbf16> to vector<128x32xbf16>
    %c28 = arith.constant 28 : index
    %c0_16 = arith.constant 0 : index
    %c0_17 = arith.constant 0 : index
    %32 = vector.load %arg3[%c28, %c0_16, %c0_17] : memref<49x32x64xbf16, #tpu.memory_space<vmem>>, vector<1x32x64xbf16>
    %33 = vector.shape_cast %32 : vector<1x32x64xbf16> to vector<32x64xbf16>
    %cst_18 = arith.constant dense<0.000000e+00> : vector<128x64xf32>
    %34 = tpu.matmul %31, %33, %cst_18 {dimension_numbers = #tpu.dot_dimension_numbers<[1], [0], [0], [1], [0, 0, 1, 1], [], []>} : vector<128x32xbf16>, vector<32x64xbf16>, vector<128x64xf32> -> vector<128x64xf32>
    %35 = arith.addf %29, %34 : vector<128x64xf32>
    %36 = vector.extract_strided_slice %5 {offsets = [5, 0, 0], sizes = [8, 16, 32], strides = [1, 1, 1]} : vector<14x16x32xbf16> to vector<8x16x32xbf16>
    %37 = vector.shape_cast %36 : vector<8x16x32xbf16> to vector<128x32xbf16>
    %c35 = arith.constant 35 : index
    %c0_19 = arith.constant 0 : index
    %c0_20 = arith.constant 0 : index
    %38 = vector.load %arg3[%c35, %c0_19, %c0_20] : memref<49x32x64xbf16, #tpu.memory_space<vmem>>, vector<1x32x64xbf16>
    %39 = vector.shape_cast %38 : vector<1x32x64xbf16> to vector<32x64xbf16>
    %cst_21 = arith.constant dense<0.000000e+00> : vector<128x64xf32>
    %40 = tpu.matmul %37, %39, %cst_21 {dimension_numbers = #tpu.dot_dimension_numbers<[1], [0], [0], [1], [0, 0, 1, 1], [], []>} : vector<128x32xbf16>, vector<32x64xbf16>, vector<128x64xf32> -> vector<128x64xf32>
    %41 = arith.addf %35, %40 : vector<128x64xf32>
    %42 = vector.extract_strided_slice %5 {offsets = [6, 0, 0], sizes = [8, 16, 32], strides = [1, 1, 1]} : vector<14x16x32xbf16> to vector<8x16x32xbf16>
    %43 = vector.shape_cast %42 : vector<8x16x32xbf16> to vector<128x32xbf16>
    %c42 = arith.constant 42 : index
    %c0_22 = arith.constant 0 : index
    %c0_23 = arith.constant 0 : index
    %44 = vector.load %arg3[%c42, %c0_22, %c0_23] : memref<49x32x64xbf16, #tpu.memory_space<vmem>>, vector<1x32x64xbf16>
    %45 = vector.shape_cast %44 : vector<1x32x64xbf16> to vector<32x64xbf16>
    %cst_24 = arith.constant dense<0.000000e+00> : vector<128x64xf32>
    %46 = tpu.matmul %43, %45, %cst_24 {dimension_numbers = #tpu.dot_dimension_numbers<[1], [0], [0], [1], [0, 0, 1, 1], [], []>} : vector<128x32xbf16>, vector<32x64xbf16>, vector<128x64xf32> -> vector<128x64xf32>
    %47 = arith.addf %41, %46 : vector<128x64xf32>
    %48 = vector.extract_strided_slice %1 {offsets = [0, 14, 0], sizes = [14, 2, 32], strides = [1, 1, 1]} : vector<14x16x32xbf16> to vector<14x2x32xbf16>
    %49 = vector.extract_strided_slice %1 {offsets = [0, 0, 0], sizes = [14, 14, 32], strides = [1, 1, 1]} : vector<14x16x32xbf16> to vector<14x14x32xbf16>
    %50 = tpu.concatenate %48, %49 in 1 : vector<14x2x32xbf16>, vector<14x14x32xbf16> -> vector<14x16x32xbf16>
    %51 = vector.extract_strided_slice %50 {offsets = [0, 0, 0], sizes = [8, 16, 32], strides = [1, 1, 1]} : vector<14x16x32xbf16> to vector<8x16x32xbf16>
    %52 = vector.shape_cast %51 : vector<8x16x32xbf16> to vector<128x32xbf16>
    %c1 = arith.constant 1 : index
    %c0_25 = arith.constant 0 : index
    %c0_26 = arith.constant 0 : index
    %53 = vector.load %arg3[%c1, %c0_25, %c0_26] : memref<49x32x64xbf16, #tpu.memory_space<vmem>>, vector<1x32x64xbf16>
    %54 = vector.shape_cast %53 : vector<1x32x64xbf16> to vector<32x64xbf16>
    %cst_27 = arith.constant dense<0.000000e+00> : vector<128x64xf32>
    %55 = tpu.matmul %52, %54, %cst_27 {dimension_numbers = #tpu.dot_dimension_numbers<[1], [0], [0], [1], [0, 0, 1, 1], [], []>} : vector<128x32xbf16>, vector<32x64xbf16>, vector<128x64xf32> -> vector<128x64xf32>
    %56 = arith.addf %47, %55 : vector<128x64xf32>
    %57 = vector.extract_strided_slice %50 {offsets = [1, 0, 0], sizes = [8, 16, 32], strides = [1, 1, 1]} : vector<14x16x32xbf16> to vector<8x16x32xbf16>
    %58 = vector.shape_cast %57 : vector<8x16x32xbf16> to vector<128x32xbf16>
    %c8 = arith.constant 8 : index
    %c0_28 = arith.constant 0 : index
    %c0_29 = arith.constant 0 : index
    %59 = vector.load %arg3[%c8, %c0_28, %c0_29] : memref<49x32x64xbf16, #tpu.memory_space<vmem>>, vector<1x32x64xbf16>
    %60 = vector.shape_cast %59 : vector<1x32x64xbf16> to vector<32x64xbf16>
    %cst_30 = arith.constant dense<0.000000e+00> : vector<128x64xf32>
    %61 = tpu.matmul %58, %60, %cst_30 {dimension_numbers = #tpu.dot_dimension_numbers<[1], [0], [0], [1], [0, 0, 1, 1], [], []>} : vector<128x32xbf16>, vector<32x64xbf16>, vector<128x64xf32> -> vector<128x64xf32>
    %62 = arith.addf %56, %61 : vector<128x64xf32>
    %63 = vector.extract_strided_slice %50 {offsets = [2, 0, 0], sizes = [8, 16, 32], strides = [1, 1, 1]} : vector<14x16x32xbf16> to vector<8x16x32xbf16>
    %64 = vector.shape_cast %63 : vector<8x16x32xbf16> to vector<128x32xbf16>
    %c15 = arith.constant 15 : index
    %c0_31 = arith.constant 0 : index
    %c0_32 = arith.constant 0 : index
    %65 = vector.load %arg3[%c15, %c0_31, %c0_32] : memref<49x32x64xbf16, #tpu.memory_space<vmem>>, vector<1x32x64xbf16>
    %66 = vector.shape_cast %65 : vector<1x32x64xbf16> to vector<32x64xbf16>
    %cst_33 = arith.constant dense<0.000000e+00> : vector<128x64xf32>
    %67 = tpu.matmul %64, %66, %cst_33 {dimension_numbers = #tpu.dot_dimension_numbers<[1], [0], [0], [1], [0, 0, 1, 1], [], []>} : vector<128x32xbf16>, vector<32x64xbf16>, vector<128x64xf32> -> vector<128x64xf32>
    %68 = arith.addf %62, %67 : vector<128x64xf32>
    %69 = vector.extract_strided_slice %50 {offsets = [3, 0, 0], sizes = [8, 16, 32], strides = [1, 1, 1]} : vector<14x16x32xbf16> to vector<8x16x32xbf16>
    %70 = vector.shape_cast %69 : vector<8x16x32xbf16> to vector<128x32xbf16>
    %c22 = arith.constant 22 : index
    %c0_34 = arith.constant 0 : index
    %c0_35 = arith.constant 0 : index
    %71 = vector.load %arg3[%c22, %c0_34, %c0_35] : memref<49x32x64xbf16, #tpu.memory_space<vmem>>, vector<1x32x64xbf16>
    %72 = vector.shape_cast %71 : vector<1x32x64xbf16> to vector<32x64xbf16>
    %cst_36 = arith.constant dense<0.000000e+00> : vector<128x64xf32>
    %73 = tpu.matmul %70, %72, %cst_36 {dimension_numbers = #tpu.dot_dimension_numbers<[1], [0], [0], [1], [0, 0, 1, 1], [], []>} : vector<128x32xbf16>, vector<32x64xbf16>, vector<128x64xf32> -> vector<128x64xf32>
    %74 = arith.addf %68, %73 : vector<128x64xf32>
    %75 = vector.extract_strided_slice %50 {offsets = [4, 0, 0], sizes = [8, 16, 32], strides = [1, 1, 1]} : vector<14x16x32xbf16> to vector<8x16x32xbf16>
    %76 = vector.shape_cast %75 : vector<8x16x32xbf16> to vector<128x32xbf16>
    %c29 = arith.constant 29 : index
    %c0_37 = arith.constant 0 : index
    %c0_38 = arith.constant 0 : index
    %77 = vector.load %arg3[%c29, %c0_37, %c0_38] : memref<49x32x64xbf16, #tpu.memory_space<vmem>>, vector<1x32x64xbf16>
    %78 = vector.shape_cast %77 : vector<1x32x64xbf16> to vector<32x64xbf16>
    %cst_39 = arith.constant dense<0.000000e+00> : vector<128x64xf32>
    %79 = tpu.matmul %76, %78, %cst_39 {dimension_numbers = #tpu.dot_dimension_numbers<[1], [0], [0], [1], [0, 0, 1, 1], [], []>} : vector<128x32xbf16>, vector<32x64xbf16>, vector<128x64xf32> -> vector<128x64xf32>
    %80 = arith.addf %74, %79 : vector<128x64xf32>
    %81 = vector.extract_strided_slice %50 {offsets = [5, 0, 0], sizes = [8, 16, 32], strides = [1, 1, 1]} : vector<14x16x32xbf16> to vector<8x16x32xbf16>
    %82 = vector.shape_cast %81 : vector<8x16x32xbf16> to vector<128x32xbf16>
    %c36 = arith.constant 36 : index
    %c0_40 = arith.constant 0 : index
    %c0_41 = arith.constant 0 : index
    %83 = vector.load %arg3[%c36, %c0_40, %c0_41] : memref<49x32x64xbf16, #tpu.memory_space<vmem>>, vector<1x32x64xbf16>
    %84 = vector.shape_cast %83 : vector<1x32x64xbf16> to vector<32x64xbf16>
    %cst_42 = arith.constant dense<0.000000e+00> : vector<128x64xf32>
    %85 = tpu.matmul %82, %84, %cst_42 {dimension_numbers = #tpu.dot_dimension_numbers<[1], [0], [0], [1], [0, 0, 1, 1], [], []>} : vector<128x32xbf16>, vector<32x64xbf16>, vector<128x64xf32> -> vector<128x64xf32>
    %86 = arith.addf %80, %85 : vector<128x64xf32>
    %87 = vector.extract_strided_slice %50 {offsets = [6, 0, 0], sizes = [8, 16, 32], strides = [1, 1, 1]} : vector<14x16x32xbf16> to vector<8x16x32xbf16>
    %88 = vector.shape_cast %87 : vector<8x16x32xbf16> to vector<128x32xbf16>
    %c43 = arith.constant 43 : index
    %c0_43 = arith.constant 0 : index
    %c0_44 = arith.constant 0 : index
    %89 = vector.load %arg3[%c43, %c0_43, %c0_44] : memref<49x32x64xbf16, #tpu.memory_space<vmem>>, vector<1x32x64xbf16>
    %90 = vector.shape_cast %89 : vector<1x32x64xbf16> to vector<32x64xbf16>
    %cst_45 = arith.constant dense<0.000000e+00> : vector<128x64xf32>
    %91 = tpu.matmul %88, %90, %cst_45 {dimension_numbers = #tpu.dot_dimension_numbers<[1], [0], [0], [1], [0, 0, 1, 1], [], []>} : vector<128x32xbf16>, vector<32x64xbf16>, vector<128x64xf32> -> vector<128x64xf32>
    %92 = arith.addf %86, %91 : vector<128x64xf32>
    %93 = vector.extract_strided_slice %1 {offsets = [0, 15, 0], sizes = [14, 1, 32], strides = [1, 1, 1]} : vector<14x16x32xbf16> to vector<14x1x32xbf16>
    %94 = vector.extract_strided_slice %1 {offsets = [0, 0, 0], sizes = [14, 15, 32], strides = [1, 1, 1]} : vector<14x16x32xbf16> to vector<14x15x32xbf16>
    %95 = tpu.concatenate %93, %94 in 1 : vector<14x1x32xbf16>, vector<14x15x32xbf16> -> vector<14x16x32xbf16>
    %96 = vector.extract_strided_slice %95 {offsets = [0, 0, 0], sizes = [8, 16, 32], strides = [1, 1, 1]} : vector<14x16x32xbf16> to vector<8x16x32xbf16>
    %97 = vector.shape_cast %96 : vector<8x16x32xbf16> to vector<128x32xbf16>
    %c2 = arith.constant 2 : index
    %c0_46 = arith.constant 0 : index
    %c0_47 = arith.constant 0 : index
    %98 = vector.load %arg3[%c2, %c0_46, %c0_47] : memref<49x32x64xbf16, #tpu.memory_space<vmem>>, vector<1x32x64xbf16>
    %99 = vector.shape_cast %98 : vector<1x32x64xbf16> to vector<32x64xbf16>
    %cst_48 = arith.constant dense<0.000000e+00> : vector<128x64xf32>
    %100 = tpu.matmul %97, %99, %cst_48 {dimension_numbers = #tpu.dot_dimension_numbers<[1], [0], [0], [1], [0, 0, 1, 1], [], []>} : vector<128x32xbf16>, vector<32x64xbf16>, vector<128x64xf32> -> vector<128x64xf32>
    %101 = arith.addf %92, %100 : vector<128x64xf32>
    %102 = vector.extract_strided_slice %95 {offsets = [1, 0, 0], sizes = [8, 16, 32], strides = [1, 1, 1]} : vector<14x16x32xbf16> to vector<8x16x32xbf16>
    %103 = vector.shape_cast %102 : vector<8x16x32xbf16> to vector<128x32xbf16>
    %c9 = arith.constant 9 : index
    %c0_49 = arith.constant 0 : index
    %c0_50 = arith.constant 0 : index
    %104 = vector.load %arg3[%c9, %c0_49, %c0_50] : memref<49x32x64xbf16, #tpu.memory_space<vmem>>, vector<1x32x64xbf16>
    %105 = vector.shape_cast %104 : vector<1x32x64xbf16> to vector<32x64xbf16>
    %cst_51 = arith.constant dense<0.000000e+00> : vector<128x64xf32>
    %106 = tpu.matmul %103, %105, %cst_51 {dimension_numbers = #tpu.dot_dimension_numbers<[1], [0], [0], [1], [0, 0, 1, 1], [], []>} : vector<128x32xbf16>, vector<32x64xbf16>, vector<128x64xf32> -> vector<128x64xf32>
    %107 = arith.addf %101, %106 : vector<128x64xf32>
    %108 = vector.extract_strided_slice %95 {offsets = [2, 0, 0], sizes = [8, 16, 32], strides = [1, 1, 1]} : vector<14x16x32xbf16> to vector<8x16x32xbf16>
    %109 = vector.shape_cast %108 : vector<8x16x32xbf16> to vector<128x32xbf16>
    %c16 = arith.constant 16 : index
    %c0_52 = arith.constant 0 : index
    %c0_53 = arith.constant 0 : index
    %110 = vector.load %arg3[%c16, %c0_52, %c0_53] : memref<49x32x64xbf16, #tpu.memory_space<vmem>>, vector<1x32x64xbf16>
    %111 = vector.shape_cast %110 : vector<1x32x64xbf16> to vector<32x64xbf16>
    %cst_54 = arith.constant dense<0.000000e+00> : vector<128x64xf32>
    %112 = tpu.matmul %109, %111, %cst_54 {dimension_numbers = #tpu.dot_dimension_numbers<[1], [0], [0], [1], [0, 0, 1, 1], [], []>} : vector<128x32xbf16>, vector<32x64xbf16>, vector<128x64xf32> -> vector<128x64xf32>
    %113 = arith.addf %107, %112 : vector<128x64xf32>
    %114 = vector.extract_strided_slice %95 {offsets = [3, 0, 0], sizes = [8, 16, 32], strides = [1, 1, 1]} : vector<14x16x32xbf16> to vector<8x16x32xbf16>
    %115 = vector.shape_cast %114 : vector<8x16x32xbf16> to vector<128x32xbf16>
    %c23 = arith.constant 23 : index
    %c0_55 = arith.constant 0 : index
    %c0_56 = arith.constant 0 : index
    %116 = vector.load %arg3[%c23, %c0_55, %c0_56] : memref<49x32x64xbf16, #tpu.memory_space<vmem>>, vector<1x32x64xbf16>
    %117 = vector.shape_cast %116 : vector<1x32x64xbf16> to vector<32x64xbf16>
    %cst_57 = arith.constant dense<0.000000e+00> : vector<128x64xf32>
    %118 = tpu.matmul %115, %117, %cst_57 {dimension_numbers = #tpu.dot_dimension_numbers<[1], [0], [0], [1], [0, 0, 1, 1], [], []>} : vector<128x32xbf16>, vector<32x64xbf16>, vector<128x64xf32> -> vector<128x64xf32>
    %119 = arith.addf %113, %118 : vector<128x64xf32>
    %120 = vector.extract_strided_slice %95 {offsets = [4, 0, 0], sizes = [8, 16, 32], strides = [1, 1, 1]} : vector<14x16x32xbf16> to vector<8x16x32xbf16>
    %121 = vector.shape_cast %120 : vector<8x16x32xbf16> to vector<128x32xbf16>
    %c30 = arith.constant 30 : index
    %c0_58 = arith.constant 0 : index
    %c0_59 = arith.constant 0 : index
    %122 = vector.load %arg3[%c30, %c0_58, %c0_59] : memref<49x32x64xbf16, #tpu.memory_space<vmem>>, vector<1x32x64xbf16>
    %123 = vector.shape_cast %122 : vector<1x32x64xbf16> to vector<32x64xbf16>
    %cst_60 = arith.constant dense<0.000000e+00> : vector<128x64xf32>
    %124 = tpu.matmul %121, %123, %cst_60 {dimension_numbers = #tpu.dot_dimension_numbers<[1], [0], [0], [1], [0, 0, 1, 1], [], []>} : vector<128x32xbf16>, vector<32x64xbf16>, vector<128x64xf32> -> vector<128x64xf32>
    %125 = arith.addf %119, %124 : vector<128x64xf32>
    %126 = vector.extract_strided_slice %95 {offsets = [5, 0, 0], sizes = [8, 16, 32], strides = [1, 1, 1]} : vector<14x16x32xbf16> to vector<8x16x32xbf16>
    %127 = vector.shape_cast %126 : vector<8x16x32xbf16> to vector<128x32xbf16>
    %c37 = arith.constant 37 : index
    %c0_61 = arith.constant 0 : index
    %c0_62 = arith.constant 0 : index
    %128 = vector.load %arg3[%c37, %c0_61, %c0_62] : memref<49x32x64xbf16, #tpu.memory_space<vmem>>, vector<1x32x64xbf16>
    %129 = vector.shape_cast %128 : vector<1x32x64xbf16> to vector<32x64xbf16>
    %cst_63 = arith.constant dense<0.000000e+00> : vector<128x64xf32>
    %130 = tpu.matmul %127, %129, %cst_63 {dimension_numbers = #tpu.dot_dimension_numbers<[1], [0], [0], [1], [0, 0, 1, 1], [], []>} : vector<128x32xbf16>, vector<32x64xbf16>, vector<128x64xf32> -> vector<128x64xf32>
    %131 = arith.addf %125, %130 : vector<128x64xf32>
    %132 = vector.extract_strided_slice %95 {offsets = [6, 0, 0], sizes = [8, 16, 32], strides = [1, 1, 1]} : vector<14x16x32xbf16> to vector<8x16x32xbf16>
    %133 = vector.shape_cast %132 : vector<8x16x32xbf16> to vector<128x32xbf16>
    %c44 = arith.constant 44 : index
    %c0_64 = arith.constant 0 : index
    %c0_65 = arith.constant 0 : index
    %134 = vector.load %arg3[%c44, %c0_64, %c0_65] : memref<49x32x64xbf16, #tpu.memory_space<vmem>>, vector<1x32x64xbf16>
    %135 = vector.shape_cast %134 : vector<1x32x64xbf16> to vector<32x64xbf16>
    %cst_66 = arith.constant dense<0.000000e+00> : vector<128x64xf32>
    %136 = tpu.matmul %133, %135, %cst_66 {dimension_numbers = #tpu.dot_dimension_numbers<[1], [0], [0], [1], [0, 0, 1, 1], [], []>} : vector<128x32xbf16>, vector<32x64xbf16>, vector<128x64xf32> -> vector<128x64xf32>
    %137 = arith.addf %131, %136 : vector<128x64xf32>
    %138 = vector.extract_strided_slice %1 {offsets = [0, 0, 0], sizes = [8, 16, 32], strides = [1, 1, 1]} : vector<14x16x32xbf16> to vector<8x16x32xbf16>
    %139 = vector.shape_cast %138 : vector<8x16x32xbf16> to vector<128x32xbf16>
    %c3 = arith.constant 3 : index
    %c0_67 = arith.constant 0 : index
    %c0_68 = arith.constant 0 : index
    %140 = vector.load %arg3[%c3, %c0_67, %c0_68] : memref<49x32x64xbf16, #tpu.memory_space<vmem>>, vector<1x32x64xbf16>
    %141 = vector.shape_cast %140 : vector<1x32x64xbf16> to vector<32x64xbf16>
    %cst_69 = arith.constant dense<0.000000e+00> : vector<128x64xf32>
    %142 = tpu.matmul %139, %141, %cst_69 {dimension_numbers = #tpu.dot_dimension_numbers<[1], [0], [0], [1], [0, 0, 1, 1], [], []>} : vector<128x32xbf16>, vector<32x64xbf16>, vector<128x64xf32> -> vector<128x64xf32>
    %143 = arith.addf %137, %142 : vector<128x64xf32>
    %144 = vector.extract_strided_slice %1 {offsets = [1, 0, 0], sizes = [8, 16, 32], strides = [1, 1, 1]} : vector<14x16x32xbf16> to vector<8x16x32xbf16>
    %145 = vector.shape_cast %144 : vector<8x16x32xbf16> to vector<128x32xbf16>
    %c10 = arith.constant 10 : index
    %c0_70 = arith.constant 0 : index
    %c0_71 = arith.constant 0 : index
    %146 = vector.load %arg3[%c10, %c0_70, %c0_71] : memref<49x32x64xbf16, #tpu.memory_space<vmem>>, vector<1x32x64xbf16>
    %147 = vector.shape_cast %146 : vector<1x32x64xbf16> to vector<32x64xbf16>
    %cst_72 = arith.constant dense<0.000000e+00> : vector<128x64xf32>
    %148 = tpu.matmul %145, %147, %cst_72 {dimension_numbers = #tpu.dot_dimension_numbers<[1], [0], [0], [1], [0, 0, 1, 1], [], []>} : vector<128x32xbf16>, vector<32x64xbf16>, vector<128x64xf32> -> vector<128x64xf32>
    %149 = arith.addf %143, %148 : vector<128x64xf32>
    %150 = vector.extract_strided_slice %1 {offsets = [2, 0, 0], sizes = [8, 16, 32], strides = [1, 1, 1]} : vector<14x16x32xbf16> to vector<8x16x32xbf16>
    %151 = vector.shape_cast %150 : vector<8x16x32xbf16> to vector<128x32xbf16>
    %c17 = arith.constant 17 : index
    %c0_73 = arith.constant 0 : index
    %c0_74 = arith.constant 0 : index
    %152 = vector.load %arg3[%c17, %c0_73, %c0_74] : memref<49x32x64xbf16, #tpu.memory_space<vmem>>, vector<1x32x64xbf16>
    %153 = vector.shape_cast %152 : vector<1x32x64xbf16> to vector<32x64xbf16>
    %cst_75 = arith.constant dense<0.000000e+00> : vector<128x64xf32>
    %154 = tpu.matmul %151, %153, %cst_75 {dimension_numbers = #tpu.dot_dimension_numbers<[1], [0], [0], [1], [0, 0, 1, 1], [], []>} : vector<128x32xbf16>, vector<32x64xbf16>, vector<128x64xf32> -> vector<128x64xf32>
    %155 = arith.addf %149, %154 : vector<128x64xf32>
    %156 = vector.extract_strided_slice %1 {offsets = [3, 0, 0], sizes = [8, 16, 32], strides = [1, 1, 1]} : vector<14x16x32xbf16> to vector<8x16x32xbf16>
    %157 = vector.shape_cast %156 : vector<8x16x32xbf16> to vector<128x32xbf16>
    %c24 = arith.constant 24 : index
    %c0_76 = arith.constant 0 : index
    %c0_77 = arith.constant 0 : index
    %158 = vector.load %arg3[%c24, %c0_76, %c0_77] : memref<49x32x64xbf16, #tpu.memory_space<vmem>>, vector<1x32x64xbf16>
    %159 = vector.shape_cast %158 : vector<1x32x64xbf16> to vector<32x64xbf16>
    %cst_78 = arith.constant dense<0.000000e+00> : vector<128x64xf32>
    %160 = tpu.matmul %157, %159, %cst_78 {dimension_numbers = #tpu.dot_dimension_numbers<[1], [0], [0], [1], [0, 0, 1, 1], [], []>} : vector<128x32xbf16>, vector<32x64xbf16>, vector<128x64xf32> -> vector<128x64xf32>
    %161 = arith.addf %155, %160 : vector<128x64xf32>
    %162 = vector.extract_strided_slice %1 {offsets = [4, 0, 0], sizes = [8, 16, 32], strides = [1, 1, 1]} : vector<14x16x32xbf16> to vector<8x16x32xbf16>
    %163 = vector.shape_cast %162 : vector<8x16x32xbf16> to vector<128x32xbf16>
    %c31 = arith.constant 31 : index
    %c0_79 = arith.constant 0 : index
    %c0_80 = arith.constant 0 : index
    %164 = vector.load %arg3[%c31, %c0_79, %c0_80] : memref<49x32x64xbf16, #tpu.memory_space<vmem>>, vector<1x32x64xbf16>
    %165 = vector.shape_cast %164 : vector<1x32x64xbf16> to vector<32x64xbf16>
    %cst_81 = arith.constant dense<0.000000e+00> : vector<128x64xf32>
    %166 = tpu.matmul %163, %165, %cst_81 {dimension_numbers = #tpu.dot_dimension_numbers<[1], [0], [0], [1], [0, 0, 1, 1], [], []>} : vector<128x32xbf16>, vector<32x64xbf16>, vector<128x64xf32> -> vector<128x64xf32>
    %167 = arith.addf %161, %166 : vector<128x64xf32>
    %168 = vector.extract_strided_slice %1 {offsets = [5, 0, 0], sizes = [8, 16, 32], strides = [1, 1, 1]} : vector<14x16x32xbf16> to vector<8x16x32xbf16>
    %169 = vector.shape_cast %168 : vector<8x16x32xbf16> to vector<128x32xbf16>
    %c38 = arith.constant 38 : index
    %c0_82 = arith.constant 0 : index
    %c0_83 = arith.constant 0 : index
    %170 = vector.load %arg3[%c38, %c0_82, %c0_83] : memref<49x32x64xbf16, #tpu.memory_space<vmem>>, vector<1x32x64xbf16>
    %171 = vector.shape_cast %170 : vector<1x32x64xbf16> to vector<32x64xbf16>
    %cst_84 = arith.constant dense<0.000000e+00> : vector<128x64xf32>
    %172 = tpu.matmul %169, %171, %cst_84 {dimension_numbers = #tpu.dot_dimension_numbers<[1], [0], [0], [1], [0, 0, 1, 1], [], []>} : vector<128x32xbf16>, vector<32x64xbf16>, vector<128x64xf32> -> vector<128x64xf32>
    %173 = arith.addf %167, %172 : vector<128x64xf32>
    %174 = vector.extract_strided_slice %1 {offsets = [6, 0, 0], sizes = [8, 16, 32], strides = [1, 1, 1]} : vector<14x16x32xbf16> to vector<8x16x32xbf16>
    %175 = vector.shape_cast %174 : vector<8x16x32xbf16> to vector<128x32xbf16>
    %c45 = arith.constant 45 : index
    %c0_85 = arith.constant 0 : index
    %c0_86 = arith.constant 0 : index
    %176 = vector.load %arg3[%c45, %c0_85, %c0_86] : memref<49x32x64xbf16, #tpu.memory_space<vmem>>, vector<1x32x64xbf16>
    %177 = vector.shape_cast %176 : vector<1x32x64xbf16> to vector<32x64xbf16>
    %cst_87 = arith.constant dense<0.000000e+00> : vector<128x64xf32>
    %178 = tpu.matmul %175, %177, %cst_87 {dimension_numbers = #tpu.dot_dimension_numbers<[1], [0], [0], [1], [0, 0, 1, 1], [], []>} : vector<128x32xbf16>, vector<32x64xbf16>, vector<128x64xf32> -> vector<128x64xf32>
    %179 = arith.addf %173, %178 : vector<128x64xf32>
    %180 = vector.extract_strided_slice %1 {offsets = [0, 1, 0], sizes = [14, 15, 32], strides = [1, 1, 1]} : vector<14x16x32xbf16> to vector<14x15x32xbf16>
    %181 = vector.extract_strided_slice %1 {offsets = [0, 0, 0], sizes = [14, 1, 32], strides = [1, 1, 1]} : vector<14x16x32xbf16> to vector<14x1x32xbf16>
    %182 = tpu.concatenate %180, %181 in 1 : vector<14x15x32xbf16>, vector<14x1x32xbf16> -> vector<14x16x32xbf16>
    %183 = vector.extract_strided_slice %182 {offsets = [0, 0, 0], sizes = [8, 16, 32], strides = [1, 1, 1]} : vector<14x16x32xbf16> to vector<8x16x32xbf16>
    %184 = vector.shape_cast %183 : vector<8x16x32xbf16> to vector<128x32xbf16>
    %c4 = arith.constant 4 : index
    %c0_88 = arith.constant 0 : index
    %c0_89 = arith.constant 0 : index
    %185 = vector.load %arg3[%c4, %c0_88, %c0_89] : memref<49x32x64xbf16, #tpu.memory_space<vmem>>, vector<1x32x64xbf16>
    %186 = vector.shape_cast %185 : vector<1x32x64xbf16> to vector<32x64xbf16>
    %cst_90 = arith.constant dense<0.000000e+00> : vector<128x64xf32>
    %187 = tpu.matmul %184, %186, %cst_90 {dimension_numbers = #tpu.dot_dimension_numbers<[1], [0], [0], [1], [0, 0, 1, 1], [], []>} : vector<128x32xbf16>, vector<32x64xbf16>, vector<128x64xf32> -> vector<128x64xf32>
    %188 = arith.addf %179, %187 : vector<128x64xf32>
    %189 = vector.extract_strided_slice %182 {offsets = [1, 0, 0], sizes = [8, 16, 32], strides = [1, 1, 1]} : vector<14x16x32xbf16> to vector<8x16x32xbf16>
    %190 = vector.shape_cast %189 : vector<8x16x32xbf16> to vector<128x32xbf16>
    %c11 = arith.constant 11 : index
    %c0_91 = arith.constant 0 : index
    %c0_92 = arith.constant 0 : index
    %191 = vector.load %arg3[%c11, %c0_91, %c0_92] : memref<49x32x64xbf16, #tpu.memory_space<vmem>>, vector<1x32x64xbf16>
    %192 = vector.shape_cast %191 : vector<1x32x64xbf16> to vector<32x64xbf16>
    %cst_93 = arith.constant dense<0.000000e+00> : vector<128x64xf32>
    %193 = tpu.matmul %190, %192, %cst_93 {dimension_numbers = #tpu.dot_dimension_numbers<[1], [0], [0], [1], [0, 0, 1, 1], [], []>} : vector<128x32xbf16>, vector<32x64xbf16>, vector<128x64xf32> -> vector<128x64xf32>
    %194 = arith.addf %188, %193 : vector<128x64xf32>
    %195 = vector.extract_strided_slice %182 {offsets = [2, 0, 0], sizes = [8, 16, 32], strides = [1, 1, 1]} : vector<14x16x32xbf16> to vector<8x16x32xbf16>
    %196 = vector.shape_cast %195 : vector<8x16x32xbf16> to vector<128x32xbf16>
    %c18 = arith.constant 18 : index
    %c0_94 = arith.constant 0 : index
    %c0_95 = arith.constant 0 : index
    %197 = vector.load %arg3[%c18, %c0_94, %c0_95] : memref<49x32x64xbf16, #tpu.memory_space<vmem>>, vector<1x32x64xbf16>
    %198 = vector.shape_cast %197 : vector<1x32x64xbf16> to vector<32x64xbf16>
    %cst_96 = arith.constant dense<0.000000e+00> : vector<128x64xf32>
    %199 = tpu.matmul %196, %198, %cst_96 {dimension_numbers = #tpu.dot_dimension_numbers<[1], [0], [0], [1], [0, 0, 1, 1], [], []>} : vector<128x32xbf16>, vector<32x64xbf16>, vector<128x64xf32> -> vector<128x64xf32>
    %200 = arith.addf %194, %199 : vector<128x64xf32>
    %201 = vector.extract_strided_slice %182 {offsets = [3, 0, 0], sizes = [8, 16, 32], strides = [1, 1, 1]} : vector<14x16x32xbf16> to vector<8x16x32xbf16>
    %202 = vector.shape_cast %201 : vector<8x16x32xbf16> to vector<128x32xbf16>
    %c25 = arith.constant 25 : index
    %c0_97 = arith.constant 0 : index
    %c0_98 = arith.constant 0 : index
    %203 = vector.load %arg3[%c25, %c0_97, %c0_98] : memref<49x32x64xbf16, #tpu.memory_space<vmem>>, vector<1x32x64xbf16>
    %204 = vector.shape_cast %203 : vector<1x32x64xbf16> to vector<32x64xbf16>
    %cst_99 = arith.constant dense<0.000000e+00> : vector<128x64xf32>
    %205 = tpu.matmul %202, %204, %cst_99 {dimension_numbers = #tpu.dot_dimension_numbers<[1], [0], [0], [1], [0, 0, 1, 1], [], []>} : vector<128x32xbf16>, vector<32x64xbf16>, vector<128x64xf32> -> vector<128x64xf32>
    %206 = arith.addf %200, %205 : vector<128x64xf32>
    %207 = vector.extract_strided_slice %182 {offsets = [4, 0, 0], sizes = [8, 16, 32], strides = [1, 1, 1]} : vector<14x16x32xbf16> to vector<8x16x32xbf16>
    %208 = vector.shape_cast %207 : vector<8x16x32xbf16> to vector<128x32xbf16>
    %c32 = arith.constant 32 : index
    %c0_100 = arith.constant 0 : index
    %c0_101 = arith.constant 0 : index
    %209 = vector.load %arg3[%c32, %c0_100, %c0_101] : memref<49x32x64xbf16, #tpu.memory_space<vmem>>, vector<1x32x64xbf16>
    %210 = vector.shape_cast %209 : vector<1x32x64xbf16> to vector<32x64xbf16>
    %cst_102 = arith.constant dense<0.000000e+00> : vector<128x64xf32>
    %211 = tpu.matmul %208, %210, %cst_102 {dimension_numbers = #tpu.dot_dimension_numbers<[1], [0], [0], [1], [0, 0, 1, 1], [], []>} : vector<128x32xbf16>, vector<32x64xbf16>, vector<128x64xf32> -> vector<128x64xf32>
    %212 = arith.addf %206, %211 : vector<128x64xf32>
    %213 = vector.extract_strided_slice %182 {offsets = [5, 0, 0], sizes = [8, 16, 32], strides = [1, 1, 1]} : vector<14x16x32xbf16> to vector<8x16x32xbf16>
    %214 = vector.shape_cast %213 : vector<8x16x32xbf16> to vector<128x32xbf16>
    %c39 = arith.constant 39 : index
    %c0_103 = arith.constant 0 : index
    %c0_104 = arith.constant 0 : index
    %215 = vector.load %arg3[%c39, %c0_103, %c0_104] : memref<49x32x64xbf16, #tpu.memory_space<vmem>>, vector<1x32x64xbf16>
    %216 = vector.shape_cast %215 : vector<1x32x64xbf16> to vector<32x64xbf16>
    %cst_105 = arith.constant dense<0.000000e+00> : vector<128x64xf32>
    %217 = tpu.matmul %214, %216, %cst_105 {dimension_numbers = #tpu.dot_dimension_numbers<[1], [0], [0], [1], [0, 0, 1, 1], [], []>} : vector<128x32xbf16>, vector<32x64xbf16>, vector<128x64xf32> -> vector<128x64xf32>
    %218 = arith.addf %212, %217 : vector<128x64xf32>
    %219 = vector.extract_strided_slice %182 {offsets = [6, 0, 0], sizes = [8, 16, 32], strides = [1, 1, 1]} : vector<14x16x32xbf16> to vector<8x16x32xbf16>
    %220 = vector.shape_cast %219 : vector<8x16x32xbf16> to vector<128x32xbf16>
    %c46 = arith.constant 46 : index
    %c0_106 = arith.constant 0 : index
    %c0_107 = arith.constant 0 : index
    %221 = vector.load %arg3[%c46, %c0_106, %c0_107] : memref<49x32x64xbf16, #tpu.memory_space<vmem>>, vector<1x32x64xbf16>
    %222 = vector.shape_cast %221 : vector<1x32x64xbf16> to vector<32x64xbf16>
    %cst_108 = arith.constant dense<0.000000e+00> : vector<128x64xf32>
    %223 = tpu.matmul %220, %222, %cst_108 {dimension_numbers = #tpu.dot_dimension_numbers<[1], [0], [0], [1], [0, 0, 1, 1], [], []>} : vector<128x32xbf16>, vector<32x64xbf16>, vector<128x64xf32> -> vector<128x64xf32>
    %224 = arith.addf %218, %223 : vector<128x64xf32>
    %225 = vector.extract_strided_slice %1 {offsets = [0, 2, 0], sizes = [14, 14, 32], strides = [1, 1, 1]} : vector<14x16x32xbf16> to vector<14x14x32xbf16>
    %226 = vector.extract_strided_slice %1 {offsets = [0, 0, 0], sizes = [14, 2, 32], strides = [1, 1, 1]} : vector<14x16x32xbf16> to vector<14x2x32xbf16>
    %227 = tpu.concatenate %225, %226 in 1 : vector<14x14x32xbf16>, vector<14x2x32xbf16> -> vector<14x16x32xbf16>
    %228 = vector.extract_strided_slice %227 {offsets = [0, 0, 0], sizes = [8, 16, 32], strides = [1, 1, 1]} : vector<14x16x32xbf16> to vector<8x16x32xbf16>
    %229 = vector.shape_cast %228 : vector<8x16x32xbf16> to vector<128x32xbf16>
    %c5 = arith.constant 5 : index
    %c0_109 = arith.constant 0 : index
    %c0_110 = arith.constant 0 : index
    %230 = vector.load %arg3[%c5, %c0_109, %c0_110] : memref<49x32x64xbf16, #tpu.memory_space<vmem>>, vector<1x32x64xbf16>
    %231 = vector.shape_cast %230 : vector<1x32x64xbf16> to vector<32x64xbf16>
    %cst_111 = arith.constant dense<0.000000e+00> : vector<128x64xf32>
    %232 = tpu.matmul %229, %231, %cst_111 {dimension_numbers = #tpu.dot_dimension_numbers<[1], [0], [0], [1], [0, 0, 1, 1], [], []>} : vector<128x32xbf16>, vector<32x64xbf16>, vector<128x64xf32> -> vector<128x64xf32>
    %233 = arith.addf %224, %232 : vector<128x64xf32>
    %234 = vector.extract_strided_slice %227 {offsets = [1, 0, 0], sizes = [8, 16, 32], strides = [1, 1, 1]} : vector<14x16x32xbf16> to vector<8x16x32xbf16>
    %235 = vector.shape_cast %234 : vector<8x16x32xbf16> to vector<128x32xbf16>
    %c12 = arith.constant 12 : index
    %c0_112 = arith.constant 0 : index
    %c0_113 = arith.constant 0 : index
    %236 = vector.load %arg3[%c12, %c0_112, %c0_113] : memref<49x32x64xbf16, #tpu.memory_space<vmem>>, vector<1x32x64xbf16>
    %237 = vector.shape_cast %236 : vector<1x32x64xbf16> to vector<32x64xbf16>
    %cst_114 = arith.constant dense<0.000000e+00> : vector<128x64xf32>
    %238 = tpu.matmul %235, %237, %cst_114 {dimension_numbers = #tpu.dot_dimension_numbers<[1], [0], [0], [1], [0, 0, 1, 1], [], []>} : vector<128x32xbf16>, vector<32x64xbf16>, vector<128x64xf32> -> vector<128x64xf32>
    %239 = arith.addf %233, %238 : vector<128x64xf32>
    %240 = vector.extract_strided_slice %227 {offsets = [2, 0, 0], sizes = [8, 16, 32], strides = [1, 1, 1]} : vector<14x16x32xbf16> to vector<8x16x32xbf16>
    %241 = vector.shape_cast %240 : vector<8x16x32xbf16> to vector<128x32xbf16>
    %c19 = arith.constant 19 : index
    %c0_115 = arith.constant 0 : index
    %c0_116 = arith.constant 0 : index
    %242 = vector.load %arg3[%c19, %c0_115, %c0_116] : memref<49x32x64xbf16, #tpu.memory_space<vmem>>, vector<1x32x64xbf16>
    %243 = vector.shape_cast %242 : vector<1x32x64xbf16> to vector<32x64xbf16>
    %cst_117 = arith.constant dense<0.000000e+00> : vector<128x64xf32>
    %244 = tpu.matmul %241, %243, %cst_117 {dimension_numbers = #tpu.dot_dimension_numbers<[1], [0], [0], [1], [0, 0, 1, 1], [], []>} : vector<128x32xbf16>, vector<32x64xbf16>, vector<128x64xf32> -> vector<128x64xf32>
    %245 = arith.addf %239, %244 : vector<128x64xf32>
    %246 = vector.extract_strided_slice %227 {offsets = [3, 0, 0], sizes = [8, 16, 32], strides = [1, 1, 1]} : vector<14x16x32xbf16> to vector<8x16x32xbf16>
    %247 = vector.shape_cast %246 : vector<8x16x32xbf16> to vector<128x32xbf16>
    %c26 = arith.constant 26 : index
    %c0_118 = arith.constant 0 : index
    %c0_119 = arith.constant 0 : index
    %248 = vector.load %arg3[%c26, %c0_118, %c0_119] : memref<49x32x64xbf16, #tpu.memory_space<vmem>>, vector<1x32x64xbf16>
    %249 = vector.shape_cast %248 : vector<1x32x64xbf16> to vector<32x64xbf16>
    %cst_120 = arith.constant dense<0.000000e+00> : vector<128x64xf32>
    %250 = tpu.matmul %247, %249, %cst_120 {dimension_numbers = #tpu.dot_dimension_numbers<[1], [0], [0], [1], [0, 0, 1, 1], [], []>} : vector<128x32xbf16>, vector<32x64xbf16>, vector<128x64xf32> -> vector<128x64xf32>
    %251 = arith.addf %245, %250 : vector<128x64xf32>
    %252 = vector.extract_strided_slice %227 {offsets = [4, 0, 0], sizes = [8, 16, 32], strides = [1, 1, 1]} : vector<14x16x32xbf16> to vector<8x16x32xbf16>
    %253 = vector.shape_cast %252 : vector<8x16x32xbf16> to vector<128x32xbf16>
    %c33 = arith.constant 33 : index
    %c0_121 = arith.constant 0 : index
    %c0_122 = arith.constant 0 : index
    %254 = vector.load %arg3[%c33, %c0_121, %c0_122] : memref<49x32x64xbf16, #tpu.memory_space<vmem>>, vector<1x32x64xbf16>
    %255 = vector.shape_cast %254 : vector<1x32x64xbf16> to vector<32x64xbf16>
    %cst_123 = arith.constant dense<0.000000e+00> : vector<128x64xf32>
    %256 = tpu.matmul %253, %255, %cst_123 {dimension_numbers = #tpu.dot_dimension_numbers<[1], [0], [0], [1], [0, 0, 1, 1], [], []>} : vector<128x32xbf16>, vector<32x64xbf16>, vector<128x64xf32> -> vector<128x64xf32>
    %257 = arith.addf %251, %256 : vector<128x64xf32>
    %258 = vector.extract_strided_slice %227 {offsets = [5, 0, 0], sizes = [8, 16, 32], strides = [1, 1, 1]} : vector<14x16x32xbf16> to vector<8x16x32xbf16>
    %259 = vector.shape_cast %258 : vector<8x16x32xbf16> to vector<128x32xbf16>
    %c40 = arith.constant 40 : index
    %c0_124 = arith.constant 0 : index
    %c0_125 = arith.constant 0 : index
    %260 = vector.load %arg3[%c40, %c0_124, %c0_125] : memref<49x32x64xbf16, #tpu.memory_space<vmem>>, vector<1x32x64xbf16>
    %261 = vector.shape_cast %260 : vector<1x32x64xbf16> to vector<32x64xbf16>
    %cst_126 = arith.constant dense<0.000000e+00> : vector<128x64xf32>
    %262 = tpu.matmul %259, %261, %cst_126 {dimension_numbers = #tpu.dot_dimension_numbers<[1], [0], [0], [1], [0, 0, 1, 1], [], []>} : vector<128x32xbf16>, vector<32x64xbf16>, vector<128x64xf32> -> vector<128x64xf32>
    %263 = arith.addf %257, %262 : vector<128x64xf32>
    %264 = vector.extract_strided_slice %227 {offsets = [6, 0, 0], sizes = [8, 16, 32], strides = [1, 1, 1]} : vector<14x16x32xbf16> to vector<8x16x32xbf16>
    %265 = vector.shape_cast %264 : vector<8x16x32xbf16> to vector<128x32xbf16>
    %c47 = arith.constant 47 : index
    %c0_127 = arith.constant 0 : index
    %c0_128 = arith.constant 0 : index
    %266 = vector.load %arg3[%c47, %c0_127, %c0_128] : memref<49x32x64xbf16, #tpu.memory_space<vmem>>, vector<1x32x64xbf16>
    %267 = vector.shape_cast %266 : vector<1x32x64xbf16> to vector<32x64xbf16>
    %cst_129 = arith.constant dense<0.000000e+00> : vector<128x64xf32>
    %268 = tpu.matmul %265, %267, %cst_129 {dimension_numbers = #tpu.dot_dimension_numbers<[1], [0], [0], [1], [0, 0, 1, 1], [], []>} : vector<128x32xbf16>, vector<32x64xbf16>, vector<128x64xf32> -> vector<128x64xf32>
    %269 = arith.addf %263, %268 : vector<128x64xf32>
    %270 = vector.extract_strided_slice %1 {offsets = [0, 3, 0], sizes = [14, 13, 32], strides = [1, 1, 1]} : vector<14x16x32xbf16> to vector<14x13x32xbf16>
    %271 = vector.extract_strided_slice %1 {offsets = [0, 0, 0], sizes = [14, 3, 32], strides = [1, 1, 1]} : vector<14x16x32xbf16> to vector<14x3x32xbf16>
    %272 = tpu.concatenate %270, %271 in 1 : vector<14x13x32xbf16>, vector<14x3x32xbf16> -> vector<14x16x32xbf16>
    %273 = vector.extract_strided_slice %272 {offsets = [0, 0, 0], sizes = [8, 16, 32], strides = [1, 1, 1]} : vector<14x16x32xbf16> to vector<8x16x32xbf16>
    %274 = vector.shape_cast %273 : vector<8x16x32xbf16> to vector<128x32xbf16>
    %c6 = arith.constant 6 : index
    %c0_130 = arith.constant 0 : index
    %c0_131 = arith.constant 0 : index
    %275 = vector.load %arg3[%c6, %c0_130, %c0_131] : memref<49x32x64xbf16, #tpu.memory_space<vmem>>, vector<1x32x64xbf16>
    %276 = vector.shape_cast %275 : vector<1x32x64xbf16> to vector<32x64xbf16>
    %cst_132 = arith.constant dense<0.000000e+00> : vector<128x64xf32>
    %277 = tpu.matmul %274, %276, %cst_132 {dimension_numbers = #tpu.dot_dimension_numbers<[1], [0], [0], [1], [0, 0, 1, 1], [], []>} : vector<128x32xbf16>, vector<32x64xbf16>, vector<128x64xf32> -> vector<128x64xf32>
    %278 = arith.addf %269, %277 : vector<128x64xf32>
    %279 = vector.extract_strided_slice %272 {offsets = [1, 0, 0], sizes = [8, 16, 32], strides = [1, 1, 1]} : vector<14x16x32xbf16> to vector<8x16x32xbf16>
    %280 = vector.shape_cast %279 : vector<8x16x32xbf16> to vector<128x32xbf16>
    %c13 = arith.constant 13 : index
    %c0_133 = arith.constant 0 : index
    %c0_134 = arith.constant 0 : index
    %281 = vector.load %arg3[%c13, %c0_133, %c0_134] : memref<49x32x64xbf16, #tpu.memory_space<vmem>>, vector<1x32x64xbf16>
    %282 = vector.shape_cast %281 : vector<1x32x64xbf16> to vector<32x64xbf16>
    %cst_135 = arith.constant dense<0.000000e+00> : vector<128x64xf32>
    %283 = tpu.matmul %280, %282, %cst_135 {dimension_numbers = #tpu.dot_dimension_numbers<[1], [0], [0], [1], [0, 0, 1, 1], [], []>} : vector<128x32xbf16>, vector<32x64xbf16>, vector<128x64xf32> -> vector<128x64xf32>
    %284 = arith.addf %278, %283 : vector<128x64xf32>
    %285 = vector.extract_strided_slice %272 {offsets = [2, 0, 0], sizes = [8, 16, 32], strides = [1, 1, 1]} : vector<14x16x32xbf16> to vector<8x16x32xbf16>
    %286 = vector.shape_cast %285 : vector<8x16x32xbf16> to vector<128x32xbf16>
    %c20 = arith.constant 20 : index
    %c0_136 = arith.constant 0 : index
    %c0_137 = arith.constant 0 : index
    %287 = vector.load %arg3[%c20, %c0_136, %c0_137] : memref<49x32x64xbf16, #tpu.memory_space<vmem>>, vector<1x32x64xbf16>
    %288 = vector.shape_cast %287 : vector<1x32x64xbf16> to vector<32x64xbf16>
    %cst_138 = arith.constant dense<0.000000e+00> : vector<128x64xf32>
    %289 = tpu.matmul %286, %288, %cst_138 {dimension_numbers = #tpu.dot_dimension_numbers<[1], [0], [0], [1], [0, 0, 1, 1], [], []>} : vector<128x32xbf16>, vector<32x64xbf16>, vector<128x64xf32> -> vector<128x64xf32>
    %290 = arith.addf %284, %289 : vector<128x64xf32>
    %291 = vector.extract_strided_slice %272 {offsets = [3, 0, 0], sizes = [8, 16, 32], strides = [1, 1, 1]} : vector<14x16x32xbf16> to vector<8x16x32xbf16>
    %292 = vector.shape_cast %291 : vector<8x16x32xbf16> to vector<128x32xbf16>
    %c27 = arith.constant 27 : index
    %c0_139 = arith.constant 0 : index
    %c0_140 = arith.constant 0 : index
    %293 = vector.load %arg3[%c27, %c0_139, %c0_140] : memref<49x32x64xbf16, #tpu.memory_space<vmem>>, vector<1x32x64xbf16>
    %294 = vector.shape_cast %293 : vector<1x32x64xbf16> to vector<32x64xbf16>
    %cst_141 = arith.constant dense<0.000000e+00> : vector<128x64xf32>
    %295 = tpu.matmul %292, %294, %cst_141 {dimension_numbers = #tpu.dot_dimension_numbers<[1], [0], [0], [1], [0, 0, 1, 1], [], []>} : vector<128x32xbf16>, vector<32x64xbf16>, vector<128x64xf32> -> vector<128x64xf32>
    %296 = arith.addf %290, %295 : vector<128x64xf32>
    %297 = vector.extract_strided_slice %272 {offsets = [4, 0, 0], sizes = [8, 16, 32], strides = [1, 1, 1]} : vector<14x16x32xbf16> to vector<8x16x32xbf16>
    %298 = vector.shape_cast %297 : vector<8x16x32xbf16> to vector<128x32xbf16>
    %c34 = arith.constant 34 : index
    %c0_142 = arith.constant 0 : index
    %c0_143 = arith.constant 0 : index
    %299 = vector.load %arg3[%c34, %c0_142, %c0_143] : memref<49x32x64xbf16, #tpu.memory_space<vmem>>, vector<1x32x64xbf16>
    %300 = vector.shape_cast %299 : vector<1x32x64xbf16> to vector<32x64xbf16>
    %cst_144 = arith.constant dense<0.000000e+00> : vector<128x64xf32>
    %301 = tpu.matmul %298, %300, %cst_144 {dimension_numbers = #tpu.dot_dimension_numbers<[1], [0], [0], [1], [0, 0, 1, 1], [], []>} : vector<128x32xbf16>, vector<32x64xbf16>, vector<128x64xf32> -> vector<128x64xf32>
    %302 = arith.addf %296, %301 : vector<128x64xf32>
    %303 = vector.extract_strided_slice %272 {offsets = [5, 0, 0], sizes = [8, 16, 32], strides = [1, 1, 1]} : vector<14x16x32xbf16> to vector<8x16x32xbf16>
    %304 = vector.shape_cast %303 : vector<8x16x32xbf16> to vector<128x32xbf16>
    %c41 = arith.constant 41 : index
    %c0_145 = arith.constant 0 : index
    %c0_146 = arith.constant 0 : index
    %305 = vector.load %arg3[%c41, %c0_145, %c0_146] : memref<49x32x64xbf16, #tpu.memory_space<vmem>>, vector<1x32x64xbf16>
    %306 = vector.shape_cast %305 : vector<1x32x64xbf16> to vector<32x64xbf16>
    %cst_147 = arith.constant dense<0.000000e+00> : vector<128x64xf32>
    %307 = tpu.matmul %304, %306, %cst_147 {dimension_numbers = #tpu.dot_dimension_numbers<[1], [0], [0], [1], [0, 0, 1, 1], [], []>} : vector<128x32xbf16>, vector<32x64xbf16>, vector<128x64xf32> -> vector<128x64xf32>
    %308 = arith.addf %302, %307 : vector<128x64xf32>
    %309 = vector.extract_strided_slice %272 {offsets = [6, 0, 0], sizes = [8, 16, 32], strides = [1, 1, 1]} : vector<14x16x32xbf16> to vector<8x16x32xbf16>
    %310 = vector.shape_cast %309 : vector<8x16x32xbf16> to vector<128x32xbf16>
    %c48 = arith.constant 48 : index
    %c0_148 = arith.constant 0 : index
    %c0_149 = arith.constant 0 : index
    %311 = vector.load %arg3[%c48, %c0_148, %c0_149] : memref<49x32x64xbf16, #tpu.memory_space<vmem>>, vector<1x32x64xbf16>
    %312 = vector.shape_cast %311 : vector<1x32x64xbf16> to vector<32x64xbf16>
    %cst_150 = arith.constant dense<0.000000e+00> : vector<128x64xf32>
    %313 = tpu.matmul %310, %312, %cst_150 {dimension_numbers = #tpu.dot_dimension_numbers<[1], [0], [0], [1], [0, 0, 1, 1], [], []>} : vector<128x32xbf16>, vector<32x64xbf16>, vector<128x64xf32> -> vector<128x64xf32>
    %314 = arith.addf %308, %313 : vector<128x64xf32>
    %c0_151 = arith.constant 0 : index
    %c0_152 = arith.constant 0 : index
    %315 = vector.load %arg4[%c0_151, %c0_152] : memref<1x64xf32, #tpu.memory_space<vmem>>, vector<1x64xf32>
    %316 = vector.broadcast %315 : vector<1x64xf32> to vector<128x64xf32>
    %317 = arith.addf %314, %316 : vector<128x64xf32>
    %cst_153 = arith.constant 0.000000e+00 : f32
    %318 = vector.broadcast %cst_153 : f32 to vector<128x64xf32>
    %319 = arith.maximumf %317, %318 : vector<128x64xf32>
    %320 = vector.shape_cast %319 : vector<128x64xf32> to vector<8x16x64xf32>
    %321 = tpu.iota {dimensions = array<i32: 1>} : vector<1x16x64xi32>
    %c8_i32 = arith.constant 8 : i32
    %322 = vector.broadcast %c8_i32 : i32 to vector<1x16x64xi32>
    %323 = arith.cmpi slt, %321, %322 : vector<1x16x64xi32>
    %cst_154 = arith.constant 0.000000e+00 : f32
    %324 = vector.shape_cast %323 : vector<1x16x64xi1> to vector<1x16x64xi1>
    %325 = vector.broadcast %324 : vector<1x16x64xi1> to vector<8x16x64xi1>
    %326 = vector.broadcast %cst_154 : f32 to vector<8x16x64xf32>
    %327 = arith.select %325, %320, %326 : vector<8x16x64xi1>, vector<8x16x64xf32>
    %328 = arith.truncf %327 : vector<8x16x64xf32> to vector<8x16x64xbf16>
    %cst_155 = arith.constant 0.000000e+00 : bf16
    %329 = vector.broadcast %cst_155 : bf16 to vector<3x16x64xbf16>
    %c0_156 = arith.constant 0 : index
    %c0_157 = arith.constant 0 : index
    %c0_158 = arith.constant 0 : index
    %c0_159 = arith.constant 0 : index
    %330 = vector.load %arg5[%c0_156, %c0_157, %c0_158, %c0_159] : memref<1x14x16x64xbf16, #tpu.memory_space<vmem>>, vector<1x3x16x64xbf16>
    %331 = vector.shape_cast %330 : vector<1x3x16x64xbf16> to vector<3x16x64xbf16>
    %332 = vector.shape_cast %329 : vector<3x16x64xbf16> to vector<1x3x16x64xbf16>
    tpu.vector_store %arg5[%c0_156, %c0_157, %c0_158, %c0_159], %332 {strides = array<i32>} : memref<1x14x16x64xbf16, #tpu.memory_space<vmem>>, vector<1x3x16x64xbf16>,
    %c0_160 = arith.constant 0 : index
    %c3_161 = arith.constant 3 : index
    %c0_162 = arith.constant 0 : index
    %c0_163 = arith.constant 0 : index
    %333 = vector.load %arg5[%c0_160, %c3_161, %c0_162, %c0_163] : memref<1x14x16x64xbf16, #tpu.memory_space<vmem>>, vector<1x8x16x64xbf16>
    %334 = vector.shape_cast %333 : vector<1x8x16x64xbf16> to vector<8x16x64xbf16>
    %335 = vector.shape_cast %328 : vector<8x16x64xbf16> to vector<1x8x16x64xbf16>
    tpu.vector_store %arg5[%c0_160, %c3_161, %c0_162, %c0_163], %335 {strides = array<i32>} : memref<1x14x16x64xbf16, #tpu.memory_space<vmem>>, vector<1x8x16x64xbf16>,
    %c0_164 = arith.constant 0 : index
    %c11_165 = arith.constant 11 : index
    %c0_166 = arith.constant 0 : index
    %c0_167 = arith.constant 0 : index
    %336 = vector.load %arg5[%c0_164, %c11_165, %c0_166, %c0_167] : memref<1x14x16x64xbf16, #tpu.memory_space<vmem>>, vector<1x3x16x64xbf16>
    %337 = vector.shape_cast %336 : vector<1x3x16x64xbf16> to vector<3x16x64xbf16>
    %338 = vector.shape_cast %329 : vector<3x16x64xbf16> to vector<1x3x16x64xbf16>
    tpu.vector_store %arg5[%c0_164, %c11_165, %c0_166, %c0_167], %338 {strides = array<i32>} : memref<1x14x16x64xbf16, #tpu.memory_space<vmem>>, vector<1x3x16x64xbf16>,
    return
  }
  func.func @transform_0(%arg0: i32, %arg1: i32) -> (i32, i32, i32, i32) {
    %c0_i32 = arith.constant 0 : i32
    %c0_i32_0 = arith.constant 0 : i32
    %c0_i32_1 = arith.constant 0 : i32
    %c0_i32_2 = arith.constant 0 : i32
    return %arg0, %c0_i32, %c0_i32_0, %c0_i32_1 : i32, i32, i32, i32
  }
  func.func @transform_1(%arg0: i32, %arg1: i32) -> (i32, i32, i32) {
    %c0_i32 = arith.constant 0 : i32
    %c0_i32_0 = arith.constant 0 : i32
    %c0_i32_1 = arith.constant 0 : i32
    return %c0_i32, %c0_i32_0, %arg1 : i32, i32, i32
  }
  func.func @transform_2(%arg0: i32, %arg1: i32) -> (i32, i32) {
    %c0_i32 = arith.constant 0 : i32
    %c0_i32_0 = arith.constant 0 : i32
    return %c0_i32, %arg1 : i32, i32
  }
  func.func @transform_3(%arg0: i32, %arg1: i32) -> (i32, i32, i32, i32) {
    %c0_i32 = arith.constant 0 : i32
    %c0_i32_0 = arith.constant 0 : i32
    %c0_i32_1 = arith.constant 0 : i32
    return %arg0, %c0_i32, %c0_i32_0, %arg1 : i32, i32, i32, i32
  }
}

</mosaic_0001>

<bundles_post_ra>
// kernel: tpu_custom_call.1
= control target key start
LH: loop header
LB: loop body
LE: loop exit
PB: predicated region body
PF: predicated region fallthrough
CT: control target
= control target key end

     0   :  { %8 = vsyncpa [#allocation3], 0  ;;  %s12224_s0 = inlined_call_operand.hbm [shape: bf16[1,14,16,32], index: 0, kind: input, shape index: {}]   ;;  %s12225_s1 = inlined_call_operand.hbm [shape: bf16[49,32,64], index: 1, kind: input, shape index: {}]   ;;  %s12226_s2 = inlined_call_operand.vmem [shape: f32[1,64], index: 2, kind: input, shape index: {}]   ;;  %s12227_s3 = inlined_call_operand.hbm [shape: bf16[1,14,16,64], index: 3, kind: output, shape index: {}]  }
   0x1   :  { %9 = vsyncpa [#allocation6], 0 }
   0x2   :  { %10 = vsyncpa [#allocation4], 0  ;;  %s9993_s12 = smov [#allocation2]   ;;  %s9921_s16 = scalar_lea.hbm %s12224_s0, 1792 }
   0x3   :  { %s16_s13 = sshll.u32 %s9993_s12, 4  ;;  %p9922_p0 = scmp.ne.s32.totalorder %s12224_s0, %s9921_s16  ;;  %s17_s13 = int_to_ptr.vmem [resolvable:$true] %s16_s13 }
   0x4   :  { %p9925_p1 = scmp.lt.u32.totalorder %s9921_s16, %s12224_s0 }
   0x6   :  { %p9927_p2 = pnand %p9925_p1, %p9922_p0 }
   0x8   :  { %9930 = shalt.err (!%p9927_p2)
}
   0x9   :  { %s9931_s21 = scalar_lea.vmem %s17_s13, 1792  ;;  %p9936_p4 = scmp.lt.s32.totalorder %s17_s13, %s17_s13 }
   0xa   :  { %p9932_p3 = scmp.ne.s32.totalorder %s17_s13, %s9931_s21  ;;  %p9937_p5 = scmp.lt.s32.totalorder %s9931_s21, %s9931_s21 }
   0xc   :  { %p9938_p6 = por %p9937_p5, %p9936_p4 }
   0xe   :  { %p9939_p7 = pnand %p9938_p6, %p9932_p3 }
  0x10   :  { %9942 = shalt.err (!%p9939_p7)
}
  0x11   :  { %s9994_s22 = smov 64   ;;  %s9995_s23 = smov 4  }
  0x12   :  { %22 = dma.hbm_to_vmem [thread:$0]  %s12224_s0, 1792, %s17_s13, [#allocation3], %s9994_s22, %s9994_s22, %s9995_s23  }
  0x13   :  { %s9996_s26 = smov [#allocation5]   ;;  %s9943_s30 = scalar_lea.hbm %s12225_s1, 12544 }
  0x14   :  { %s28_s27 = sshll.u32 %s9996_s26, 4  ;;  %p9944_p8 = scmp.ne.s32.totalorder %s12225_s1, %s9943_s30  ;;  %s29_s27 = int_to_ptr.vmem [resolvable:$true] %s28_s27 }
  0x15   :  { %p9947_p9 = scmp.lt.u32.totalorder %s9943_s30, %s12225_s1 }
  0x17   :  { %p9949_p10 = pnand %p9947_p9, %p9944_p8 }
  0x19   :  { %9952 = shalt.err (!%p9949_p10)
}
  0x1a   :  { %s9953_s8 = scalar_lea.vmem %s29_s27, 12544  ;;  %p9958_p12 = scmp.lt.s32.totalorder %s29_s27, %s29_s27 }
  0x1b   :  { %p9954_p11 = scmp.ne.s32.totalorder %s29_s27, %s9953_s8  ;;  %p9959_p13 = scmp.lt.s32.totalorder %s9953_s8, %s9953_s8 }
  0x1d   :  { %p9960_p0 = por %p9959_p13, %p9958_p12 }
  0x1f   :  { %p9961_p1 = pnand %p9960_p0, %p9954_p11 }
  0x21   :  { %9964 = shalt.err (!%p9961_p1)
}
  0x22   :  { %34 = dma.hbm_to_vmem [thread:$0]  %s12225_s1, 12544, %s29_s27, [#allocation6], %s9994_s22, %s9994_s22, %s9995_s23  }
  0x23   :  { %9987 = dma.done.wait [#allocation3], 1792  }
  0x24   :  { %9988 = vsyncadd [#allocation3], 4294965504 }
  0x25   :  { %9989 = dma.done.wait [#allocation6], 12544  }
  0x26   :  { %9990 = vsyncadd [#allocation6], 4294954752  ;;  %v9767_v0 = vld [vmem:[#allocation5 + $0x70] sm:$0xff]   ;;  %v9768_v1 = vld [vmem:[#allocation5 + $0x78] sm:$0xff]   ;;  %vm408_vm0 = vcmask 1041408   ;;  %vm446_vm3 = vcmask 261120  }
  0x27   :  { %8776 = vmatprep.subr.bf16.mxu0 %v9767_v0  ;;  %9756 = vmatprep.subr.bf16.mxu1 %v9767_v0  ;;  %v46_v2 = vld [vmem:[#allocation2 + $0x8] sm:$0xf]  ;;  %v47_v3 = vld [vmem:[#allocation2 + $0xc] sm:$0xf]  ;;  %v49_v8 = vld [vmem:[#allocation2 + $0x14] sm:$0xf] }
  0x28   :  { %v54_v4 = vld [vmem:[#allocation2 + $0x28] sm:$0xf]  ;;  %8777 = vmatpush3.bf16.msra.mxu0 %v9767_v0  ;;  %9758 = vmatpush3.bf16.msra.mxu1 %v9767_v0  ;;  %v10050_v5 = vcombine.low %v47_v3, %v47_v3  ;;  %v10052_v6 = vcombine.low %v46_v2, %v47_v3  ;;  %v55_v7 = vld [vmem:[#allocation2 + $0x2c] sm:$0xf]  ;;  %vm409_vm1 = vsmask.f32 1280  ;;  %v10071_v19 = vcombine.low %v49_v8, %v49_v8 }
  0x29   :  { %8778 = vmatprep.subr.bf16.mxu0 %v9768_v1  ;;  %9757 = vmatprep.subr.bf16.mxu1 %v9768_v1  ;;  %v10054_v9 = vcombine.low %v55_v7, %v55_v7  ;;  %v10056_v10 = vcombine.low %v54_v4, %v55_v7  ;;  %v48_v18 = vld [vmem:[#allocation2 + $0x10] sm:$0xf]  ;;  %vm10083_vm2 = vmand %vm408_vm0, %vm409_vm1  ;;  %v57_v28 = vld [vmem:[#allocation2 + $0x34] sm:$0xf]  ;;  %vm1373_vm4 = vcmask 1040384   ;;  %vm4457_vm7 = vcmask 1047552  }
  0x2a   :  { %v12236_v11 = vshrl.u32 %v10050_v5, 16  ;;  %v126_v12 = vshll.u32 %v10050_v5, 16  ;;  %v10061_v13 = vshrl.u32 %v10052_v6, 16  ;;  %v10064_v14 = vshll.u32 %v10052_v6, 16  ;;  %v10073_v20 = vld [vmem:[#allocation5] sm:$0xff]  }
  0x2b   :  { %v12231_v15 = vshrl.u32 %v10054_v9, 16  ;;  %v158_v16 = vshll.u32 %v10054_v9, 16  ;;  %v10069_v17 = vshrl.u32 %v10056_v10, 16  ;;  %v10075_v21 = vld [vmem:[#allocation5 + $0xe0] sm:$0xff]   ;;  %v10093_v34 = vshll.u32 %v10056_v10, 16 }
  0x2c   :  { %12298 = vst [vmem:[#allocation11_spill] sm:$0xff] %v10061_v13  ;;  %12299 = vst [vmem:[#allocation12_spill] sm:$0xff] %v10064_v14  ;;  %8779 = vmatpush3.bf16.msra.mxu0 %v9768_v1  ;;  %9759 = vmatpush3.bf16.msra.mxu1 %v9768_v1  ;;  %v125_v22 = vrot.slane %v12236_v11, 2  ;;  %v128_v23 = vrot.slane %v126_v12, 3  ;;  %v293_v24 = vrot.slane %v10061_v13, 6  ;;  %v296_v25 = vrot.slane %v10064_v14, 7 }
  0x2d   :  { %v157_v27 = vrot.slane %v12231_v15, 2  ;;  %8796 = vmatprep.subr.bf16.mxu1 %v10073_v20  ;;  %8816 = vmatprep.subr.bf16.mxu0 %v10075_v21  ;;  %v160_v31 = vrot.slane %v158_v16, 3  ;;  %v56_v32 = vld [vmem:[#allocation2 + $0x30] sm:$0xf]  ;;  %v325_v33 = vrot.slane %v10069_v17, 6  ;;  %12302 = vst [vmem:[#allocation13_spill] sm:$0xff] %v10093_v34  ;;  %v10101_v39 = vcombine.low %v48_v18, %v49_v8 }
  0x2e   :  { %v129_v29 = vor.u32 %v128_v23, %v125_v22  ;;  %v297_v30 = vor.u32 %v296_v25, %v293_v24  ;;  %v12234_v35 = vshrl.u32 %v10071_v19, 16  ;;  %v134_v36 = vshll.u32 %v10071_v19, 16  ;;  %v50_v45 = vld [vmem:[#allocation2 + $0x18] sm:$0xf]  ;;  %v51_v46 = vld [vmem:[#allocation2 + $0x1c] sm:$0xf] }
  0x2f   :  { %v161_v38 = vor.u32 %v160_v31, %v157_v27  ;;  %v10103_v40 = vcombine.low %v57_v28, %v57_v28  ;;  %v328_v41 = vrot.slane %v10093_v34, 7  ;;  %v10110_v44 = vcombine.low %v56_v32, %v57_v28  ;;  %v58_v51 = vld [vmem:[#allocation2 + $0x38] sm:$0xf]  ;;  %v59_v52 = vld [vmem:[#allocation2 + $0x3c] sm:$0xf] }
  0x30   :  { %v10099_v37 = vsel %vm10083_vm2, %v129_v29, %v297_v30  ;;  %v133_v42 = vrot.slane %v12234_v35, 2  ;;  %v136_v43 = vrot.slane %v134_v36, 3  ;;  %v10113_v47 = vshrl.u32 %v10101_v39, 16  ;;  %v53_v7 = vld [vmem:[#allocation2 + $0x24] sm:$0xf]  ;;  %v9789_v8 = vld [vmem:[#allocation5 + $0xe8] sm:$0xff]  }
  0x31   :  { %8780 = vmatprep.mubr.msk.bf16.mxu0 %vm446_vm3, %v10099_v37  ;;  %12303 = vst [vmem:[#allocation14_spill] sm:$0xff] %v10110_v44  ;;  %v10116_v48 = vshll.u32 %v10101_v39, 16  ;;  %v12230_v49 = vshrl.u32 %v10103_v40, 16  ;;  %v166_v50 = vshll.u32 %v10103_v40, 16  ;;  %v329_v53 = vor.u32 %v328_v41, %v325_v33  ;;  %v52_v23 = vld [vmem:[#allocation2 + $0x20] sm:$0xf] }
  0x32   :  { %12304 = vst [vmem:[#allocation15_spill] sm:$0xff] %v10113_v47  ;;  %v137_v54 = vor.u32 %v136_v43, %v133_v42  ;;  %v10121_v55 = vshrl.u32 %v10110_v44, 16  ;;  %v10124_v56 = vshll.u32 %v10110_v44, 16  ;;  %v301_v57 = vrot.slane %v10113_v47, 6  ;;  %v61_v24 = vld [vmem:[#allocation2 + $0x44] sm:$0xf] }
  0x33   :  { %12305 = vst [vmem:[#allocation16_spill] sm:$0xff] %v10116_v48  ;;  %v304_v58 = vrot.slane %v10116_v48, 7  ;;  %v165_v59 = vrot.slane %v12230_v49, 2  ;;  %v168_v60 = vrot.slane %v166_v50, 3  ;;  %v10132_v61 = vsel %vm10083_vm2, %v161_v38, %v329_v53  ;;  %v9788_v30 = vld [vmem:[#allocation5 + $0x8] sm:$0xff]  }
  0x34   :  { %12306 = vst [vmem:[#allocation17_spill] sm:$0xff] %v10124_v56  ;;  %v333_v62 = vrot.slane %v10121_v55, 6  ;;  %v336_v63 = vrot.slane %v10124_v56, 7  ;;  %v10136_v0 = vcombine.low %v51_v46, %v51_v46  ;;  %8788 = vmatprep.mubr.msk.bf16.mxu1 %vm446_vm3, %v10132_v61  ;;  %v10140_v3 = vcombine.low %v50_v45, %v51_v46 }
  0x35   :  { %v305_v1 = vor.u32 %v304_v58, %v301_v57  ;;  %v169_v2 = vor.u32 %v168_v60, %v165_v59  ;;  %v10142_v4 = vcombine.low %v59_v52, %v59_v52  ;;  %v10146_v22 = vcombine.low %v58_v51, %v59_v52  ;;  %v45_v58 = vld [vmem:[#allocation2 + $0x4] sm:$0xf] }
  0x36   :  { %v337_v12 = vor.u32 %v336_v63, %v333_v62  ;;  %v12233_v16 = vshrl.u32 %v10136_v0, 16  ;;  %v142_v18 = vshll.u32 %v10136_v0, 16  ;;  %v10153_v27 = vshrl.u32 %v10140_v3, 16  ;;  %v10189_v59 = vld [vmem:[#allocation5 + $0x150] sm:$0xff]  }
  0x37   :  { %v10150_v25 = vsel %vm10083_vm2, %v137_v54, %v305_v1  ;;  %v10156_v28 = vshll.u32 %v10140_v3, 16  ;;  %v12229_v29 = vshrl.u32 %v10142_v4, 16  ;;  %v174_v36 = vshll.u32 %v10142_v4, 16 }
  0x38   :  { %12307 = vst [vmem:[#allocation18_spill] sm:$0xff] %v10153_v27  ;;  %8781 = vmatmul.mubr.msk.bf16.vlgmr.msra.gmra.mrb[0].mxu0 %vm446_vm3, %v10150_v25  ;;  %v10163_v31 = vsel %vm10083_vm2, %v169_v2, %v337_v12  ;;  %v141_v32 = vrot.slane %v12233_v16, 2  ;;  %v144_v33 = vrot.slane %v142_v18, 3  ;;  %v309_v38 = vrot.slane %v10153_v27, 6  ;;  %v44_v2 = vld [vmem:[#allocation2] sm:$0xf] }
  0x39   :  { %12308 = vst [vmem:[#allocation19_spill] sm:$0xff] %v10156_v28  ;;  %8789 = vmatmul.mubr.msk.bf16.vlgmr.msra.gmra.mrb[0].mxu1 %vm446_vm3, %v10163_v31  ;;  %8817 = vmatpush3.bf16.msra.mxu0 %v10075_v21  ;;  %v312_v41 = vrot.slane %v10156_v28, 7  ;;  %v173_v42 = vrot.slane %v12229_v29, 2  ;;  %v10176_v43 = vshrl.u32 %v10146_v22, 16  ;;  %v176_v46 = vrot.slane %v174_v36, 3 }
  0x3a   :  { %8797 = vmatpush3.bf16.msra.mxu1 %v10073_v20  ;;  %v145_v45 = vor.u32 %v144_v33, %v141_v32  ;;  %v10180_v50 = vshll.u32 %v10146_v22, 16  ;;  %v10182_v51 = vcombine.low %v53_v7, %v53_v7  ;;  %v60_v21 = vld [vmem:[#allocation2 + $0x40] sm:$0xf]  ;;  %8818 = vmatprep.subr.bf16.mxu0 %v9789_v8  ;;  %v10185_v54 = vcombine.low %v52_v23, %v53_v7  ;;  %v9793_v20 = vld [vmem:[#allocation5 + $0x1c0] sm:$0xff]  }
  0x3b   :  { %12309 = vst [vmem:[#allocation20_spill] sm:$0xff] %v10176_v43  ;;  %v313_v52 = vor.u32 %v312_v41, %v309_v38  ;;  %v341_v53 = vrot.slane %v10176_v43, 6  ;;  %v10187_v57 = vcombine.low %v61_v24, %v61_v24  ;;  %8798 = vmatprep.subr.bf16.mxu1 %v9788_v30  ;;  %v177_v60 = vor.u32 %v176_v46, %v173_v42  ;;  %v9816_v43 = vld [vmem:[#allocation5 + $0xf0] sm:$0xff]  }
  0x3c   :  { %12310 = vst [vmem:[#allocation21_spill] sm:$0xff] %v10180_v50  ;;  %v344_v62 = vrot.slane %v10180_v50, 7  ;;  %v12232_v63 = vshrl.u32 %v10182_v51, 16  ;;  %v150_v1 = vshll.u32 %v10182_v51, 16  ;;  %v10199_v7 = vshrl.u32 %v10185_v54, 16 }
  0x3d   :  { %v10196_v12 = vsel %vm10083_vm2, %v145_v45, %v313_v52  ;;  %v10202_v18 = vshll.u32 %v10185_v54, 16  ;;  %v12228_v23 = vshrl.u32 %v10187_v57, 16  ;;  %8819 = vmatpush3.bf16.msra.mxu0 %v9789_v8  ;;  %v182_v38 = vshll.u32 %v10187_v57, 16 }
  0x3e   :  { %12311 = vst [vmem:[#allocation22_spill] sm:$0xff] %v10199_v7  ;;  %8784 = vmatprep.mubr.msk.bf16.mxu0 %vm446_vm3, %v10196_v12  ;;  %v345_v32 = vor.u32 %v344_v62, %v341_v53  ;;  %v149_v33 = vrot.slane %v12232_v63, 2  ;;  %v152_v36 = vrot.slane %v150_v1, 3  ;;  %8799 = vmatpush3.bf16.msra.mxu1 %v9788_v30  ;;  %v317_v41 = vrot.slane %v10199_v7, 6 }
  0x3f   :  { %12312 = vst [vmem:[#allocation23_spill] sm:$0xff] %v10202_v18  ;;  %v320_v42 = vrot.slane %v10202_v18, 7  ;;  %v181_v45 = vrot.slane %v12228_v23, 2  ;;  %v10214_v46 = vcombine.low %v60_v21, %v61_v24  ;;  %8836 = vmatprep.subr.bf16.mxu1 %v10189_v59  ;;  %8856 = vmatprep.subr.bf16.mxu0 %v9793_v20  ;;  %v184_v53 = vrot.slane %v182_v38, 3 }
  0x40   :  { %v10219_v8 = vsel %vm10083_vm2, %v177_v60, %v345_v32  ;;  %v153_v52 = vor.u32 %v152_v36, %v149_v33  ;;  %v10221_v62 = vcombine.low %v45_v58, %v45_v58  ;;  %v10231_v21 = vcombine.low %v44_v2, %v45_v58 }
  0x41   :  { %8792 = vmatprep.mubr.msk.bf16.mxu1 %vm446_vm3, %v10219_v8  ;;  %v321_v30 = vor.u32 %v320_v42, %v317_v41  ;;  %v10226_v1 = vshrl.u32 %v10214_v46, 16  ;;  %v10229_v24 = vshll.u32 %v10214_v46, 16  ;;  %v185_v23 = vor.u32 %v184_v53, %v181_v45 }
  0x42   :  { %v12237_v60 = vshrl.u32 %v10221_v62, 16  ;;  %v118_v32 = vshll.u32 %v10221_v62, 16  ;;  %v10242_v41 = vshrl.u32 %v10231_v21, 16  ;;  %v10249_v42 = vshll.u32 %v10231_v21, 16 }
  0x43   :  { %12313 = vst [vmem:[#allocation24_spill] sm:$0xff] %v10226_v1  ;;  %12314 = vst [vmem:[#allocation25_spill] sm:$0xff] %v10229_v24  ;;  %v10237_v33 = vsel %vm10083_vm2, %v153_v52, %v321_v30  ;;  %v349_v36 = vrot.slane %v10226_v1, 6  ;;  %v352_v38 = vrot.slane %v10229_v24, 7  ;;  %v1362_v26 = vrot.slane %v10140_v3, 7 }
  0x44   :  { %12315 = vst [vmem:[#allocation26_spill] sm:$0xff] %v10242_v41  ;;  %8785 = vmatmul.mubr.msk.bf16.gmra.mrb[4].mxu0 %vm446_vm3, %v10237_v33  ;;  %v117_v58 = vrot.slane %v12237_v60, 2  ;;  %v120_v2 = vrot.slane %v118_v32, 3  ;;  %12316 = vst [vmem:[#allocation27_spill] sm:$0xff] %v10249_v42  ;;  %v285_v52 = vrot.slane %v10242_v41, 6  ;;  %v288_v30 = vrot.slane %v10249_v42, 7 }
  0x45   :  { %v353_v45 = vor.u32 %v352_v38, %v349_v36  ;;  %8820 = vmatprep.mubr.msk.bf16.mxu0 %vm446_vm3, %v10150_v25  ;;  %v9795_v36 = vld [vmem:[#allocation5 + $0x1c8] sm:$0xff]   ;;  %v9794_v38 = vld [vmem:[#allocation5 + $0x158] sm:$0xff]   ;;  %vm2425_vm5 = vsmask.f32 256  ;;  %vm4458_vm8 = vsmask.f32 7424 }
  0x46   :  { %v121_v53 = vor.u32 %v120_v2, %v117_v58  ;;  %v289_v32 = vor.u32 %v288_v30, %v285_v52  ;;  %v63_v58 = vld [vmem:[#allocation2 + $0x4c] sm:$0xf]  ;;  %v9799_v2 = vld [vmem:[#allocation5 + $0x2a0] sm:$0xff]   ;;  %vm10575_vm6 = vmand %vm1373_vm4, %vm2425_vm5  ;;  %vm5454_vm10 = vcmask 1046528   ;;  %vm6576_vm11 = vsmask.f32 6400 }
  0x47   :  { %v10257_v29 = vsel %vm10083_vm2, %v185_v23, %v353_v45  ;;  %v62_v23 = vld [vmem:[#allocation2 + $0x48] sm:$0xf]  ;;  %v10270_v45 = vcombine.low %v63_v58, %v63_v58  ;;  %v65_v52 = vld [vmem:[#allocation2 + $0x54] sm:$0xf]  ;;  %v64_v30 = vld [vmem:[#allocation2 + $0x50] sm:$0xf] }
  0x48   :  { %8793 = vmatmul.mubr.msk.bf16.gmra.mrb[4].mxu1 %vm446_vm3, %v10257_v29  ;;  %v411_v49 = vsel %vm10083_vm2, %v121_v53, %v289_v32  ;;  %v67_v32 = vld [vmem:[#allocation2 + $0x5c] sm:$0xf]  ;;  %v10299_v63 = vcombine.low %v64_v30, %v65_v52  ;;  %vm11126_vm9 = vmand %vm4457_vm7, %vm4458_vm8  ;;  %vm7616_vm13 = vcmask 519168  }
  0x49   :  { %8800 = vmatprep.mubr.msk.bf16.mxu1 %vm446_vm3, %v411_v49  ;;  %v10275_v49 = vcombine.low %v62_v23, %v63_v58  ;;  %v12235_v53 = vshrl.u32 %v10270_v45, 16  ;;  %v10293_v23 = vcombine.low %v65_v52, %v65_v52  ;;  %v10305_v11 = vcombine.low %v67_v32, %v67_v32  ;;  %vm11770_vm12 = vmand %vm5454_vm10, %vm6576_vm11 }
  0x4a   :  { %v10313_v52 = vshll.u32 %v10299_v63, 16 }
  0x4b   :  { %v12246_v16 = vshrl.u32 %v10293_v23, 16  ;;  %v198_v35 = vshll.u32 %v10293_v23, 16  ;;  %v12251_v24 = vshrl.u32 %v10305_v11, 16  ;;  %v206_v1 = vshll.u32 %v10305_v11, 16 }
  0x4c   :  { %8821 = vmatmul.mubr.msk.bf16.vlgmr.msra.gmra.mrb[8].mxu0 %vm446_vm3, %v10196_v12  ;;  %12320 = vst [vmem:[#allocation31_spill] sm:$0xff] %v10313_v52 }
  0x4d   :  { %8857 = vmatpush3.bf16.msra.mxu0 %v9793_v20  ;;  %8824 = vmatprep.mubr.msk.bf16.mxu0 %vm446_vm3, %v10237_v33  ;;  %v9798_v20 = vld [vmem:[#allocation5 + $0x230] sm:$0xff]   ;;  %v197_v30 = vrot.slane %v12246_v16, 2 }
  0x4e   :  { %8858 = vmatprep.subr.bf16.mxu0 %v9795_v36 }
  0x50   :  { %8801 = vmatmul.mubr.msk.bf16.vlgmr.msra.gmra.mrb[8].mxu1 %vm446_vm3, %v10099_v37  ;;  %v190_v37 = vshll.u32 %v10270_v45, 16 }
  0x51   :  { %8837 = vmatpush3.bf16.msra.mxu1 %v10189_v59  ;;  %8804 = vmatprep.mubr.msk.bf16.mxu1 %vm446_vm3, %v10150_v25  ;;  %v10284_v25 = vshrl.u32 %v10275_v49, 16  ;;  %v10287_v59 = vshll.u32 %v10275_v49, 16 }
  0x52   :  { %8838 = vmatprep.subr.bf16.mxu1 %v9794_v38  ;;  %8859 = vmatpush3.bf16.msra.mxu0 %v9795_v36  ;;  %v189_v36 = vrot.slane %v12235_v53, 2  ;;  %v66_v53 = vld [vmem:[#allocation2 + $0x58] sm:$0xf] }
  0x53   :  { %8896 = vmatprep.subr.bf16.mxu0 %v9799_v2  ;;  %12317 = vst [vmem:[#allocation28_spill] sm:$0xff] %v10284_v25  ;;  %12318 = vst [vmem:[#allocation29_spill] sm:$0xff] %v10287_v59  ;;  %v357_v58 = vrot.slane %v10284_v25, 6  ;;  %v360_v15 = vrot.slane %v10287_v59, 7  ;;  %v10310_v25 = vshrl.u32 %v10299_v63, 16  ;;  %v200_v59 = vrot.slane %v198_v35, 3 }
  0x54   :  { %8825 = vmatmul.mubr.msk.bf16.gmra.mrb[12].mxu0 %vm446_vm3, %v10132_v61 }
  0x55   :  { %8828 = vmatprep.mubr.msk.bf16.mxu0 %vm446_vm3, %v10163_v31  ;;  %8839 = vmatpush3.bf16.msra.mxu1 %v9794_v38  ;;  %v192_v38 = vrot.slane %v190_v37, 3  ;;  %v361_v60 = vor.u32 %v360_v15, %v357_v58  ;;  %12319 = vst [vmem:[#allocation30_spill] sm:$0xff] %v10310_v25  ;;  %v10329_v58 = vcombine.low %v66_v53, %v67_v32  ;;  %v9800_v53 = vld [vmem:[#allocation5 + $0x238] sm:$0xff]   ;;  %v9808_v32 = vld [vmem:[#allocation5 + $0x80] sm:$0xff]  }
  0x56   :  { %8876 = vmatprep.subr.bf16.mxu1 %v9798_v20 }
  0x57   :  { %v193_v37 = vor.u32 %v192_v38, %v189_v36  ;;  %v365_v36 = vrot.slane %v10310_v25, 6  ;;  %v368_v38 = vrot.slane %v10313_v52, 7  ;;  %v10336_v35 = vshrl.u32 %v10329_v58, 16  ;;  %v9807_v25 = vld [vmem:[#allocation5 + $0x10] sm:$0xff]  }
  0x58   :  { %8805 = vmatmul.mubr.msk.bf16.gmra.mrb[12].mxu1 %vm446_vm3, %v10196_v12  ;;  %v10339_v16 = vshll.u32 %v10329_v58, 16  ;;  %v208_v52 = vrot.slane %v206_v1, 3  ;;  %v201_v1 = vor.u32 %v200_v59, %v197_v30 }
  0x59   :  { %8808 = vmatprep.mubr.msk.bf16.mxu1 %vm446_vm3, %v10237_v33  ;;  %v10325_v15 = vsel %vm10083_vm2, %v193_v37, %v361_v60  ;;  %12321 = vst [vmem:[#allocation32_spill] sm:$0xff] %v10336_v35  ;;  %v9801_v60 = vld [vmem:[#allocation5 + $0x2a8] sm:$0xff]   ;;  %v205_v37 = vrot.slane %v12251_v24, 2 }
  0x5a   :  { %12322 = vst [vmem:[#allocation33_spill] sm:$0xff] %v10339_v16 }
  0x5c   :  { %8829 = vmatmul.mubr.msk.bf16.gmra.mrb[16].mxu0 %vm446_vm3, %v10219_v8 }
  0x5d   :  { %8832 = vmatprep.mubr.msk.bf16.mxu0 %vm446_vm3, %v10257_v29 }
  0x60   :  { %8809 = vmatmul.mubr.msk.bf16.gmra.mrb[16].mxu1 %vm446_vm3, %v10132_v61 }
  0x61   :  { %8812 = vmatprep.mubr.msk.bf16.mxu1 %vm446_vm3, %v10163_v31 }
  0x64   :  { %8833 = vmatmul.mubr.msk.bf16.gmra.mrb[20].mxu0 %vm446_vm3, %v10325_v15 }
  0x65   :  { %8860 = vmatprep.mubr.msk.bf16.mxu0 %vm446_vm3, %v10237_v33 }
  0x68   :  { %8813 = vmatmul.mubr.msk.bf16.gmra.mrb[20].mxu1 %vm446_vm3, %v10219_v8 }
  0x69   :  { %8840 = vmatprep.mubr.msk.bf16.mxu1 %vm446_vm3, %v10196_v12  ;;  %v373_v12 = vrot.slane %v10336_v35, 6 }
  0x6c   :  { %8861 = vmatmul.mubr.msk.bf16.vlgmr.msra.gmra.mrb[24].mxu0 %vm446_vm3, %v10132_v61 }
  0x6d   :  { %8897 = vmatpush3.bf16.msra.mxu0 %v9799_v2  ;;  %8864 = vmatprep.mubr.msk.bf16.mxu0 %vm446_vm3, %v10163_v31  ;;  %v376_v2 = vrot.slane %v10339_v16, 7 }
  0x6e   :  { %8898 = vmatprep.subr.bf16.mxu0 %v9801_v60 }
  0x6f   :  { %v377_v59 = vor.u32 %v376_v2, %v373_v12 }
  0x70   :  { %8841 = vmatmul.mubr.msk.bf16.vlgmr.msra.gmra.mrb[24].mxu1 %vm446_vm3, %v10237_v33  ;;  %v369_v33 = vor.u32 %v368_v38, %v365_v36  ;;  %v69_v36 = vld [vmem:[#allocation2 + $0x64] sm:$0xf]  ;;  %v68_v38 = vld [vmem:[#allocation2 + $0x60] sm:$0xf] }
  0x71   :  { %8877 = vmatpush3.bf16.msra.mxu1 %v9798_v20  ;;  %8844 = vmatprep.mubr.msk.bf16.mxu1 %vm446_vm3, %v10132_v61 }
  0x72   :  { %8878 = vmatprep.subr.bf16.mxu1 %v9800_v53  ;;  %8899 = vmatpush3.bf16.msra.mxu0 %v9801_v60  ;;  %v10367_v20 = vsel %vm10083_vm2, %v201_v1, %v369_v33  ;;  %v209_v60 = vor.u32 %v208_v52, %v205_v37  ;;  %v10384_v52 = vcombine.low %v68_v38, %v69_v36  ;;  %v9810_v37 = vld [vmem:[#allocation5 + $0x88] sm:$0xff]  }
  0x73   :  { %8936 = vmatprep.subr.bf16.mxu0 %v9808_v32 }
  0x74   :  { %8865 = vmatmul.mubr.msk.bf16.gmra.mrb[28].mxu0 %vm446_vm3, %v10219_v8  ;;  %v422_v30 = vsel %vm10083_vm2, %v209_v60, %v377_v59  ;;  %12323 = vst [vmem:[#allocation34_spill] sm:$0xff] %v10384_v52  ;;  %v10393_v1 = vshrl.u32 %v10384_v52, 16  ;;  %v10396_v33 = vshll.u32 %v10384_v52, 16  ;;  %v9809_v60 = vld [vmem:[#allocation5 + $0x18] sm:$0xff]  }
  0x75   :  { %8868 = vmatprep.mubr.msk.bf16.mxu0 %vm446_vm3, %v10257_v29  ;;  %8879 = vmatpush3.bf16.msra.mxu1 %v9800_v53  ;;  %v10382_v53 = vcombine.low %v69_v36, %v69_v36  ;;  %v70_v59 = vld [vmem:[#allocation2 + $0x68] sm:$0xf]  ;;  %v71_v36 = vld [vmem:[#allocation2 + $0x6c] sm:$0xf] }
  0x76   :  { %8916 = vmatprep.subr.bf16.mxu1 %v9807_v25  ;;  %12324 = vst [vmem:[#allocation35_spill] sm:$0xff] %v10393_v1  ;;  %12325 = vst [vmem:[#allocation36_spill] sm:$0xff] %v10396_v33  ;;  %v10406_v38 = vcombine.low %v71_v36, %v71_v36  ;;  %v10408_v24 = vcombine.low %v70_v59, %v71_v36  ;;  %v381_v35 = vrot.slane %v10393_v1, 6  ;;  %v384_v50 = vrot.slane %v10396_v33, 7 }
  0x77   :  { %v12260_v12 = vshrl.u32 %v10382_v53, 16  ;;  %v214_v2 = vshll.u32 %v10382_v53, 16 }
  0x78   :  { %8845 = vmatmul.mubr.msk.bf16.gmra.mrb[28].mxu1 %vm446_vm3, %v10163_v31  ;;  %12326 = vst [vmem:[#allocation37_spill] sm:$0xff] %v10408_v24  ;;  %v385_v59 = vor.u32 %v384_v50, %v381_v35  ;;  %v1346_v50 = vrot.slane %v10050_v5, 3 }
  0x79   :  { %8848 = vmatprep.mubr.msk.bf16.mxu1 %vm446_vm3, %v10219_v8  ;;  %v216_v16 = vrot.slane %v214_v2, 3 }
  0x7c   :  { %8869 = vmatmul.mubr.msk.bf16.gmra.mrb[32].mxu0 %vm446_vm3, %v10325_v15 }
  0x7d   :  { %8872 = vmatprep.mubr.msk.bf16.mxu0 %vm446_vm3, %v10367_v20 }
  0x80   :  { %8849 = vmatmul.mubr.msk.bf16.gmra.mrb[32].mxu1 %vm446_vm3, %v10257_v29 }
  0x81   :  { %8852 = vmatprep.mubr.msk.bf16.mxu1 %vm446_vm3, %v10325_v15 }
  0x84   :  { %8873 = vmatmul.mubr.msk.bf16.gmra.mrb[36].mxu0 %vm446_vm3, %v422_v30 }
  0x85   :  { %8900 = vmatprep.mubr.msk.bf16.mxu0 %vm446_vm3, %v10163_v31 }
  0x88   :  { %8853 = vmatmul.mubr.msk.bf16.gmra.mrb[36].mxu1 %vm446_vm3, %v10367_v20 }
  0x89   :  { %8880 = vmatprep.mubr.msk.bf16.mxu1 %vm446_vm3, %v10132_v61  ;;  %v9817_v61 = vld [vmem:[#allocation5 + $0x160] sm:$0xff]  }
  0x8c   :  { %8901 = vmatmul.mubr.msk.bf16.vlgmr.msra.gmra.mrb[40].mxu0 %vm446_vm3, %v10219_v8 }
  0x8d   :  { %8937 = vmatpush3.bf16.msra.mxu0 %v9808_v32  ;;  %8904 = vmatprep.mubr.msk.bf16.mxu0 %vm446_vm3, %v10257_v29  ;;  %v213_v32 = vrot.slane %v12260_v12, 2 }
  0x8e   :  { %8938 = vmatprep.subr.bf16.mxu0 %v9810_v37 }
  0x8f   :  { %v217_v2 = vor.u32 %v216_v16, %v213_v32  ;;  %v1345_v32 = vrot.slane %v10221_v62, 3 }
  0x90   :  { %8881 = vmatmul.mubr.msk.bf16.vlgmr.msra.gmra.mrb[40].mxu1 %vm446_vm3, %v10163_v31  ;;  %v12265_v31 = vshrl.u32 %v10406_v38, 16 }
  0x91   :  { %8917 = vmatpush3.bf16.msra.mxu1 %v9807_v25  ;;  %8884 = vmatprep.mubr.msk.bf16.mxu1 %vm446_vm3, %v10219_v8  ;;  %v222_v8 = vshll.u32 %v10406_v38, 16  ;;  %v10421_v25 = vshrl.u32 %v10408_v24, 16  ;;  %v423_v1 = vsel %vm10083_vm2, %v217_v2, %v385_v59 }
  0x92   :  { %8918 = vmatprep.subr.bf16.mxu1 %v9809_v60  ;;  %8939 = vmatpush3.bf16.msra.mxu0 %v9810_v37  ;;  %v10424_v37 = vshll.u32 %v10408_v24, 16 }
  0x93   :  { %8976 = vmatprep.subr.bf16.mxu0 %v9817_v61  ;;  %v224_v36 = vrot.slane %v222_v8, 3  ;;  %v389_v12 = vrot.slane %v10421_v25, 6  ;;  %v1359_v8 = vrot.slane %v10231_v21, 7 }
  0x94   :  { %8905 = vmatmul.mubr.msk.bf16.gmra.mrb[44].mxu0 %vm446_vm3, %v10325_v15  ;;  %v392_v33 = vrot.slane %v10424_v37, 7 }
  0x95   :  { %8908 = vmatprep.mubr.msk.bf16.mxu0 %vm446_vm3, %v10367_v20  ;;  %8919 = vmatpush3.bf16.msra.mxu1 %v9809_v60  ;;  %v221_v60 = vrot.slane %v12265_v31, 2 }
  0x96   :  { %8956 = vmatprep.subr.bf16.mxu1 %v9816_v43 }
  0x97   :  { %v225_v16 = vor.u32 %v224_v36, %v221_v60  ;;  %v9819_v36 = vld [vmem:[#allocation5 + $0x168] sm:$0xff]  }
  0x98   :  { %8885 = vmatmul.mubr.msk.bf16.gmra.mrb[44].mxu1 %vm446_vm3, %v10257_v29  ;;  %v393_v29 = vor.u32 %v392_v33, %v389_v12  ;;  %v1347_v12 = vrot.slane %v10071_v19, 3  ;;  %v1361_v33 = vrot.slane %v10101_v39, 7 }
  0x99   :  { %8888 = vmatprep.mubr.msk.bf16.mxu1 %vm446_vm3, %v10325_v15  ;;  %v1360_v15 = vrot.slane %v10052_v6, 7 }
  0x9a   :  { %v424_v35 = vsel %vm10083_vm2, %v225_v16, %v393_v29  ;;  %v1382_v59 = vsel %vm1373_vm4, %v1347_v12, %v1361_v33  ;;  %v1349_v16 = vrot.slane %v10182_v51, 3  ;;  %v1363_v29 = vrot.slane %v10185_v54, 7 }
  0x9b   :  { %v1379_v2 = vsel %vm1373_vm4, %v1346_v50, %v1360_v15  ;;  %v1350_v50 = vrot.slane %v10054_v9, 3  ;;  %v9818_v15 = vld [vmem:[#allocation5 + $0xf8] sm:$0xff]   ;;  %v1351_v12 = vrot.slane %v10103_v40, 3  ;;  %v1366_v33 = vrot.slane %v10146_v22, 7 }
  0x9c   :  { %8909 = vmatmul.mubr.msk.bf16.gmra.mrb[48].mxu0 %vm446_vm3, %v422_v30 }
  0x9d   :  { %8912 = vmatprep.mubr.msk.bf16.mxu0 %vm446_vm3, %v423_v1 }
  0xa0   :  { %8889 = vmatmul.mubr.msk.bf16.gmra.mrb[48].mxu1 %vm446_vm3, %v10367_v20  ;;  %v1376_v20 = vsel %vm1373_vm4, %v1345_v32, %v1359_v8  ;;  %v9820_v8 = vld [vmem:[#allocation5 + $0x1d0] sm:$0xff]  }
  0xa1   :  { %8892 = vmatprep.mubr.msk.bf16.mxu1 %vm446_vm3, %v422_v30  ;;  %v1348_v30 = vrot.slane %v10136_v0, 3 }
  0xa3   :  { %v1385_v60 = vsel %vm1373_vm4, %v1348_v30, %v1362_v26  ;;  %v1353_v26 = vrot.slane %v10187_v57, 3 }
  0xa4   :  { %8913 = vmatmul.mubr.msk.bf16.gmra.mrb[52].mxu0 %vm446_vm3, %v424_v35  ;;  %v9821_v35 = vld [vmem:[#allocation5 + $0x240] sm:$0xff]  }
  0xa5   :  { %8940 = vmatprep.mubr.msk.bf16.mxu0 %vm446_vm3, %v1379_v2 }
  0xa8   :  { %8893 = vmatmul.mubr.msk.bf16.gmra.mrb[52].mxu1 %vm446_vm3, %v423_v1  ;;  %v1364_v1 = vrot.slane %v10056_v10, 7 }
  0xa9   :  { %8920 = vmatprep.mubr.msk.bf16.mxu1 %vm446_vm3, %v1376_v20 }
  0xaa   :  { %v10469_v32 = vsel %vm1373_vm4, %v1350_v50, %v1364_v1  ;;  %v9822_v50 = vld [vmem:[#allocation5 + $0x1d8] sm:$0xff]   ;;  %v9825_v1 = vld [vmem:[#allocation5 + $0x20] sm:$0xff]  }
  0xac   :  { %8941 = vmatmul.mubr.msk.bf16.vlgmr.msra.gmra.mrb[56].mxu0 %vm446_vm3, %v1382_v59 }
  0xad   :  { %8977 = vmatpush3.bf16.msra.mxu0 %v9817_v61  ;;  %8944 = vmatprep.mubr.msk.bf16.mxu0 %vm446_vm3, %v1385_v60  ;;  %v1388_v61 = vsel %vm1373_vm4, %v1349_v16, %v1363_v29  ;;  %v9823_v29 = vld [vmem:[#allocation5 + $0x248] sm:$0xff]  }
  0xae   :  { %8978 = vmatprep.subr.bf16.mxu0 %v9819_v36 }
  0xb0   :  { %8921 = vmatmul.mubr.msk.bf16.vlgmr.msra.gmra.mrb[56].mxu1 %vm446_vm3, %v1379_v2  ;;  %v1352_v2 = vrot.slane %v10142_v4, 3 }
  0xb1   :  { %8957 = vmatpush3.bf16.msra.mxu1 %v9816_v43  ;;  %8924 = vmatprep.mubr.msk.bf16.mxu1 %vm446_vm3, %v1382_v59  ;;  %v1365_v43 = vrot.slane %v10110_v44, 7 }
  0xb2   :  { %8958 = vmatprep.subr.bf16.mxu1 %v9818_v15  ;;  %8979 = vmatpush3.bf16.msra.mxu0 %v9819_v36  ;;  %v10484_v30 = vsel %vm1373_vm4, %v1352_v2, %v1366_v33  ;;  %v1367_v36 = vrot.slane %v10214_v46, 7  ;;  %v9827_v2 = vld [vmem:[#allocation5 + $0x28] sm:$0xff]   ;;  %v9826_v33 = vld [vmem:[#allocation5 + $0x2b8] sm:$0xff]  }
  0xb3   :  { %9016 = vmatprep.subr.bf16.mxu0 %v9821_v35  ;;  %v10481_v20 = vsel %vm1373_vm4, %v1351_v12, %v1365_v43  ;;  %v1369_v12 = vrot.slane %v10299_v63, 7 }
  0xb4   :  { %8945 = vmatmul.mubr.msk.bf16.gmra.mrb[60].mxu0 %vm446_vm3, %v1388_v61  ;;  %v10497_v16 = vsel %vm1373_vm4, %v1353_v26, %v1367_v36  ;;  %v9829_v26 = vld [vmem:[#allocation5 + $0x100] sm:$0xff]   ;;  %v1356_v36 = vrot.slane %v10305_v11, 3 }
  0xb5   :  { %8948 = vmatprep.mubr.msk.bf16.mxu0 %vm446_vm3, %v10469_v32  ;;  %8959 = vmatpush3.bf16.msra.mxu1 %v9818_v15  ;;  %v9824_v15 = vld [vmem:[#allocation5 + $0x2b0] sm:$0xff]  }
  0xb6   :  { %8996 = vmatprep.subr.bf16.mxu1 %v9820_v8 }
  0xb8   :  { %8925 = vmatmul.mubr.msk.bf16.gmra.mrb[60].mxu1 %vm446_vm3, %v1385_v60 }
  0xb9   :  { %8928 = vmatprep.mubr.msk.bf16.mxu1 %vm446_vm3, %v1388_v61 }
  0xbc   :  { %8949 = vmatmul.mubr.msk.bf16.gmra.mrb[64].mxu0 %vm446_vm3, %v10481_v20 }
  0xbd   :  { %8952 = vmatprep.mubr.msk.bf16.mxu0 %vm446_vm3, %v10484_v30 }
  0xc0   :  { %8929 = vmatmul.mubr.msk.bf16.gmra.mrb[64].mxu1 %vm446_vm3, %v10469_v32 }
  0xc1   :  { %8932 = vmatprep.mubr.msk.bf16.mxu1 %vm446_vm3, %v10481_v20 }
  0xc4   :  { %8953 = vmatmul.mubr.msk.bf16.gmra.mrb[68].mxu0 %vm446_vm3, %v10497_v16 }
  0xc5   :  { %8980 = vmatprep.mubr.msk.bf16.mxu0 %vm446_vm3, %v1385_v60 }
  0xc8   :  { %8933 = vmatmul.mubr.msk.bf16.gmra.mrb[68].mxu1 %vm446_vm3, %v10484_v30 }
  0xc9   :  { %8960 = vmatprep.mubr.msk.bf16.mxu1 %vm446_vm3, %v1382_v59  ;;  %v1354_v59 = vrot.slane %v10270_v45, 3 }
  0xcc   :  { %8981 = vmatmul.mubr.msk.bf16.vlgmr.msra.gmra.mrb[72].mxu0 %vm446_vm3, %v1388_v61 }
  0xcd   :  { %9017 = vmatpush3.bf16.msra.mxu0 %v9821_v35  ;;  %8984 = vmatprep.mubr.msk.bf16.mxu0 %vm446_vm3, %v10469_v32  ;;  %v1368_v35 = vrot.slane %v10275_v49, 7 }
  0xce   :  { %9018 = vmatprep.subr.bf16.mxu0 %v9823_v29 }
  0xd0   :  { %8961 = vmatmul.mubr.msk.bf16.vlgmr.msra.gmra.mrb[72].mxu1 %vm446_vm3, %v1385_v60  ;;  %v10521_v60 = vsel %vm1373_vm4, %v1354_v59, %v1368_v35  ;;  %v12327_v59 = vshrl.u32 %v10221_v62, 16 }
  0xd1   :  { %8997 = vmatpush3.bf16.msra.mxu1 %v9820_v8  ;;  %8964 = vmatprep.mubr.msk.bf16.mxu1 %vm446_vm3, %v1388_v61  ;;  %v1355_v8 = vrot.slane %v10293_v23, 3 }
  0xd2   :  { %8998 = vmatprep.subr.bf16.mxu1 %v9822_v50  ;;  %9019 = vmatpush3.bf16.msra.mxu0 %v9823_v29  ;;  %v1370_v29 = vrot.slane %v10329_v58, 7  ;;  %v2354_v35 = vrot.slane %v12327_v59, 3 }
  0xd3   :  { %9056 = vmatprep.subr.bf16.mxu0 %v9825_v1  ;;  %v10534_v43 = vsel %vm1373_vm4, %v1355_v8, %v1369_v12 }
  0xd4   :  { %8985 = vmatmul.mubr.msk.bf16.gmra.mrb[76].mxu0 %vm446_vm3, %v10481_v20 }
  0xd5   :  { %8988 = vmatprep.mubr.msk.bf16.mxu0 %vm446_vm3, %v10484_v30  ;;  %8999 = vmatpush3.bf16.msra.mxu1 %v9822_v50  ;;  %v2382_v50 = vrot.slane %v10242_v41, 7 }
  0xd6   :  { %9036 = vmatprep.subr.bf16.mxu1 %v9824_v15 }
  0xd7   :  { %v2383_v8 = vor.u32 %v2382_v50, %v10249_v42 }
  0xd8   :  { %8965 = vmatmul.mubr.msk.bf16.gmra.mrb[76].mxu1 %vm446_vm3, %v10469_v32 }
  0xd9   :  { %8968 = vmatprep.mubr.msk.bf16.mxu1 %vm446_vm3, %v10481_v20  ;;  %v2427_v62 = vsel %vm10575_vm6, %v2354_v35, %v2383_v8 }
  0xdc   :  { %8989 = vmatmul.mubr.msk.bf16.gmra.mrb[80].mxu0 %vm446_vm3, %v10497_v16 }
  0xdd   :  { %8992 = vmatprep.mubr.msk.bf16.mxu0 %vm446_vm3, %v10521_v60 }
  0xe0   :  { %8969 = vmatmul.mubr.msk.bf16.gmra.mrb[80].mxu1 %vm446_vm3, %v10484_v30 }
  0xe1   :  { %8972 = vmatprep.mubr.msk.bf16.mxu1 %vm446_vm3, %v10497_v16 }
  0xe4   :  { %8993 = vmatmul.mubr.msk.bf16.gmra.mrb[84].mxu0 %vm446_vm3, %v10534_v43 }
  0xe5   :  { %9020 = vmatprep.mubr.msk.bf16.mxu0 %vm446_vm3, %v10469_v32 }
  0xe8   :  { %8973 = vmatmul.mubr.msk.bf16.gmra.mrb[84].mxu1 %vm446_vm3, %v10521_v60 }
  0xe9   :  { %9000 = vmatprep.mubr.msk.bf16.mxu1 %vm446_vm3, %v1388_v61  ;;  %v9828_v61 = vld [vmem:[#allocation5 + $0x90] sm:$0xff]  }
  0xec   :  { %9021 = vmatmul.mubr.msk.bf16.vlgmr.msra.gmra.mrb[88].mxu0 %vm446_vm3, %v10481_v20 }
  0xed   :  { %9057 = vmatpush3.bf16.msra.mxu0 %v9825_v1  ;;  %9024 = vmatprep.mubr.msk.bf16.mxu0 %vm446_vm3, %v10484_v30  ;;  %v1357_v1 = vrot.slane %v10382_v53, 3 }
  0xee   :  { %9058 = vmatprep.subr.bf16.mxu0 %v9827_v2 }
  0xf0   :  { %9001 = vmatmul.mubr.msk.bf16.vlgmr.msra.gmra.mrb[88].mxu1 %vm446_vm3, %v10469_v32  ;;  %v10562_v32 = vsel %vm1373_vm4, %v1356_v36, %v1370_v29  ;;  %v2386_v36 = vrot.slane %v10113_v47, 7  ;;  %v12330_v29 = vshrl.u32 %v10050_v5, 16  ;;  %v2388_v5 = vrot.slane %v10153_v27, 7 }
  0xf1   :  { %9037 = vmatpush3.bf16.msra.mxu1 %v9824_v15  ;;  %9004 = vmatprep.mubr.msk.bf16.mxu1 %vm446_vm3, %v10481_v20  ;;  %v1371_v15 = vrot.slane %v10384_v52, 7  ;;  %v12333_v27 = vshrl.u32 %v10182_v51, 16  ;;  %v9830_v52 = vld [vmem:[#allocation5 + $0x98] sm:$0xff]  }
  0xf2   :  { %9038 = vmatprep.subr.bf16.mxu1 %v9826_v33  ;;  %9059 = vmatpush3.bf16.msra.mxu0 %v9827_v2  ;;  %v2355_v50 = vrot.slane %v12330_v29, 3  ;;  %v2387_v31 = vor.u32 %v2386_v36, %v10116_v48  ;;  %v10631_v48 = vld [vmem:[#allocation5 + $0x1e0] sm:$0xff]  }
  0xf3   :  { %9096 = vmatprep.subr.bf16.mxu0 %v9829_v26  ;;  %v10584_v2 = vsel %vm1373_vm4, %v1357_v1, %v1371_v15  ;;  %v12331_v1 = vshrl.u32 %v10071_v19, 16  ;;  %v2390_v19 = vrot.slane %v10199_v7, 7  ;;  %v2358_v47 = vrot.slane %v12333_v27, 3 }
  0xf4   :  { %9025 = vmatmul.mubr.msk.bf16.gmra.mrb[92].mxu0 %vm446_vm3, %v10497_v16  ;;  %v2392_v27 = vrot.slane %v10069_v17, 7 }
  0xf5   :  { %9028 = vmatprep.mubr.msk.bf16.mxu0 %vm446_vm3, %v10521_v60  ;;  %9039 = vmatpush3.bf16.msra.mxu1 %v9826_v33  ;;  %v2384_v33 = vrot.slane %v10061_v13, 7  ;;  %v2356_v15 = vrot.slane %v12331_v1, 3  ;;  %v2389_v1 = vor.u32 %v2388_v5, %v10156_v28  ;;  %v2391_v13 = vor.u32 %v2390_v19, %v10202_v18  ;;  %v10647_v5 = vld [vmem:[#allocation5 + $0x170] sm:$0xff]  }
  0xf6   :  { %9076 = vmatprep.subr.bf16.mxu1 %v9828_v61 }
  0xf7   :  { %v2385_v59 = vor.u32 %v2384_v33, %v10064_v14  ;;  %v10610_v8 = vsel %vm10575_vm6, %v2356_v15, %v2387_v31  ;;  %v9831_v33 = vld [vmem:[#allocation5 + $0x108] sm:$0xff]   ;;  %v12332_v31 = vshrl.u32 %v10136_v0, 16  ;;  %v10644_v51 = vsel %vm10575_vm6, %v2358_v47, %v2391_v13 }
  0xf8   :  { %9005 = vmatmul.mubr.msk.bf16.gmra.mrb[92].mxu1 %vm446_vm3, %v10484_v30  ;;  %v2393_v13 = vor.u32 %v2392_v27, %v10093_v34  ;;  %v12335_v47 = vshrl.u32 %v10103_v40, 16 }
  0xf9   :  { %9008 = vmatprep.mubr.msk.bf16.mxu1 %vm446_vm3, %v10497_v16  ;;  %v10605_v35 = vsel %vm10575_vm6, %v2355_v50, %v2385_v59  ;;  %v2357_v59 = vrot.slane %v12332_v31, 3 }
  0xfb   :  { %v10639_v0 = vsel %vm10575_vm6, %v2357_v59, %v2389_v1 }
  0xfc   :  { %9029 = vmatmul.mubr.msk.bf16.gmra.mrb[96].mxu0 %vm446_vm3, %v10534_v43 }
  0xfd   :  { %9032 = vmatprep.mubr.msk.bf16.mxu0 %vm446_vm3, %v10562_v32 }
 0x100   :  { %9009 = vmatmul.mubr.msk.bf16.gmra.mrb[96].mxu1 %vm446_vm3, %v10521_v60 }
 0x101   :  { %9012 = vmatprep.mubr.msk.bf16.mxu1 %vm446_vm3, %v10534_v43 }
 0x104   :  { %9033 = vmatmul.mubr.msk.bf16.gmra.mrb[100].mxu0 %vm446_vm3, %v10584_v2 }
 0x105   :  { %9060 = vmatprep.mubr.msk.bf16.mxu0 %vm446_vm3, %v2427_v62 }
 0x108   :  { %9013 = vmatmul.mubr.msk.bf16.gmra.mrb[100].mxu1 %vm446_vm3, %v10562_v32 }
 0x109   :  { %9040 = vmatprep.mubr.msk.bf16.mxu1 %vm446_vm3, %v10481_v20 }
 0x10b   :  { %v10613_v62 = vpop.f32.mrb[0].mxu0 }
 0x10c   :  { %9061 = vmatmul.mubr.msk.bf16.vlgmr.msra.gmra.mrb[104].mxu0 %vm446_vm3, %v10605_v35  ;;  %v10617_v36 = vpop.f32.mrb[0].mxu1  ;;  %v10619_v20 = vpop.f32.mrb[1].mxu0 }
 0x10d   :  { %9097 = vmatpush3.bf16.msra.mxu0 %v9829_v26  ;;  %v10621_v29 = vpop.f32.mrb[1].mxu1  ;;  %v8783_v50 = vpop.f32.mrb[2].mxu0  ;;  %9064 = vmatprep.mubr.msk.bf16.mxu0 %vm446_vm3, %v10610_v8 }
 0x10e   :  { %v8791_v15 = vpop.f32.mrb[2].mxu1  ;;  %v508_v7 = vpop.f32.mrb[3].mxu0  ;;  %9098 = vmatprep.subr.bf16.mxu0 %v9831_v33 }
 0x10f   :  { %v540_v26 = vpop.f32.mrb[3].mxu1  ;;  %v2394_v7 = vrot.slane %v10121_v55, 7 }
 0x110   :  { %9041 = vmatmul.mubr.msk.bf16.vlgmr.msra.gmra.mrb[104].mxu1 %vm446_vm3, %v10484_v30  ;;  %v12334_v30 = vshrl.u32 %v10054_v9, 16 }
 0x111   :  { %9077 = vmatpush3.bf16.msra.mxu1 %v9828_v61  ;;  %9044 = vmatprep.mubr.msk.bf16.mxu1 %vm446_vm3, %v10497_v16  ;;  %v2360_v61 = vrot.slane %v12335_v47, 3  ;;  %v2395_v19 = vor.u32 %v2394_v7, %v10124_v56  ;;  %v12338_v7 = vld [vmem:[#allocation21_spill] sm:$0xff] }
 0x112   :  { %9078 = vmatprep.subr.bf16.mxu1 %v9830_v52  ;;  %9099 = vmatpush3.bf16.msra.mxu0 %v9831_v33  ;;  %v2359_v16 = vrot.slane %v12334_v30, 3 }
 0x113   :  { %9136 = vmatprep.subr.bf16.mxu0 %v10631_v48  ;;  %v10672_v1 = vsel %vm10575_vm6, %v2360_v61, %v2395_v19  ;;  %v1358_v19 = vrot.slane %v10406_v38, 3 }
 0x114   :  { %9065 = vmatmul.mubr.msk.bf16.gmra.mrb[108].mxu0 %vm446_vm3, %v10639_v0  ;;  %v10667_v9 = vsel %vm10575_vm6, %v2359_v16, %v2393_v13 }
 0x115   :  { %9068 = vmatprep.mubr.msk.bf16.mxu0 %vm446_vm3, %v10644_v51  ;;  %9079 = vmatpush3.bf16.msra.mxu1 %v9830_v52  ;;  %v12336_v52 = vld [vmem:[#allocation20_spill] sm:$0xff] }
 0x116   :  { %9116 = vmatprep.subr.bf16.mxu1 %v10647_v5  ;;  %v2396_v40 = vrot.slane %v12336_v52, 7 }
 0x117   :  { %v8786_v33 = vpop.f32.mrb[4].mxu0 }
 0x118   :  { %9045 = vmatmul.mubr.msk.bf16.gmra.mrb[108].mxu1 %vm446_vm3, %v10521_v60  ;;  %v521_v50 = vpop.f32.mrb[5].mxu0  ;;  %v2397_v30 = vor.u32 %v2396_v40, %v12338_v7 }
 0x119   :  { %v8787_v31 = vpop.f32.mrb[6].mxu0  ;;  %9048 = vmatprep.mubr.msk.bf16.mxu1 %vm446_vm3, %v10534_v43  ;;  %v12337_v43 = vshrl.u32 %v10142_v4, 16 }
 0x11a   :  { %v524_v59 = vpop.f32.mrb[7].mxu0  ;;  %v1372_v31 = vrot.slane %v10408_v24, 7 }
 0x11b   :  { %v10674_v15 = vpop.f32.mrb[4].mxu1  ;;  %v2361_v27 = vrot.slane %v12337_v43, 3 }
 0x11c   :  { %v10676_v26 = vpop.f32.mrb[5].mxu1  ;;  %9069 = vmatmul.mubr.msk.bf16.gmra.mrb[112].mxu0 %vm446_vm3, %v10667_v9 }
 0x11d   :  { %v8795_v60 = vpop.f32.mrb[6].mxu1  ;;  %9072 = vmatprep.mubr.msk.bf16.mxu0 %vm446_vm3, %v10672_v1  ;;  %v10693_v4 = vsel %vm10575_vm6, %v2361_v27, %v2397_v30 }
 0x11e   :  { %v556_v16 = vpop.f32.mrb[7].mxu1 }
 0x11f   :  { %v8822_v13 = vpop.f32.mrb[8].mxu0 }
 0x120   :  { %9049 = vmatmul.mubr.msk.bf16.gmra.mrb[112].mxu1 %vm446_vm3, %v10562_v32  ;;  %v734_v47 = vpop.f32.mrb[9].mxu0 }
 0x121   :  { %v8823_v61 = vpop.f32.mrb[10].mxu0  ;;  %9052 = vmatprep.mubr.msk.bf16.mxu1 %vm446_vm3, %v10584_v2  ;;  %v1415_v2 = vsel %vm1373_vm4, %v1358_v19, %v1372_v31 }
 0x122   :  { %v737_v59 = vpop.f32.mrb[11].mxu0 }
 0x123   :  { %v8802_v40 = vpop.f32.mrb[8].mxu1 }
 0x124   :  { %v626_v60 = vadd.f32 %v8802_v40, %v10613_v62  ;;  %v617_v43 = vpop.f32.mrb[9].mxu1  ;;  %9073 = vmatmul.mubr.msk.bf16.gmra.mrb[116].mxu0 %vm446_vm3, %v10693_v4 }
 0x125   :  { %v618_v32 = vadd.f32 %v617_v43, %v10619_v20  ;;  %v8803_v16 = vpop.f32.mrb[10].mxu1  ;;  %9100 = vmatprep.mubr.msk.bf16.mxu0 %vm446_vm3, %v10610_v8  ;;  %v9835_v43 = vld [vmem:[#allocation5 + $0x1e8] sm:$0xff]  }
 0x126   :  { %v10702_v61 = vadd.f32 %v8822_v13, %v626_v60  ;;  %v620_v27 = vpop.f32.mrb[11].mxu1 }
 0x127   :  { %v10704_v30 = vadd.f32 %v734_v47, %v618_v32  ;;  %v8826_v59 = vpop.f32.mrb[12].mxu0 }
 0x128   :  { %9053 = vmatmul.mubr.msk.bf16.gmra.mrb[116].mxu1 %vm446_vm3, %v1415_v2  ;;  %v750_v62 = vpop.f32.mrb[13].mxu0  ;;  %v9834_v2 = vld [vmem:[#allocation5 + $0x178] sm:$0xff]  }
 0x129   :  { %v8827_v40 = vpop.f32.mrb[14].mxu0  ;;  %9080 = vmatprep.mubr.msk.bf16.mxu1 %vm446_vm3, %v10605_v35 }
 0x12a   :  { %v753_v20 = vpop.f32.mrb[15].mxu0  ;;  %v12339_v40 = vld [vmem:[#allocation24_spill] sm:$0xff] }
 0x12b   :  { %v8806_v16 = vpop.f32.mrb[12].mxu1  ;;  %v2398_v20 = vrot.slane %v12339_v40, 7 }
 0x12c   :  { %v642_v19 = vadd.f32 %v8806_v16, %v8786_v33  ;;  %v633_v31 = vpop.f32.mrb[13].mxu1  ;;  %9101 = vmatmul.mubr.msk.bf16.vlgmr.msra.gmra.mrb[120].mxu0 %vm446_vm3, %v10639_v0  ;;  %v10718_v33 = vld [vmem:[#allocation5 + $0x2c0] sm:$0xff]  }
 0x12d   :  { %v634_v13 = vadd.f32 %v633_v31, %v521_v50  ;;  %v8807_v60 = vpop.f32.mrb[14].mxu1  ;;  %9137 = vmatpush3.bf16.msra.mxu0 %v10631_v48  ;;  %9104 = vmatprep.mubr.msk.bf16.mxu0 %vm446_vm3, %v10644_v51 }
 0x12e   :  { %v10714_v47 = vadd.f32 %v8826_v59, %v642_v19  ;;  %v636_v32 = vpop.f32.mrb[15].mxu1  ;;  %9138 = vmatprep.subr.bf16.mxu0 %v9835_v43  ;;  %v12340_v60 = vshrl.u32 %v10187_v57, 16 }
 0x12f   :  { %v10716_v35 = vadd.f32 %v750_v62, %v634_v13  ;;  %v8830_v27 = vpop.f32.mrb[16].mxu0  ;;  %v10726_v62 = vld [vmem:[#allocation5 + $0x250] sm:$0xff]  }
 0x130   :  { %9081 = vmatmul.mubr.msk.bf16.vlgmr.msra.gmra.mrb[120].mxu1 %vm446_vm3, %v10610_v8  ;;  %v766_v50 = vpop.f32.mrb[17].mxu0  ;;  %v2362_v32 = vrot.slane %v12340_v60, 3  ;;  %v12343_v60 = vshrl.u32 %v10270_v45, 16 }
 0x131   :  { %9117 = vmatpush3.bf16.msra.mxu1 %v10647_v5  ;;  %v8831_v48 = vpop.f32.mrb[18].mxu0  ;;  %9084 = vmatprep.mubr.msk.bf16.mxu1 %vm446_vm3, %v10639_v0 }
 0x132   :  { %v769_v59 = vpop.f32.mrb[19].mxu0  ;;  %9118 = vmatprep.subr.bf16.mxu1 %v9834_v2  ;;  %9139 = vmatpush3.bf16.msra.mxu0 %v9835_v43  ;;  %v12341_v48 = vld [vmem:[#allocation25_spill] sm:$0xff] }
 0x133   :  { %v8810_v16 = vpop.f32.mrb[16].mxu1  ;;  %9176 = vmatprep.subr.bf16.mxu0 %v10718_v33  ;;  %v2399_v59 = vor.u32 %v2398_v20, %v12341_v48 }
 0x134   :  { %v658_v19 = vadd.f32 %v8810_v16, %v10617_v36  ;;  %v649_v8 = vpop.f32.mrb[17].mxu1  ;;  %9105 = vmatmul.mubr.msk.bf16.gmra.mrb[124].mxu0 %vm446_vm3, %v10667_v9 }
 0x135   :  { %v650_v5 = vadd.f32 %v649_v8, %v10621_v29  ;;  %v8811_v31 = vpop.f32.mrb[18].mxu1  ;;  %9108 = vmatprep.mubr.msk.bf16.mxu0 %vm446_vm3, %v10672_v1  ;;  %9119 = vmatpush3.bf16.msra.mxu1 %v9834_v2  ;;  %v12342_v2 = vld [vmem:[#allocation28_spill] sm:$0xff]  ;;  %v10750_v57 = vsel %vm10575_vm6, %v2362_v32, %v2399_v59 }
 0x136   :  { %v10735_v43 = vadd.f32 %v8830_v27, %v658_v19  ;;  %v652_v13 = vpop.f32.mrb[19].mxu1  ;;  %9156 = vmatprep.subr.bf16.mxu1 %v10726_v62  ;;  %v2400_v27 = vrot.slane %v12342_v2, 7 }
 0x137   :  { %v10741_v36 = vadd.f32 %v766_v50, %v650_v5  ;;  %v8834_v16 = vpop.f32.mrb[20].mxu0 }
 0x138   :  { %9085 = vmatmul.mubr.msk.bf16.gmra.mrb[124].mxu1 %vm446_vm3, %v10644_v51  ;;  %v782_v29 = vpop.f32.mrb[21].mxu0 }
 0x139   :  { %v8835_v8 = vpop.f32.mrb[22].mxu0  ;;  %9088 = vmatprep.mubr.msk.bf16.mxu1 %vm446_vm3, %v10667_v9 }
 0x13a   :  { %v785_v19 = vpop.f32.mrb[23].mxu0  ;;  %v2363_v8 = vrot.slane %v12343_v60, 3 }
 0x13b   :  { %v8814_v20 = vpop.f32.mrb[20].mxu1  ;;  %v12344_v19 = vld [vmem:[#allocation29_spill] sm:$0xff] }
 0x13c   :  { %v674_v50 = vadd.f32 %v8814_v20, %v10674_v15  ;;  %v665_v5 = vpop.f32.mrb[21].mxu1  ;;  %9109 = vmatmul.mubr.msk.bf16.gmra.mrb[128].mxu0 %vm446_vm3, %v10693_v4  ;;  %v2401_v2 = vor.u32 %v2400_v27, %v12344_v19 }
 0x13d   :  { %v666_v31 = vadd.f32 %v665_v5, %v10676_v26  ;;  %v8815_v13 = vpop.f32.mrb[22].mxu1  ;;  %9112 = vmatprep.mubr.msk.bf16.mxu0 %vm446_vm3, %v10750_v57 }
 0x13e   :  { %v10761_v32 = vadd.f32 %v8834_v16, %v674_v50  ;;  %v668_v59 = vpop.f32.mrb[23].mxu1  ;;  %v10771_v45 = vsel %vm10575_vm6, %v2363_v8, %v2401_v2 }
 0x13f   :  { %v10763_v40 = vadd.f32 %v782_v29, %v666_v31  ;;  %v8862_v15 = vpop.f32.mrb[24].mxu0 }
 0x140   :  { %9089 = vmatmul.mubr.msk.bf16.gmra.mrb[128].mxu1 %vm446_vm3, %v10672_v1  ;;  %v1000_v20 = vpop.f32.mrb[25].mxu0 }
 0x141   :  { %v8863_v26 = vpop.f32.mrb[26].mxu0  ;;  %9092 = vmatprep.mubr.msk.bf16.mxu1 %vm446_vm3, %v10693_v4 }
 0x142   :  { %v1003_v5 = vpop.f32.mrb[27].mxu0 }
 0x143   :  { %v8842_v27 = vpop.f32.mrb[24].mxu1 }
 0x144   :  { %v932_v16 = vadd.f32 %v8842_v27, %v10702_v61  ;;  %v867_v50 = vpop.f32.mrb[25].mxu1  ;;  %9113 = vmatmul.mubr.msk.bf16.gmra.mrb[132].mxu0 %vm446_vm3, %v10771_v45 }
 0x145   :  { %v930_v29 = vadd.f32 %v867_v50, %v10704_v30  ;;  %v8843_v31 = vpop.f32.mrb[26].mxu1  ;;  %9140 = vmatprep.mubr.msk.bf16.mxu0 %vm446_vm3, %v10644_v51  ;;  %v9839_v30 = vld [vmem:[#allocation5 + $0x2c8] sm:$0xff]  }
 0x146   :  { %v10779_v13 = vadd.f32 %v8862_v15, %v932_v16  ;;  %v870_v60 = vpop.f32.mrb[27].mxu1 }
 0x147   :  { %v10781_v59 = vadd.f32 %v1000_v20, %v930_v29  ;;  %v8866_v2 = vpop.f32.mrb[28].mxu0  ;;  %v9838_v29 = vld [vmem:[#allocation5 + $0x258] sm:$0xff]   ;;  %v10798_v60 = vld [vmem:[#allocation5 + $0xa0] sm:$0xff]  }
 0x148   :  { %9093 = vmatmul.mubr.msk.bf16.gmra.mrb[132].mxu1 %vm446_vm3, %v10750_v57  ;;  %v1016_v61 = vpop.f32.mrb[29].mxu0 }
 0x149   :  { %v8867_v8 = vpop.f32.mrb[30].mxu0  ;;  %9120 = vmatprep.mubr.msk.bf16.mxu1 %vm446_vm3, %v10639_v0 }
 0x14a   :  { %v1019_v26 = vpop.f32.mrb[31].mxu0  ;;  %v12345_v8 = vld [vmem:[#allocation30_spill] sm:$0xff] }
 0x14b   :  { %v8846_v5 = vpop.f32.mrb[28].mxu1  ;;  %v2402_v26 = vrot.slane %v12345_v8, 7 }
 0x14c   :  { %v936_v27 = vadd.f32 %v8846_v5, %v10714_v47  ;;  %v883_v50 = vpop.f32.mrb[29].mxu1  ;;  %9141 = vmatmul.mubr.msk.bf16.vlgmr.msra.gmra.mrb[136].mxu0 %vm446_vm3, %v10667_v9 }
 0x14d   :  { %v934_v15 = vadd.f32 %v883_v50, %v10716_v35  ;;  %v8847_v20 = vpop.f32.mrb[30].mxu1  ;;  %9177 = vmatpush3.bf16.msra.mxu0 %v10718_v33  ;;  %9144 = vmatprep.mubr.msk.bf16.mxu0 %vm446_vm3, %v10672_v1 }
 0x14e   :  { %v10794_v16 = vadd.f32 %v8866_v2, %v936_v27  ;;  %v886_v0 = vpop.f32.mrb[31].mxu1  ;;  %9178 = vmatprep.subr.bf16.mxu0 %v9839_v30  ;;  %v12346_v20 = vshrl.u32 %v10293_v23, 16 }
 0x14f   :  { %v10796_v31 = vadd.f32 %v1016_v61, %v934_v15  ;;  %v8870_v47 = vpop.f32.mrb[32].mxu0  ;;  %v10806_v61 = vld [vmem:[#allocation5 + $0x30] sm:$0xff]  }
 0x150   :  { %9121 = vmatmul.mubr.msk.bf16.vlgmr.msra.gmra.mrb[136].mxu1 %vm446_vm3, %v10644_v51  ;;  %v1032_v35 = vpop.f32.mrb[33].mxu0  ;;  %v2364_v0 = vrot.slane %v12346_v20, 3  ;;  %v12349_v20 = vshrl.u32 %v10305_v11, 16 }
 0x151   :  { %9157 = vmatpush3.bf16.msra.mxu1 %v10726_v62  ;;  %v8871_v33 = vpop.f32.mrb[34].mxu0  ;;  %9124 = vmatprep.mubr.msk.bf16.mxu1 %vm446_vm3, %v10667_v9 }
 0x152   :  { %v1035_v2 = vpop.f32.mrb[35].mxu0  ;;  %9158 = vmatprep.subr.bf16.mxu1 %v9838_v29  ;;  %9179 = vmatpush3.bf16.msra.mxu0 %v9839_v30  ;;  %v12347_v33 = vld [vmem:[#allocation31_spill] sm:$0xff] }
 0x153   :  { %v8850_v5 = vpop.f32.mrb[32].mxu1  ;;  %9216 = vmatprep.subr.bf16.mxu0 %v10798_v60  ;;  %v2403_v2 = vor.u32 %v2402_v26, %v12347_v33 }
 0x154   :  { %v940_v27 = vadd.f32 %v8850_v5, %v10735_v43  ;;  %v899_v51 = vpop.f32.mrb[33].mxu1  ;;  %9145 = vmatmul.mubr.msk.bf16.gmra.mrb[140].mxu0 %vm446_vm3, %v10693_v4 }
 0x155   :  { %v938_v62 = vadd.f32 %v899_v51, %v10741_v36  ;;  %v8851_v50 = vpop.f32.mrb[34].mxu1  ;;  %9148 = vmatprep.mubr.msk.bf16.mxu0 %vm446_vm3, %v10750_v57  ;;  %9159 = vmatpush3.bf16.msra.mxu1 %v9838_v29  ;;  %v12348_v29 = vld [vmem:[#allocation32_spill] sm:$0xff]  ;;  %v10830_v23 = vsel %vm10575_vm6, %v2364_v0, %v2403_v2 }
 0x156   :  { %v10815_v30 = vadd.f32 %v8870_v47, %v940_v27  ;;  %v902_v15 = vpop.f32.mrb[35].mxu1  ;;  %9196 = vmatprep.subr.bf16.mxu1 %v10806_v61  ;;  %v2404_v47 = vrot.slane %v12348_v29, 7 }
 0x157   :  { %v10821_v43 = vadd.f32 %v1032_v35, %v938_v62  ;;  %v8874_v5 = vpop.f32.mrb[36].mxu0 }
 0x158   :  { %9125 = vmatmul.mubr.msk.bf16.gmra.mrb[140].mxu1 %vm446_vm3, %v10672_v1  ;;  %v1048_v36 = vpop.f32.mrb[37].mxu0 }
 0x159   :  { %v8875_v51 = vpop.f32.mrb[38].mxu0  ;;  %9128 = vmatprep.mubr.msk.bf16.mxu1 %vm446_vm3, %v10693_v4 }
 0x15a   :  { %v1051_v27 = vpop.f32.mrb[39].mxu0  ;;  %v2365_v51 = vrot.slane %v12349_v20, 3 }
 0x15b   :  { %v8854_v26 = vpop.f32.mrb[36].mxu1  ;;  %v12350_v27 = vld [vmem:[#allocation33_spill] sm:$0xff] }
 0x15c   :  { %v944_v35 = vadd.f32 %v8854_v26, %v10761_v32  ;;  %v915_v62 = vpop.f32.mrb[37].mxu1  ;;  %9149 = vmatmul.mubr.msk.bf16.gmra.mrb[144].mxu0 %vm446_vm3, %v10771_v45  ;;  %v2405_v29 = vor.u32 %v2404_v47, %v12350_v27 }
 0x15d   :  { %v942_v50 = vadd.f32 %v915_v62, %v10763_v40  ;;  %v8855_v15 = vpop.f32.mrb[38].mxu1  ;;  %9152 = vmatprep.mubr.msk.bf16.mxu0 %vm446_vm3, %v10830_v23 }
 0x15e   :  { %v10841_v0 = vadd.f32 %v8874_v5, %v944_v35  ;;  %v918_v2 = vpop.f32.mrb[39].mxu1  ;;  %v10851_v11 = vsel %vm10575_vm6, %v2365_v51, %v2405_v29 }
 0x15f   :  { %v10843_v8 = vadd.f32 %v1048_v36, %v942_v50  ;;  %v8902_v32 = vpop.f32.mrb[40].mxu0 }
 0x160   :  { %9129 = vmatmul.mubr.msk.bf16.gmra.mrb[144].mxu1 %vm446_vm3, %v10750_v57  ;;  %v1266_v26 = vpop.f32.mrb[41].mxu0 }
 0x161   :  { %v8903_v40 = vpop.f32.mrb[42].mxu0  ;;  %9132 = vmatprep.mubr.msk.bf16.mxu1 %vm446_vm3, %v10771_v45 }
 0x162   :  { %v1269_v62 = vpop.f32.mrb[43].mxu0 }
 0x163   :  { %v8882_v47 = vpop.f32.mrb[40].mxu1 }
 0x164   :  { %v1198_v5 = vadd.f32 %v8882_v47, %v10779_v13  ;;  %v1133_v35 = vpop.f32.mrb[41].mxu1  ;;  %9153 = vmatmul.mubr.msk.bf16.gmra.mrb[148].mxu0 %vm446_vm3, %v10851_v11 }
 0x165   :  { %v1196_v36 = vadd.f32 %v1133_v35, %v10781_v59  ;;  %v8883_v50 = vpop.f32.mrb[42].mxu1  ;;  %9180 = vmatprep.mubr.msk.bf16.mxu0 %vm446_vm3, %v10672_v1  ;;  %v9843_v59 = vld [vmem:[#allocation5 + $0xa8] sm:$0xff]  }
 0x166   :  { %v10859_v15 = vadd.f32 %v8902_v32, %v1198_v5  ;;  %v1136_v20 = vpop.f32.mrb[43].mxu1 }
 0x167   :  { %v10861_v2 = vadd.f32 %v1266_v26, %v1196_v36  ;;  %v8906_v29 = vpop.f32.mrb[44].mxu0  ;;  %v9842_v36 = vld [vmem:[#allocation5 + $0x38] sm:$0xff]   ;;  %v10878_v20 = vld [vmem:[#allocation5 + $0x180] sm:$0xff]  }
 0x168   :  { %9133 = vmatmul.mubr.msk.bf16.gmra.mrb[148].mxu1 %vm446_vm3, %v10830_v23  ;;  %v1282_v13 = vpop.f32.mrb[45].mxu0 }
 0x169   :  { %v8907_v51 = vpop.f32.mrb[46].mxu0  ;;  %9160 = vmatprep.mubr.msk.bf16.mxu1 %vm446_vm3, %v10667_v9 }
 0x16a   :  { %v1285_v40 = vpop.f32.mrb[47].mxu0  ;;  %v12351_v51 = vld [vmem:[#allocation35_spill] sm:$0xff] }
 0x16b   :  { %v8886_v62 = vpop.f32.mrb[44].mxu1  ;;  %v2406_v40 = vrot.slane %v12351_v51, 7 }
 0x16c   :  { %v1202_v47 = vadd.f32 %v8886_v62, %v10794_v16  ;;  %v1149_v35 = vpop.f32.mrb[45].mxu1  ;;  %9181 = vmatmul.mubr.msk.bf16.vlgmr.msra.gmra.mrb[152].mxu0 %vm446_vm3, %v10693_v4 }
 0x16d   :  { %v1200_v32 = vadd.f32 %v1149_v35, %v10796_v31  ;;  %v8887_v26 = vpop.f32.mrb[46].mxu1  ;;  %9217 = vmatpush3.bf16.msra.mxu0 %v10798_v60  ;;  %9184 = vmatprep.mubr.msk.bf16.mxu0 %vm446_vm3, %v10750_v57 }
 0x16e   :  { %v10874_v5 = vadd.f32 %v8906_v29, %v1202_v47  ;;  %v1152_v9 = vpop.f32.mrb[47].mxu1  ;;  %9218 = vmatprep.subr.bf16.mxu0 %v9843_v59 }
 0x16f   :  { %v10876_v50 = vadd.f32 %v1282_v13, %v1200_v32  ;;  %v8910_v16 = vpop.f32.mrb[48].mxu0  ;;  %v10886_v13 = vld [vmem:[#allocation5 + $0x110] sm:$0xff]   ;;  %v12352_v32 = vshrl.u32 %v10382_v53, 16  ;;  %v12353_v9 = vld [vmem:[#allocation36_spill] sm:$0xff] }
 0x170   :  { %9161 = vmatmul.mubr.msk.bf16.vlgmr.msra.gmra.mrb[152].mxu1 %vm446_vm3, %v10672_v1  ;;  %v1298_v31 = vpop.f32.mrb[49].mxu0 }
 0x171   :  { %9197 = vmatpush3.bf16.msra.mxu1 %v10806_v61  ;;  %v8911_v60 = vpop.f32.mrb[50].mxu0  ;;  %9164 = vmatprep.mubr.msk.bf16.mxu1 %vm446_vm3, %v10693_v4  ;;  %v2366_v26 = vrot.slane %v12352_v32, 3 }
 0x172   :  { %v1301_v29 = vpop.f32.mrb[51].mxu0  ;;  %9198 = vmatprep.subr.bf16.mxu1 %v9842_v36  ;;  %9219 = vmatpush3.bf16.msra.mxu0 %v9843_v59  ;;  %v2407_v60 = vor.u32 %v2406_v40, %v12353_v9 }
 0x173   :  { %v8890_v62 = vpop.f32.mrb[48].mxu1  ;;  %9256 = vmatprep.subr.bf16.mxu0 %v10878_v20 }
 0x174   :  { %v1206_v47 = vadd.f32 %v8890_v62, %v10815_v30  ;;  %v1165_v1 = vpop.f32.mrb[49].mxu1  ;;  %9185 = vmatmul.mubr.msk.bf16.gmra.mrb[156].mxu0 %vm446_vm3, %v10771_v45  ;;  %v2439_v53 = vsel %vm10575_vm6, %v2366_v26, %v2407_v60 }
 0x175   :  { %v1204_v61 = vadd.f32 %v1165_v1, %v10821_v43  ;;  %v8891_v35 = vpop.f32.mrb[50].mxu1  ;;  %9188 = vmatprep.mubr.msk.bf16.mxu0 %vm446_vm3, %v10830_v23  ;;  %9199 = vmatpush3.bf16.msra.mxu1 %v9842_v36  ;;  %v2408_v36 = vrot.slane %v10421_v25, 7 }
 0x176   :  { %v10895_v4 = vadd.f32 %v8910_v16, %v1206_v47  ;;  %v1168_v59 = vpop.f32.mrb[51].mxu1  ;;  %9236 = vmatprep.subr.bf16.mxu1 %v10886_v13 }
 0x177   :  { %v10901_v30 = vadd.f32 %v1298_v31, %v1204_v61  ;;  %v8914_v29 = vpop.f32.mrb[52].mxu0  ;;  %v2409_v35 = vor.u32 %v2408_v36, %v10424_v37 }
 0x178   :  { %9165 = vmatmul.mubr.msk.bf16.gmra.mrb[156].mxu1 %vm446_vm3, %v10750_v57  ;;  %v1314_v43 = vpop.f32.mrb[53].mxu0 }
 0x179   :  { %v8915_v62 = vpop.f32.mrb[54].mxu0  ;;  %9168 = vmatprep.mubr.msk.bf16.mxu1 %vm446_vm3, %v10771_v45  ;;  %v12354_v45 = vshrl.u32 %v10406_v38, 16 }
 0x17a   :  { %v1317_v16 = vpop.f32.mrb[55].mxu0 }
 0x17b   :  { %v8894_v40 = vpop.f32.mrb[52].mxu1  ;;  %v2367_v61 = vrot.slane %v12354_v45, 3 }
 0x17c   :  { %v1210_v47 = vadd.f32 %v8894_v40, %v10841_v0  ;;  %v1181_v31 = vpop.f32.mrb[53].mxu1  ;;  %9189 = vmatmul.mubr.msk.bf16.gmra.mrb[160].mxu0 %vm446_vm3, %v10851_v11 }
 0x17d   :  { %v1208_v57 = vadd.f32 %v1181_v31, %v10843_v8  ;;  %v8895_v1 = vpop.f32.mrb[54].mxu1  ;;  %9192 = vmatprep.mubr.msk.bf16.mxu0 %vm446_vm3, %v2439_v53  ;;  %v2440_v38 = vsel %vm10575_vm6, %v2367_v61, %v2409_v35 }
 0x17e   :  { %v10918_v59 = vadd.f32 %v8914_v29, %v1210_v47  ;;  %v1184_v32 = vpop.f32.mrb[55].mxu1  ;;  %v9847_v1 = vld [vmem:[#allocation5 + $0x188] sm:$0xff]  }
 0x17f   :  { %v10920_v26 = vadd.f32 %v1314_v43, %v1208_v57  ;;  %v8942_v0 = vpop.f32.mrb[56].mxu0 }
 0x180   :  { %9169 = vmatmul.mubr.msk.bf16.gmra.mrb[160].mxu1 %vm446_vm3, %v10830_v23  ;;  %v1615_v60 = vpop.f32.mrb[57].mxu0 }
 0x181   :  { %v8943_v62 = vpop.f32.mrb[58].mxu0  ;;  %9172 = vmatprep.mubr.msk.bf16.mxu1 %vm446_vm3, %v10851_v11 }
 0x182   :  { %v1618_v8 = vpop.f32.mrb[59].mxu0 }
 0x183   :  { %v8922_v16 = vpop.f32.mrb[56].mxu1 }
 0x184   :  { %v1548_v29 = vadd.f32 %v8922_v16, %v10859_v15  ;;  %v1483_v36 = vpop.f32.mrb[57].mxu1  ;;  %9193 = vmatmul.mubr.msk.bf16.gmra.mrb[164].mxu0 %vm446_vm3, %v2440_v38  ;;  %v10951_v38 = vld [vmem:[#allocation5 + $0x260] sm:$0xff]   ;;  %v10958_v16 = vld [vmem:[#allocation5 + $0x1f0] sm:$0xff]  }
 0x185   :  { %v1546_v43 = vadd.f32 %v1483_v36, %v10861_v2  ;;  %v8923_v40 = vpop.f32.mrb[58].mxu1  ;;  %9220 = vmatprep.mubr.msk.bf16.mxu0 %vm446_vm3, %v10052_v6 }
 0x186   :  { %v10933_v23 = vadd.f32 %v8942_v0, %v1548_v29  ;;  %v1486_v47 = vpop.f32.mrb[59].mxu1 }
 0x187   :  { %v10935_v11 = vadd.f32 %v1615_v60, %v1546_v43  ;;  %v8946_v12 = vpop.f32.mrb[60].mxu0  ;;  %v9846_v60 = vld [vmem:[#allocation5 + $0x118] sm:$0xff]  }
 0x188   :  { %9173 = vmatmul.mubr.msk.bf16.gmra.mrb[164].mxu1 %vm446_vm3, %v2439_v53  ;;  %v1631_v31 = vpop.f32.mrb[61].mxu0 }
 0x189   :  { %v8947_v57 = vpop.f32.mrb[62].mxu0  ;;  %9200 = vmatprep.mubr.msk.bf16.mxu1 %vm446_vm3, %v10231_v21 }
 0x18a   :  { %v1634_v15 = vpop.f32.mrb[63].mxu0 }
 0x18b   :  { %v8926_v2 = vpop.f32.mrb[60].mxu1 }
 0x18c   :  { %v1552_v45 = vadd.f32 %v8926_v2, %v10874_v5  ;;  %v1499_v61 = vpop.f32.mrb[61].mxu1  ;;  %9221 = vmatmul.mubr.msk.bf16.vlgmr.msra.gmra.mrb[168].mxu0 %vm446_vm3, %v10101_v39 }
 0x18d   :  { %v1550_v35 = vadd.f32 %v1499_v61, %v10876_v50  ;;  %v8927_v32 = vpop.f32.mrb[62].mxu1  ;;  %9257 = vmatpush3.bf16.msra.mxu0 %v10878_v20  ;;  %9224 = vmatprep.mubr.msk.bf16.mxu0 %vm446_vm3, %v10140_v3 }
 0x18e   :  { %v10947_v53 = vadd.f32 %v8946_v12, %v1552_v45  ;;  %v1502_v0 = vpop.f32.mrb[63].mxu1  ;;  %9258 = vmatprep.subr.bf16.mxu0 %v9847_v1 }
 0x18f   :  { %v10949_v62 = vadd.f32 %v1631_v31, %v1550_v35  ;;  %v8950_v5 = vpop.f32.mrb[64].mxu0 }
 0x190   :  { %9201 = vmatmul.mubr.msk.bf16.vlgmr.msra.gmra.mrb[168].mxu1 %vm446_vm3, %v10052_v6  ;;  %v1647_v50 = vpop.f32.mrb[65].mxu0 }
 0x191   :  { %9237 = vmatpush3.bf16.msra.mxu1 %v10886_v13  ;;  %v8951_v20 = vpop.f32.mrb[66].mxu0  ;;  %9204 = vmatprep.mubr.msk.bf16.mxu1 %vm446_vm3, %v10101_v39 }
 0x192   :  { %v1650_v8 = vpop.f32.mrb[67].mxu0  ;;  %9238 = vmatprep.subr.bf16.mxu1 %v9846_v60  ;;  %9259 = vmatpush3.bf16.msra.mxu0 %v9847_v1 }
 0x193   :  { %v8930_v29 = vpop.f32.mrb[64].mxu1  ;;  %9296 = vmatprep.subr.bf16.mxu0 %v10951_v38 }
 0x194   :  { %v1556_v36 = vadd.f32 %v8930_v29, %v10895_v4  ;;  %v1515_v43 = vpop.f32.mrb[65].mxu1  ;;  %9225 = vmatmul.mubr.msk.bf16.gmra.mrb[172].mxu0 %vm446_vm3, %v10185_v54 }
 0x195   :  { %v1554_v13 = vadd.f32 %v1515_v43, %v10901_v30  ;;  %v8931_v40 = vpop.f32.mrb[66].mxu1  ;;  %9228 = vmatprep.mubr.msk.bf16.mxu0 %vm446_vm3, %v10056_v10  ;;  %9239 = vmatpush3.bf16.msra.mxu1 %v9846_v60 }
 0x196   :  { %v10967_v47 = vadd.f32 %v8950_v5, %v1556_v36  ;;  %v1518_v12 = vpop.f32.mrb[67].mxu1  ;;  %9276 = vmatprep.subr.bf16.mxu1 %v10958_v16 }
 0x197   :  { %v10970_v31 = vadd.f32 %v1647_v50, %v1554_v13  ;;  %v8954_v57 = vpop.f32.mrb[68].mxu0 }
 0x198   :  { %9205 = vmatmul.mubr.msk.bf16.gmra.mrb[172].mxu1 %vm446_vm3, %v10140_v3  ;;  %v1663_v4 = vpop.f32.mrb[69].mxu0 }
 0x199   :  { %v8955_v15 = vpop.f32.mrb[70].mxu0  ;;  %9208 = vmatprep.mubr.msk.bf16.mxu1 %vm446_vm3, %v10185_v54 }
 0x19a   :  { %v1666_v30 = vpop.f32.mrb[71].mxu0 }
 0x19b   :  { %v8934_v1 = vpop.f32.mrb[68].mxu1 }
 0x19c   :  { %v1560_v2 = vadd.f32 %v8934_v1, %v10918_v59  ;;  %v1531_v45 = vpop.f32.mrb[69].mxu1  ;;  %9229 = vmatmul.mubr.msk.bf16.gmra.mrb[176].mxu0 %vm446_vm3, %v10110_v44 }
 0x19d   :  { %v1558_v61 = vadd.f32 %v1531_v45, %v10920_v26  ;;  %v8935_v35 = vpop.f32.mrb[70].mxu1  ;;  %9232 = vmatprep.mubr.msk.bf16.mxu0 %vm446_vm3, %v10146_v22 }
 0x19e   :  { %v10982_v32 = vadd.f32 %v8954_v57, %v1560_v2  ;;  %v1534_v0 = vpop.f32.mrb[71].mxu1 }
 0x19f   :  { %v10984_v60 = vadd.f32 %v1663_v4, %v1558_v61  ;;  %v8982_v5 = vpop.f32.mrb[72].mxu0 }
 0x1a0   :  { %9209 = vmatmul.mubr.msk.bf16.gmra.mrb[176].mxu1 %vm446_vm3, %v10056_v10  ;;  %v1879_v59 = vpop.f32.mrb[73].mxu0 }
 0x1a1   :  { %v8983_v50 = vpop.f32.mrb[74].mxu0  ;;  %9212 = vmatprep.mubr.msk.bf16.mxu1 %vm446_vm3, %v10110_v44 }
 0x1a2   :  { %v1882_v20 = vpop.f32.mrb[75].mxu0  ;;  %v11015_v50 = vld [vmem:[#allocation5 + $0x40] sm:$0xff]  }
 0x1a3   :  { %v8962_v26 = vpop.f32.mrb[72].mxu1 }
 0x1a4   :  { %v1812_v8 = vadd.f32 %v8962_v26, %v10933_v23  ;;  %v1747_v29 = vpop.f32.mrb[73].mxu1  ;;  %9233 = vmatmul.mubr.msk.bf16.gmra.mrb[180].mxu0 %vm446_vm3, %v10214_v46  ;;  %v11022_v26 = vld [vmem:[#allocation5 + $0x2d0] sm:$0xff]  }
 0x1a5   :  { %v1810_v36 = vadd.f32 %v1747_v29, %v10935_v11  ;;  %v8963_v43 = vpop.f32.mrb[74].mxu1  ;;  %9260 = vmatprep.mubr.msk.bf16.mxu0 %vm446_vm3, %v10140_v3  ;;  %v9851_v11 = vld [vmem:[#allocation5 + $0x268] sm:$0xff]  }
 0x1a6   :  { %v10996_v13 = vadd.f32 %v8982_v5, %v1812_v8  ;;  %v1750_v40 = vpop.f32.mrb[75].mxu1  ;;  %v9850_v5 = vld [vmem:[#allocation5 + $0x1f8] sm:$0xff]  }
 0x1a7   :  { %v10998_v12 = vadd.f32 %v1879_v59, %v1810_v36  ;;  %v8986_v57 = vpop.f32.mrb[76].mxu0 }
 0x1a8   :  { %9213 = vmatmul.mubr.msk.bf16.gmra.mrb[180].mxu1 %vm446_vm3, %v10146_v22  ;;  %v1895_v23 = vpop.f32.mrb[77].mxu0 }
 0x1a9   :  { %v8987_v4 = vpop.f32.mrb[78].mxu0  ;;  %9240 = vmatprep.mubr.msk.bf16.mxu1 %vm446_vm3, %v10101_v39 }
 0x1aa   :  { %v1898_v15 = vpop.f32.mrb[79].mxu0 }
 0x1ab   :  { %v8966_v30 = vpop.f32.mrb[76].mxu1 }
 0x1ac   :  { %v1816_v1 = vadd.f32 %v8966_v30, %v10947_v53  ;;  %v1763_v2 = vpop.f32.mrb[77].mxu1  ;;  %9261 = vmatmul.mubr.msk.bf16.vlgmr.msra.gmra.mrb[184].mxu0 %vm446_vm3, %v10185_v54 }
 0x1ad   :  { %v1814_v45 = vadd.f32 %v1763_v2, %v10949_v62  ;;  %v8967_v61 = vpop.f32.mrb[78].mxu1  ;;  %9297 = vmatpush3.bf16.msra.mxu0 %v10951_v38  ;;  %9264 = vmatprep.mubr.msk.bf16.mxu0 %vm446_vm3, %v10056_v10 }
 0x1ae   :  { %v11011_v35 = vadd.f32 %v8986_v57, %v1816_v1  ;;  %v1766_v0 = vpop.f32.mrb[79].mxu1  ;;  %9298 = vmatprep.subr.bf16.mxu0 %v9851_v11 }
 0x1af   :  { %v11013_v59 = vadd.f32 %v1895_v23, %v1814_v45  ;;  %v8990_v53 = vpop.f32.mrb[80].mxu0 }
 0x1b0   :  { %9241 = vmatmul.mubr.msk.bf16.vlgmr.msra.gmra.mrb[184].mxu1 %vm446_vm3, %v10140_v3  ;;  %v1911_v62 = vpop.f32.mrb[81].mxu0 }
 0x1b1   :  { %9277 = vmatpush3.bf16.msra.mxu1 %v10958_v16  ;;  %v8991_v38 = vpop.f32.mrb[82].mxu0  ;;  %9244 = vmatprep.mubr.msk.bf16.mxu1 %vm446_vm3, %v10185_v54 }
 0x1b2   :  { %v1914_v20 = vpop.f32.mrb[83].mxu0  ;;  %9278 = vmatprep.subr.bf16.mxu1 %v9850_v5  ;;  %9299 = vmatpush3.bf16.msra.mxu0 %v9851_v11 }
 0x1b3   :  { %v8970_v8 = vpop.f32.mrb[80].mxu1  ;;  %9336 = vmatprep.subr.bf16.mxu0 %v11015_v50 }
 0x1b4   :  { %v1820_v29 = vadd.f32 %v8970_v8, %v10967_v47  ;;  %v1779_v36 = vpop.f32.mrb[81].mxu1  ;;  %9265 = vmatmul.mubr.msk.bf16.gmra.mrb[188].mxu0 %vm446_vm3, %v10110_v44 }
 0x1b5   :  { %v1818_v16 = vadd.f32 %v1779_v36, %v10970_v31  ;;  %v8971_v43 = vpop.f32.mrb[82].mxu1  ;;  %9268 = vmatprep.mubr.msk.bf16.mxu0 %vm446_vm3, %v10146_v22  ;;  %9279 = vmatpush3.bf16.msra.mxu1 %v9850_v5 }
 0x1b6   :  { %v11031_v40 = vadd.f32 %v8990_v53, %v1820_v29  ;;  %v1782_v57 = vpop.f32.mrb[83].mxu1  ;;  %9316 = vmatprep.subr.bf16.mxu1 %v11022_v26 }
 0x1b7   :  { %v11034_v23 = vadd.f32 %v1911_v62, %v1818_v16  ;;  %v8994_v4 = vpop.f32.mrb[84].mxu0 }
 0x1b8   :  { %9245 = vmatmul.mubr.msk.bf16.gmra.mrb[188].mxu1 %vm446_vm3, %v10056_v10  ;;  %v1927_v47 = vpop.f32.mrb[85].mxu0 }
 0x1b9   :  { %v8995_v15 = vpop.f32.mrb[86].mxu0  ;;  %9248 = vmatprep.mubr.msk.bf16.mxu1 %vm446_vm3, %v10110_v44 }
 0x1ba   :  { %v1930_v31 = vpop.f32.mrb[87].mxu0 }
 0x1bb   :  { %v8974_v11 = vpop.f32.mrb[84].mxu1 }
 0x1bc   :  { %v1824_v30 = vadd.f32 %v8974_v11, %v10982_v32  ;;  %v1795_v1 = vpop.f32.mrb[85].mxu1  ;;  %9269 = vmatmul.mubr.msk.bf16.gmra.mrb[192].mxu0 %vm446_vm3, %v10214_v46 }
 0x1bd   :  { %v1822_v2 = vadd.f32 %v1795_v1, %v10984_v60  ;;  %v8975_v45 = vpop.f32.mrb[86].mxu1  ;;  %9272 = vmatprep.mubr.msk.bf16.mxu0 %vm446_vm3, %v10275_v49 }
 0x1be   :  { %v11046_v61 = vadd.f32 %v8994_v4, %v1824_v30  ;;  %v1798_v0 = vpop.f32.mrb[87].mxu1 }
 0x1bf   :  { %v11048_v5 = vadd.f32 %v1927_v47, %v1822_v2  ;;  %v9022_v53 = vpop.f32.mrb[88].mxu0 }
 0x1c0   :  { %9249 = vmatmul.mubr.msk.bf16.gmra.mrb[192].mxu1 %vm446_vm3, %v10146_v22  ;;  %v2143_v32 = vpop.f32.mrb[89].mxu0 }
 0x1c1   :  { %v9023_v62 = vpop.f32.mrb[90].mxu0  ;;  %9252 = vmatprep.mubr.msk.bf16.mxu1 %vm446_vm3, %v10214_v46 }
 0x1c2   :  { %v2146_v38 = vpop.f32.mrb[91].mxu0  ;;  %v11079_v62 = vld [vmem:[#allocation5 + $0x120] sm:$0xff]  }
 0x1c3   :  { %v9002_v60 = vpop.f32.mrb[88].mxu1 }
 0x1c4   :  { %v2076_v20 = vadd.f32 %v9002_v60, %v10996_v13  ;;  %v2011_v8 = vpop.f32.mrb[89].mxu1  ;;  %9273 = vmatmul.mubr.msk.bf16.gmra.mrb[196].mxu0 %vm446_vm3, %v10299_v63  ;;  %v11086_v60 = vld [vmem:[#allocation5 + $0xb0] sm:$0xff]  }
 0x1c5   :  { %v2074_v29 = vadd.f32 %v2011_v8, %v10998_v12  ;;  %v9003_v36 = vpop.f32.mrb[90].mxu1  ;;  %9300 = vmatprep.mubr.msk.bf16.mxu0 %vm446_vm3, %v10056_v10  ;;  %v9855_v12 = vld [vmem:[#allocation5 + $0x48] sm:$0xff]  }
 0x1c6   :  { %v11060_v16 = vadd.f32 %v9022_v53, %v2076_v20  ;;  %v2014_v43 = vpop.f32.mrb[91].mxu1  ;;  %v9854_v53 = vld [vmem:[#allocation5 + $0x2d8] sm:$0xff]  }
 0x1c7   :  { %v11062_v57 = vadd.f32 %v2143_v32, %v2074_v29  ;;  %v9026_v4 = vpop.f32.mrb[92].mxu0 }
 0x1c8   :  { %9253 = vmatmul.mubr.msk.bf16.gmra.mrb[196].mxu1 %vm446_vm3, %v10275_v49  ;;  %v2159_v13 = vpop.f32.mrb[93].mxu0 }
 0x1c9   :  { %v9027_v47 = vpop.f32.mrb[94].mxu0  ;;  %9280 = vmatprep.mubr.msk.bf16.mxu1 %vm446_vm3, %v10185_v54 }
 0x1ca   :  { %v2162_v15 = vpop.f32.mrb[95].mxu0 }
 0x1cb   :  { %v9006_v31 = vpop.f32.mrb[92].mxu1 }
 0x1cc   :  { %v2080_v11 = vadd.f32 %v9006_v31, %v11011_v35  ;;  %v2027_v30 = vpop.f32.mrb[93].mxu1  ;;  %9301 = vmatmul.mubr.msk.bf16.vlgmr.msra.gmra.mrb[200].mxu0 %vm446_vm3, %v10110_v44 }
 0x1cd   :  { %v2078_v1 = vadd.f32 %v2027_v30, %v11013_v59  ;;  %v9007_v2 = vpop.f32.mrb[94].mxu1  ;;  %9337 = vmatpush3.bf16.msra.mxu0 %v11015_v50  ;;  %9304 = vmatprep.mubr.msk.bf16.mxu0 %vm446_vm3, %v10146_v22 }
 0x1ce   :  { %v11075_v45 = vadd.f32 %v9026_v4, %v2080_v11  ;;  %v2030_v0 = vpop.f32.mrb[95].mxu1  ;;  %9338 = vmatprep.subr.bf16.mxu0 %v9855_v12  ;;  %v4331_v11 = vrot.slane %v10249_v42, 1 }
 0x1cf   :  { %v11077_v32 = vadd.f32 %v2159_v13, %v2078_v1  ;;  %v9030_v35 = vpop.f32.mrb[96].mxu0  ;;  %v9907_v13 = vld [vmem:[#allocation2] sm:$0xf] }
 0x1d0   :  { %9281 = vmatmul.mubr.msk.bf16.vlgmr.msra.gmra.mrb[200].mxu1 %vm446_vm3, %v10056_v10  ;;  %v2175_v59 = vpop.f32.mrb[97].mxu0  ;;  %v11097_v47 = vcombine.low %v9907_v13, %v9907_v13 }
 0x1d1   :  { %9317 = vmatpush3.bf16.msra.mxu1 %v11022_v26  ;;  %v9031_v50 = vpop.f32.mrb[98].mxu0  ;;  %9284 = vmatprep.mubr.msk.bf16.mxu1 %vm446_vm3, %v10110_v44 }
 0x1d2   :  { %v2178_v38 = vpop.f32.mrb[99].mxu0  ;;  %9318 = vmatprep.subr.bf16.mxu1 %v9854_v53  ;;  %9339 = vmatpush3.bf16.msra.mxu0 %v9855_v12  ;;  %v12278_v30 = vshll.u32 %v11097_v47, 16 }
 0x1d3   :  { %v9010_v20 = vpop.f32.mrb[96].mxu1  ;;  %9376 = vmatprep.subr.bf16.mxu0 %v11079_v62 }
 0x1d4   :  { %v2084_v8 = vadd.f32 %v9010_v20, %v11031_v40  ;;  %v2043_v29 = vpop.f32.mrb[97].mxu1  ;;  %9305 = vmatmul.mubr.msk.bf16.gmra.mrb[204].mxu0 %vm446_vm3, %v10214_v46 }
 0x1d5   :  { %v2082_v26 = vadd.f32 %v2043_v29, %v11034_v23  ;;  %v9011_v36 = vpop.f32.mrb[98].mxu1  ;;  %9308 = vmatprep.mubr.msk.bf16.mxu0 %vm446_vm3, %v10275_v49  ;;  %9319 = vmatpush3.bf16.msra.mxu1 %v9854_v53  ;;  %v9908_v53 = vld [vmem:[#allocation2 + $0x8] sm:$0xf]  ;;  %v9909_v29 = vld [vmem:[#allocation2 + $0x10] sm:$0xf] }
 0x1d6   :  { %v11095_v43 = vadd.f32 %v9030_v35, %v2084_v8  ;;  %v2046_v4 = vpop.f32.mrb[99].mxu1  ;;  %9356 = vmatprep.subr.bf16.mxu1 %v11086_v60  ;;  %v11111_v35 = vcombine.low %v9908_v53, %v9908_v53  ;;  %v4390_v8 = vrot.slane %v12278_v30, 1 }
 0x1d7   :  { %v11100_v40 = vadd.f32 %v2175_v59, %v2082_v26  ;;  %v9034_v15 = vpop.f32.mrb[100].mxu0  ;;  %v11121_v26 = vcombine.low %v9909_v29, %v9909_v29 }
 0x1d8   :  { %9285 = vmatmul.mubr.msk.bf16.gmra.mrb[204].mxu1 %vm446_vm3, %v10146_v22  ;;  %v2191_v23 = vpop.f32.mrb[101].mxu0 }
 0x1d9   :  { %v9035_v12 = vpop.f32.mrb[102].mxu0  ;;  %9288 = vmatprep.mubr.msk.bf16.mxu1 %vm446_vm3, %v10214_v46  ;;  %v12361_v42 = vshll.u32 %v11121_v26, 16 }
 0x1da   :  { %v2194_v31 = vpop.f32.mrb[103].mxu0  ;;  %v4333_v12 = vrot.slane %v10064_v14, 1 }
 0x1db   :  { %v9014_v1 = vpop.f32.mrb[100].mxu1  ;;  %v12282_v31 = vshll.u32 %v11111_v35, 16 }
 0x1dc   :  { %v2088_v2 = vadd.f32 %v9014_v1, %v11046_v61  ;;  %v2059_v0 = vpop.f32.mrb[101].mxu1  ;;  %9309 = vmatmul.mubr.msk.bf16.gmra.mrb[208].mxu0 %vm446_vm3, %v10299_v63  ;;  %v4332_v61 = vor.u32 %v4331_v11, %v10242_v41  ;;  %v12357_v1 = vld [vmem:[#allocation16_spill] sm:$0xff]  ;;  %v4398_v41 = vrot.slane %v12361_v42, 1  ;;  %v4337_v42 = vrot.slane %v10156_v28, 1  ;;  %v12363_v28 = vld [vmem:[#allocation22_spill] sm:$0xff] }
 0x1dd   :  { %v2086_v59 = vadd.f32 %v2059_v0, %v11048_v5  ;;  %v9015_v50 = vpop.f32.mrb[102].mxu1  ;;  %9312 = vmatprep.mubr.msk.bf16.mxu0 %vm446_vm3, %v10329_v58 }
 0x1de   :  { %v11116_v38 = vadd.f32 %v9034_v15, %v2088_v2  ;;  %v2062_v20 = vpop.f32.mrb[103].mxu1  ;;  %v4460_v11 = vsel %vm11126_vm9, %v4332_v61, %v4390_v8  ;;  %v4335_v2 = vrot.slane %v12357_v1, 1  ;;  %v4394_v61 = vrot.slane %v12282_v31, 1  ;;  %v9910_v8 = vld [vmem:[#allocation2 + $0x18] sm:$0xf] }
 0x1df   :  { %v11123_v36 = vadd.f32 %v2191_v23, %v2086_v59  ;;  %v9062_v4 = vpop.f32.mrb[104].mxu0  ;;  %v12358_v20 = vld [vmem:[#allocation34_spill] sm:$0xff]  ;;  %v11148_v1 = vcombine.low %v9910_v8, %v9910_v8 }
 0x1e0   :  { %9289 = vmatmul.mubr.msk.bf16.gmra.mrb[208].mxu1 %vm446_vm3, %v10275_v49  ;;  %v2516_v13 = vpop.f32.mrb[105].mxu0 }
 0x1e1   :  { %v9063_v15 = vpop.f32.mrb[106].mxu0  ;;  %9292 = vmatprep.mubr.msk.bf16.mxu1 %vm446_vm3, %v10299_v63 }
 0x1e2   :  { %v2519_v23 = vpop.f32.mrb[107].mxu0 }
 0x1e3   :  { %v9042_v53 = vpop.f32.mrb[104].mxu1  ;;  %v12359_v23 = vld [vmem:[#allocation11_spill] sm:$0xff] }
 0x1e4   :  { %v2340_v59 = vadd.f32 %v9042_v53, %v11060_v16  ;;  %v2275_v50 = vpop.f32.mrb[105].mxu1  ;;  %9313 = vmatmul.mubr.msk.bf16.gmra.mrb[212].mxu0 %vm446_vm3, %v12358_v20  ;;  %v4334_v30 = vor.u32 %v4333_v12, %v12359_v23  ;;  %v12360_v53 = vld [vmem:[#allocation15_spill] sm:$0xff] }
 0x1e5   :  { %v2338_v29 = vadd.f32 %v2275_v50, %v11062_v57  ;;  %v9043_v15 = vpop.f32.mrb[106].mxu1  ;;  %9340 = vmatprep.mubr.msk.bf16.mxu0 %vm446_vm3, %v4460_v11  ;;  %v4336_v14 = vor.u32 %v4335_v2, %v12360_v53  ;;  %v9911_v57 = vld [vmem:[#allocation2 + $0x20] sm:$0xf]  ;;  %v12286_v2 = vshll.u32 %v11148_v1, 16 }
 0x1e6   :  { %v11150_v0 = vadd.f32 %v9062_v4, %v2340_v59  ;;  %v2278_v16 = vpop.f32.mrb[107].mxu1  ;;  %v11155_v50 = vcombine.low %v9911_v57, %v9911_v57  ;;  %v11165_v4 = vsel %vm11126_vm9, %v4334_v30, %v4394_v61  ;;  %v9864_v57 = vld [vmem:[#allocation5 + $0x128] sm:$0xff]  }
 0x1e7   :  { %v11157_v11 = vadd.f32 %v2516_v13, %v2338_v29  ;;  %v9066_v12 = vpop.f32.mrb[108].mxu0  ;;  %v11171_v13 = vsel %vm11126_vm9, %v4336_v14, %v4398_v41  ;;  %v4339_v29 = vrot.slane %v10202_v18, 1  ;;  %v12362_v14 = vld [vmem:[#allocation18_spill] sm:$0xff] }
 0x1e8   :  { %9293 = vmatmul.mubr.msk.bf16.gmra.mrb[212].mxu1 %vm446_vm3, %v10329_v58  ;;  %v2532_v15 = vpop.f32.mrb[109].mxu0  ;;  %v4338_v41 = vor.u32 %v4337_v42, %v12362_v14  ;;  %v9912_v16 = vld [vmem:[#allocation2 + $0x28] sm:$0xf] }
 0x1e9   :  { %v9067_v8 = vpop.f32.mrb[110].mxu0  ;;  %9320 = vmatprep.mubr.msk.bf16.mxu1 %vm446_vm3, %v10110_v44  ;;  %v11185_v18 = vcombine.low %v9912_v16, %v9912_v16  ;;  %v4340_v23 = vor.u32 %v4339_v29, %v12363_v28 }
 0x1ea   :  { %v2535_v59 = vpop.f32.mrb[111].mxu0 }
 0x1eb   :  { %v9046_v8 = vpop.f32.mrb[108].mxu1  ;;  %v4402_v59 = vrot.slane %v12286_v2, 1  ;;  %v11196_v2 = vld [vmem:[#allocation5 + $0x200] sm:$0xff]   ;;  %v12289_v16 = vshll.u32 %v11185_v18, 16 }
 0x1ec   :  { %v2344_v31 = vadd.f32 %v9046_v8, %v11075_v45  ;;  %v2291_v53 = vpop.f32.mrb[109].mxu1  ;;  %9341 = vmatmul.mubr.msk.bf16.vlgmr.msra.gmra.mrb[216].mxu0 %vm446_vm3, %v11165_v4 }
 0x1ed   :  { %v2342_v30 = vadd.f32 %v2291_v53, %v11077_v32  ;;  %v9047_v61 = vpop.f32.mrb[110].mxu1  ;;  %9377 = vmatpush3.bf16.msra.mxu0 %v11079_v62  ;;  %9344 = vmatprep.mubr.msk.bf16.mxu0 %vm446_vm3, %v11171_v13  ;;  %v12364_v32 = vshll.u32 %v11155_v50, 16  ;;  %v9863_v62 = vld [vmem:[#allocation5 + $0xb8] sm:$0xff]   ;;  %v11205_v29 = vsel %vm11126_vm9, %v4338_v41, %v4402_v59 }
 0x1ee   :  { %v11187_v45 = vadd.f32 %v9066_v12, %v2344_v31  ;;  %v2294_v8 = vpop.f32.mrb[111].mxu1  ;;  %9378 = vmatprep.subr.bf16.mxu0 %v9864_v57  ;;  %v9913_v61 = vld [vmem:[#allocation2 + $0x30] sm:$0xf] }
 0x1ef   :  { %v4406_v53 = vrot.slane %v12364_v32, 1  ;;  %v11192_v44 = vcombine.low %v9913_v61, %v9913_v61  ;;  %v11194_v42 = vadd.f32 %v2532_v15, %v2342_v30  ;;  %v9070_v14 = vpop.f32.mrb[112].mxu0  ;;  %v4341_v15 = vrot.slane %v10093_v34, 1  ;;  %v11215_v61 = vld [vmem:[#allocation5 + $0x190] sm:$0xff]   ;;  %v9914_v32 = vld [vmem:[#allocation2 + $0x38] sm:$0xf] }
 0x1f0   :  { %9321 = vmatmul.mubr.msk.bf16.vlgmr.msra.gmra.mrb[216].mxu1 %vm446_vm3, %v10146_v22  ;;  %v2548_v31 = vpop.f32.mrb[113].mxu0 }
 0x1f1   :  { %9357 = vmatpush3.bf16.msra.mxu1 %v11086_v60  ;;  %v9071_v12 = vpop.f32.mrb[114].mxu0  ;;  %9324 = vmatprep.mubr.msk.bf16.mxu1 %vm446_vm3, %v10214_v46  ;;  %v11211_v8 = vsel %vm11126_vm9, %v4340_v23, %v4406_v53  ;;  %v4343_v60 = vrot.slane %v10124_v56, 1  ;;  %v11227_v56 = vcombine.low %v9914_v32, %v9914_v32 }
 0x1f2   :  { %v2551_v30 = vpop.f32.mrb[115].mxu0  ;;  %9358 = vmatprep.subr.bf16.mxu1 %v9863_v62  ;;  %9379 = vmatpush3.bf16.msra.mxu0 %v9864_v57  ;;  %v4342_v57 = vor.u32 %v4341_v15, %v10069_v17 }
 0x1f3   :  { %v9050_v12 = vpop.f32.mrb[112].mxu1  ;;  %9416 = vmatprep.subr.bf16.mxu0 %v11196_v2  ;;  %v4410_v30 = vrot.slane %v12289_v16, 1  ;;  %v4344_v34 = vor.u32 %v4343_v60, %v10121_v55  ;;  %v4345_v60 = vrot.slane %v12338_v7, 1  ;;  %v12291_v32 = vshll.u32 %v11227_v56, 16 }
 0x1f4   :  { %v2348_v41 = vadd.f32 %v9050_v12, %v11095_v43  ;;  %v2307_v59 = vpop.f32.mrb[113].mxu1  ;;  %9345 = vmatmul.mubr.msk.bf16.gmra.mrb[220].mxu0 %vm446_vm3, %v11205_v29 }
 0x1f5   :  { %v2346_v23 = vadd.f32 %v2307_v59, %v11100_v40  ;;  %v9051_v53 = vpop.f32.mrb[114].mxu1  ;;  %9348 = vmatprep.mubr.msk.bf16.mxu0 %vm446_vm3, %v11211_v8  ;;  %9359 = vmatpush3.bf16.msra.mxu1 %v9863_v62  ;;  %v12365_v40 = vshll.u32 %v11192_v44, 16 }
 0x1f6   :  { %v11229_v43 = vadd.f32 %v9070_v14, %v2348_v41  ;;  %v2310_v12 = vpop.f32.mrb[115].mxu1  ;;  %9396 = vmatprep.subr.bf16.mxu1 %v11215_v61  ;;  %v11243_v14 = vsel %vm11126_vm9, %v4342_v57, %v4410_v30  ;;  %v4346_v30 = vor.u32 %v4345_v60, %v12336_v52 }
 0x1f7   :  { %v4414_v59 = vrot.slane %v12365_v40, 1  ;;  %v11235_v53 = vadd.f32 %v2548_v31, %v2346_v23  ;;  %v9074_v15 = vpop.f32.mrb[116].mxu0 }
 0x1f8   :  { %9325 = vmatmul.mubr.msk.bf16.gmra.mrb[220].mxu1 %vm446_vm3, %v10275_v49  ;;  %v2564_v62 = vpop.f32.mrb[117].mxu0 }
 0x1f9   :  { %v9075_v16 = vpop.f32.mrb[118].mxu0  ;;  %9328 = vmatprep.mubr.msk.bf16.mxu1 %vm446_vm3, %v10299_v63  ;;  %v11249_v31 = vsel %vm11126_vm9, %v4344_v34, %v4414_v59 }
 0x1fa   :  { %v2567_v41 = vpop.f32.mrb[119].mxu0 }
 0x1fb   :  { %v9054_v23 = vpop.f32.mrb[116].mxu1  ;;  %v4418_v41 = vrot.slane %v12291_v32, 1 }
 0x1fc   :  { %v2352_v12 = vadd.f32 %v9054_v23, %v11116_v38  ;;  %v2323_v16 = vpop.f32.mrb[117].mxu1  ;;  %9349 = vmatmul.mubr.msk.bf16.gmra.mrb[224].mxu0 %vm446_vm3, %v11243_v14 }
 0x1fd   :  { %v2350_v40 = vadd.f32 %v2323_v16, %v11123_v36  ;;  %v9055_v57 = vpop.f32.mrb[118].mxu1  ;;  %9352 = vmatprep.mubr.msk.bf16.mxu0 %vm446_vm3, %v11249_v31  ;;  %v11270_v60 = vsel %vm11126_vm9, %v4346_v30, %v4418_v41 }
 0x1fe   :  { %v11260_v34 = vadd.f32 %v9074_v15, %v2352_v12  ;;  %v2326_v59 = vpop.f32.mrb[119].mxu1 }
 0x1ff   :  { %v11262_v7 = vadd.f32 %v2564_v62, %v2350_v40  ;;  %v9102_v38 = vpop.f32.mrb[120].mxu0 }
 0x200   :  { %9329 = vmatmul.mubr.msk.bf16.gmra.mrb[224].mxu1 %vm446_vm3, %v10329_v58  ;;  %v2782_v23 = vpop.f32.mrb[121].mxu0 }
 0x201   :  { %v9103_v36 = vpop.f32.mrb[122].mxu0  ;;  %9332 = vmatprep.mubr.msk.bf16.mxu1 %vm446_vm3, %v12358_v20 }
 0x202   :  { %v2785_v16 = vpop.f32.mrb[123].mxu0 }
 0x203   :  { %v9082_v57 = vpop.f32.mrb[120].mxu1 }
 0x204   :  { %v2714_v15 = vadd.f32 %v9082_v57, %v11150_v0  ;;  %v2649_v12 = vpop.f32.mrb[121].mxu1  ;;  %9353 = vmatmul.mubr.msk.bf16.gmra.mrb[228].mxu0 %vm446_vm3, %v11270_v60 }
 0x205   :  { %v2712_v62 = vadd.f32 %v2649_v12, %v11157_v11  ;;  %v9083_v40 = vpop.f32.mrb[122].mxu1  ;;  %9380 = vmatprep.mubr.msk.bf16.mxu0 %vm446_vm3, %v11171_v13  ;;  %v9870_v11 = vld [vmem:[#allocation5 + $0x208] sm:$0xff]  }
 0x206   :  { %v11278_v59 = vadd.f32 %v9102_v38, %v2714_v15  ;;  %v2652_v36 = vpop.f32.mrb[123].mxu1 }
 0x207   :  { %v11280_v32 = vadd.f32 %v2782_v23, %v2712_v62  ;;  %v9106_v30 = vpop.f32.mrb[124].mxu0  ;;  %v9869_v62 = vld [vmem:[#allocation5 + $0x198] sm:$0xff]   ;;  %v9915_v36 = vld [vmem:[#allocation2 + $0x40] sm:$0xf] }
 0x208   :  { %9333 = vmatmul.mubr.msk.bf16.gmra.mrb[228].mxu1 %vm446_vm3, %v10408_v24  ;;  %v2798_v0 = vpop.f32.mrb[125].mxu0 }
 0x209   :  { %v9107_v41 = vpop.f32.mrb[126].mxu0  ;;  %9360 = vmatprep.mubr.msk.bf16.mxu1 %vm446_vm3, %v11165_v4 }
 0x20a   :  { %v2801_v16 = vpop.f32.mrb[127].mxu0  ;;  %v11295_v41 = vcombine.low %v9915_v36, %v9915_v36 }
 0x20b   :  { %v9086_v57 = vpop.f32.mrb[124].mxu1 }
 0x20c   :  { %v2718_v12 = vadd.f32 %v9086_v57, %v11187_v45  ;;  %v2665_v40 = vpop.f32.mrb[125].mxu1  ;;  %9381 = vmatmul.mubr.msk.bf16.vlgmr.msra.gmra.mrb[232].mxu0 %vm446_vm3, %v11205_v29  ;;  %v11299_v57 = vld [vmem:[#allocation5 + $0x2e0] sm:$0xff]  }
 0x20d   :  { %v2716_v38 = vadd.f32 %v2665_v40, %v11194_v42  ;;  %v9087_v23 = vpop.f32.mrb[126].mxu1  ;;  %9417 = vmatpush3.bf16.msra.mxu0 %v11196_v2  ;;  %9384 = vmatprep.mubr.msk.bf16.mxu0 %vm446_vm3, %v11211_v8  ;;  %v11308_v40 = vld [vmem:[#allocation5 + $0x270] sm:$0xff]  }
 0x20e   :  { %v11293_v15 = vadd.f32 %v9106_v30, %v2718_v12  ;;  %v2668_v4 = vpop.f32.mrb[127].mxu1  ;;  %9418 = vmatprep.subr.bf16.mxu0 %v9870_v11  ;;  %v4347_v12 = vrot.slane %v12341_v48, 1 }
 0x20f   :  { %v11297_v45 = vadd.f32 %v2798_v0, %v2716_v38  ;;  %v9110_v16 = vpop.f32.mrb[128].mxu0  ;;  %v12366_v0 = vld [vmem:[#allocation24_spill] sm:$0xff] }
 0x210   :  { %9361 = vmatmul.mubr.msk.bf16.vlgmr.msra.gmra.mrb[232].mxu1 %vm446_vm3, %v11171_v13  ;;  %v2814_v2 = vpop.f32.mrb[129].mxu0  ;;  %v4348_v48 = vor.u32 %v4347_v12, %v12366_v0 }
 0x211   :  { %9397 = vmatpush3.bf16.msra.mxu1 %v11215_v61  ;;  %v9111_v42 = vpop.f32.mrb[130].mxu0  ;;  %9364 = vmatprep.mubr.msk.bf16.mxu1 %vm446_vm3, %v11205_v29 }
 0x212   :  { %v2817_v30 = vpop.f32.mrb[131].mxu0  ;;  %9398 = vmatprep.subr.bf16.mxu1 %v9869_v62  ;;  %9419 = vmatpush3.bf16.msra.mxu0 %v9870_v11  ;;  %v9916_v11 = vld [vmem:[#allocation2 + $0x48] sm:$0xf] }
 0x213   :  { %v9090_v38 = vpop.f32.mrb[128].mxu1  ;;  %9456 = vmatprep.subr.bf16.mxu0 %v11299_v57  ;;  %v11317_v36 = vcombine.low %v9916_v11, %v9916_v11 }
 0x214   :  { %v2722_v13 = vadd.f32 %v9090_v38, %v11229_v43  ;;  %v2681_v23 = vpop.f32.mrb[129].mxu1  ;;  %9385 = vmatmul.mubr.msk.bf16.gmra.mrb[236].mxu0 %vm446_vm3, %v11243_v14  ;;  %v12367_v43 = vshll.u32 %v11295_v41, 16 }
 0x215   :  { %v2720_v61 = vadd.f32 %v2681_v23, %v11235_v53  ;;  %v9091_v4 = vpop.f32.mrb[130].mxu1  ;;  %9388 = vmatprep.mubr.msk.bf16.mxu0 %vm446_vm3, %v11249_v31  ;;  %9399 = vmatpush3.bf16.msra.mxu1 %v9869_v62 }
 0x216   :  { %v11319_v42 = vadd.f32 %v9110_v16, %v2722_v13  ;;  %v2684_v30 = vpop.f32.mrb[131].mxu1  ;;  %v4422_v38 = vrot.slane %v12367_v43, 1  ;;  %9436 = vmatprep.subr.bf16.mxu1 %v11308_v40  ;;  %v4349_v16 = vrot.slane %v12344_v19, 1 }
 0x217   :  { %v11325_v24 = vadd.f32 %v2814_v2, %v2720_v61  ;;  %v9114_v53 = vpop.f32.mrb[132].mxu0 }
 0x218   :  { %9365 = vmatmul.mubr.msk.bf16.gmra.mrb[236].mxu1 %vm446_vm3, %v11211_v8  ;;  %v2830_v62 = vpop.f32.mrb[133].mxu0  ;;  %v11335_v4 = vsel %vm11126_vm9, %v4348_v48, %v4422_v38 }
 0x219   :  { %v9115_v23 = vpop.f32.mrb[134].mxu0  ;;  %9368 = vmatprep.mubr.msk.bf16.mxu1 %vm446_vm3, %v11243_v14 }
 0x21a   :  { %v2833_v13 = vpop.f32.mrb[135].mxu0  ;;  %v12368_v23 = vld [vmem:[#allocation28_spill] sm:$0xff] }
 0x21b   :  { %v9094_v2 = vpop.f32.mrb[132].mxu1  ;;  %v4350_v12 = vor.u32 %v4349_v16, %v12368_v23  ;;  %v12369_v13 = vshll.u32 %v11317_v36, 16 }
 0x21c   :  { %v2726_v61 = vadd.f32 %v9094_v2, %v11260_v34  ;;  %v2697_v11 = vpop.f32.mrb[133].mxu1  ;;  %9389 = vmatmul.mubr.msk.bf16.gmra.mrb[240].mxu0 %vm446_vm3, %v11270_v60 }
 0x21d   :  { %v2724_v30 = vadd.f32 %v2697_v11, %v11262_v7  ;;  %v9095_v43 = vpop.f32.mrb[134].mxu1  ;;  %9392 = vmatprep.mubr.msk.bf16.mxu0 %vm446_vm3, %v11335_v4  ;;  %v4426_v19 = vrot.slane %v12369_v13, 1 }
 0x21e   :  { %v11346_v48 = vadd.f32 %v9114_v53, %v2726_v61  ;;  %v2700_v38 = vpop.f32.mrb[135].mxu1 }
 0x21f   :  { %v11348_v0 = vadd.f32 %v2830_v62, %v2724_v30  ;;  %v9142_v34 = vpop.f32.mrb[136].mxu0  ;;  %v11356_v16 = vsel %vm11126_vm9, %v4350_v12, %v4426_v19 }
 0x220   :  { %9369 = vmatmul.mubr.msk.bf16.gmra.mrb[240].mxu1 %vm446_vm3, %v11249_v31  ;;  %v3048_v2 = vpop.f32.mrb[137].mxu0 }
 0x221   :  { %v9143_v7 = vpop.f32.mrb[138].mxu0  ;;  %9372 = vmatprep.mubr.msk.bf16.mxu1 %vm446_vm3, %v11270_v60 }
 0x222   :  { %v3051_v11 = vpop.f32.mrb[139].mxu0 }
 0x223   :  { %v9122_v43 = vpop.f32.mrb[136].mxu1 }
 0x224   :  { %v2980_v53 = vadd.f32 %v9122_v43, %v11278_v59  ;;  %v2915_v61 = vpop.f32.mrb[137].mxu1  ;;  %9393 = vmatmul.mubr.msk.bf16.gmra.mrb[244].mxu0 %vm446_vm3, %v11356_v16 }
 0x225   :  { %v2978_v62 = vadd.f32 %v2915_v61, %v11280_v32  ;;  %v9123_v30 = vpop.f32.mrb[138].mxu1  ;;  %9420 = vmatprep.mubr.msk.bf16.mxu0 %vm446_vm3, %v11211_v8  ;;  %v9876_v32 = vld [vmem:[#allocation5 + $0x2e8] sm:$0xff]  }
 0x226   :  { %v11364_v13 = vadd.f32 %v9142_v34, %v2980_v53  ;;  %v2918_v38 = vpop.f32.mrb[139].mxu1 }
 0x227   :  { %v11366_v7 = vadd.f32 %v3048_v2, %v2978_v62  ;;  %v9146_v19 = vpop.f32.mrb[140].mxu0  ;;  %v9875_v62 = vld [vmem:[#allocation5 + $0x278] sm:$0xff]   ;;  %v9917_v38 = vld [vmem:[#allocation2 + $0x50] sm:$0xf] }
 0x228   :  { %9373 = vmatmul.mubr.msk.bf16.gmra.mrb[244].mxu1 %vm446_vm3, %v11335_v4  ;;  %v3064_v59 = vpop.f32.mrb[141].mxu0 }
 0x229   :  { %v9147_v12 = vpop.f32.mrb[142].mxu0  ;;  %9400 = vmatprep.mubr.msk.bf16.mxu1 %vm446_vm3, %v11205_v29 }
 0x22a   :  { %v3067_v11 = vpop.f32.mrb[143].mxu0  ;;  %v11381_v12 = vcombine.low %v9917_v38, %v9917_v38 }
 0x22b   :  { %v9126_v43 = vpop.f32.mrb[140].mxu1 }
 0x22c   :  { %v2984_v61 = vadd.f32 %v9126_v43, %v11293_v15  ;;  %v2931_v30 = vpop.f32.mrb[141].mxu1  ;;  %9421 = vmatmul.mubr.msk.bf16.vlgmr.msra.gmra.mrb[248].mxu0 %vm446_vm3, %v11243_v14  ;;  %v11385_v43 = vld [vmem:[#allocation5 + $0xc0] sm:$0xff]  }
 0x22d   :  { %v2982_v34 = vadd.f32 %v2931_v30, %v11297_v45  ;;  %v9127_v2 = vpop.f32.mrb[142].mxu1  ;;  %9457 = vmatpush3.bf16.msra.mxu0 %v11299_v57  ;;  %9424 = vmatprep.mubr.msk.bf16.mxu0 %vm446_vm3, %v11249_v31  ;;  %v11394_v30 = vld [vmem:[#allocation5 + $0x50] sm:$0xff]  }
 0x22e   :  { %v11379_v53 = vadd.f32 %v9146_v19, %v2984_v61  ;;  %v2934_v29 = vpop.f32.mrb[143].mxu1  ;;  %9458 = vmatprep.subr.bf16.mxu0 %v9876_v32  ;;  %v4351_v61 = vrot.slane %v12347_v33, 1 }
 0x22f   :  { %v11383_v15 = vadd.f32 %v3064_v59, %v2982_v34  ;;  %v9150_v11 = vpop.f32.mrb[144].mxu0  ;;  %v12370_v59 = vld [vmem:[#allocation30_spill] sm:$0xff] }
 0x230   :  { %9401 = vmatmul.mubr.msk.bf16.vlgmr.msra.gmra.mrb[248].mxu1 %vm446_vm3, %v11211_v8  ;;  %v3080_v45 = vpop.f32.mrb[145].mxu0  ;;  %v4352_v33 = vor.u32 %v4351_v61, %v12370_v59 }
 0x231   :  { %9437 = vmatpush3.bf16.msra.mxu1 %v11308_v40  ;;  %v9151_v57 = vpop.f32.mrb[146].mxu0  ;;  %9404 = vmatprep.mubr.msk.bf16.mxu1 %vm446_vm3, %v11243_v14  ;;  %v9918_v40 = vld [vmem:[#allocation2 + $0x58] sm:$0xf] }
 0x232   :  { %v3083_v19 = vpop.f32.mrb[147].mxu0  ;;  %9438 = vmatprep.subr.bf16.mxu1 %v9875_v62  ;;  %9459 = vmatpush3.bf16.msra.mxu0 %v9876_v32  ;;  %v11400_v29 = vcombine.low %v9918_v40, %v9918_v40 }
 0x233   :  { %v9130_v34 = vpop.f32.mrb[144].mxu1  ;;  %9496 = vmatprep.subr.bf16.mxu0 %v11385_v43 }
 0x234   :  { %v2988_v8 = vadd.f32 %v9130_v34, %v11319_v42  ;;  %v2947_v2 = vpop.f32.mrb[145].mxu1  ;;  %9425 = vmatmul.mubr.msk.bf16.gmra.mrb[252].mxu0 %vm446_vm3, %v11270_v60  ;;  %v12371_v42 = vshll.u32 %v11381_v12, 16 }
 0x235   :  { %v2986_v32 = vadd.f32 %v2947_v2, %v11325_v24  ;;  %v9131_v38 = vpop.f32.mrb[146].mxu1  ;;  %9428 = vmatprep.mubr.msk.bf16.mxu0 %vm446_vm3, %v11335_v4  ;;  %9439 = vmatpush3.bf16.msra.mxu1 %v9875_v62  ;;  %v4353_v62 = vrot.slane %v12350_v27, 1 }
 0x236   :  { %v11405_v57 = vadd.f32 %v9150_v11, %v2988_v8  ;;  %v2950_v19 = vpop.f32.mrb[147].mxu1  ;;  %v4430_v34 = vrot.slane %v12371_v42, 1  ;;  %9476 = vmatprep.subr.bf16.mxu1 %v11394_v30 }
 0x237   :  { %v11411_v23 = vadd.f32 %v3080_v45, %v2986_v32  ;;  %v9154_v40 = vpop.f32.mrb[148].mxu0 }
 0x238   :  { %9405 = vmatmul.mubr.msk.bf16.gmra.mrb[252].mxu1 %vm446_vm3, %v11249_v31  ;;  %v3096_v24 = vpop.f32.mrb[149].mxu0  ;;  %v11421_v8 = vsel %vm11126_vm9, %v4352_v33, %v4430_v34 }
 0x239   :  { %v9155_v2 = vpop.f32.mrb[150].mxu0  ;;  %9408 = vmatprep.mubr.msk.bf16.mxu1 %vm446_vm3, %v11270_v60 }
 0x23a   :  { %v3099_v61 = vpop.f32.mrb[151].mxu0  ;;  %v12372_v2 = vld [vmem:[#allocation32_spill] sm:$0xff] }
 0x23b   :  { %v9134_v45 = vpop.f32.mrb[148].mxu1  ;;  %v4354_v11 = vor.u32 %v4353_v62, %v12372_v2  ;;  %v12373_v61 = vshll.u32 %v11400_v29, 16 }
 0x23c   :  { %v2992_v32 = vadd.f32 %v9134_v45, %v11346_v48  ;;  %v2963_v38 = vpop.f32.mrb[149].mxu1  ;;  %9429 = vmatmul.mubr.msk.bf16.gmra.mrb[0].mxu0 %vm446_vm3, %v11356_v16 }
 0x23d   :  { %v2990_v19 = vadd.f32 %v2963_v38, %v11348_v0  ;;  %v9135_v42 = vpop.f32.mrb[150].mxu1  ;;  %9432 = vmatprep.mubr.msk.bf16.mxu0 %vm446_vm3, %v11421_v8  ;;  %v4434_v27 = vrot.slane %v12373_v61, 1 }
 0x23e   :  { %v11432_v33 = vadd.f32 %v9154_v40, %v2992_v32  ;;  %v2966_v34 = vpop.f32.mrb[151].mxu1 }
 0x23f   :  { %v11434_v59 = vadd.f32 %v3096_v24, %v2990_v19  ;;  %v9182_v48 = vpop.f32.mrb[152].mxu0  ;;  %v11442_v62 = vsel %vm11126_vm9, %v4354_v11, %v4434_v27 }
 0x240   :  { %9409 = vmatmul.mubr.msk.bf16.gmra.mrb[0].mxu1 %vm446_vm3, %v11335_v4  ;;  %v3314_v45 = vpop.f32.mrb[153].mxu0 }
 0x241   :  { %v9183_v0 = vpop.f32.mrb[154].mxu0  ;;  %9412 = vmatprep.mubr.msk.bf16.mxu1 %vm446_vm3, %v11356_v16 }
 0x242   :  { %v3317_v38 = vpop.f32.mrb[155].mxu0 }
 0x243   :  { %v9162_v42 = vpop.f32.mrb[152].mxu1 }
 0x244   :  { %v3246_v40 = vadd.f32 %v9162_v42, %v11364_v13  ;;  %v3181_v32 = vpop.f32.mrb[153].mxu1  ;;  %9433 = vmatmul.mubr.msk.bf16.gmra.mrb[4].mxu0 %vm446_vm3, %v11442_v62 }
 0x245   :  { %v3244_v24 = vadd.f32 %v3181_v32, %v11366_v7  ;;  %v9163_v19 = vpop.f32.mrb[154].mxu1  ;;  %9460 = vmatprep.mubr.msk.bf16.mxu0 %vm446_vm3, %v11249_v31  ;;  %v9881_v7 = vld [vmem:[#allocation5 + $0xc8] sm:$0xff]  }
 0x246   :  { %v11450_v61 = vadd.f32 %v9182_v48, %v3246_v40  ;;  %v3184_v34 = vpop.f32.mrb[155].mxu1 }
 0x247   :  { %v11452_v0 = vadd.f32 %v3314_v45, %v3244_v24  ;;  %v9186_v27 = vpop.f32.mrb[156].mxu0  ;;  %v9880_v24 = vld [vmem:[#allocation5 + $0x58] sm:$0xff]   ;;  %v9919_v34 = vld [vmem:[#allocation2 + $0x60] sm:$0xf] }
 0x248   :  { %9413 = vmatmul.mubr.msk.bf16.gmra.mrb[4].mxu1 %vm446_vm3, %v11421_v8  ;;  %v3330_v13 = vpop.f32.mrb[157].mxu0 }
 0x249   :  { %v9187_v11 = vpop.f32.mrb[158].mxu0  ;;  %9440 = vmatprep.mubr.msk.bf16.mxu1 %vm446_vm3, %v11243_v14 }
 0x24a   :  { %v3333_v38 = vpop.f32.mrb[159].mxu0  ;;  %v11467_v11 = vcombine.low %v9919_v34, %v9919_v34 }
 0x24b   :  { %v9166_v42 = vpop.f32.mrb[156].mxu1 }
 0x24c   :  { %v3250_v32 = vadd.f32 %v9166_v42, %v11379_v53  ;;  %v3197_v19 = vpop.f32.mrb[157].mxu1  ;;  %9461 = vmatmul.mubr.msk.bf16.vlgmr.msra.gmra.mrb[8].mxu0 %vm446_vm3, %v11270_v60  ;;  %v11471_v42 = vld [vmem:[#allocation5 + $0x1a0] sm:$0xff]  }
 0x24d   :  { %v3248_v48 = vadd.f32 %v3197_v19, %v11383_v15  ;;  %v9167_v45 = vpop.f32.mrb[158].mxu1  ;;  %9497 = vmatpush3.bf16.msra.mxu0 %v11385_v43  ;;  %9464 = vmatprep.mubr.msk.bf16.mxu0 %vm446_vm3, %v11335_v4  ;;  %v11480_v19 = vld [vmem:[#allocation5 + $0x130] sm:$0xff]  }
 0x24e   :  { %v11465_v40 = vadd.f32 %v9186_v27, %v3250_v32  ;;  %v3200_v14 = vpop.f32.mrb[159].mxu1  ;;  %9498 = vmatprep.subr.bf16.mxu0 %v9881_v7  ;;  %v4355_v32 = vrot.slane %v12353_v9, 1 }
 0x24f   :  { %v11469_v53 = vadd.f32 %v3330_v13, %v3248_v48  ;;  %v9190_v38 = vpop.f32.mrb[160].mxu0  ;;  %v12297_v13 = vshll.u32 %v11467_v11, 16 }
 0x250   :  { %9441 = vmatmul.mubr.msk.bf16.vlgmr.msra.gmra.mrb[8].mxu1 %vm446_vm3, %v11249_v31  ;;  %v3346_v15 = vpop.f32.mrb[161].mxu0 }
 0x251   :  { %9477 = vmatpush3.bf16.msra.mxu1 %v11394_v30  ;;  %v9191_v43 = vpop.f32.mrb[162].mxu0  ;;  %9444 = vmatprep.mubr.msk.bf16.mxu1 %vm446_vm3, %v11270_v60  ;;  %v9920_v30 = vld [vmem:[#allocation2 + $0x68] sm:$0xf] }
 0x252   :  { %v3349_v27 = vpop.f32.mrb[163].mxu0  ;;  %9478 = vmatprep.subr.bf16.mxu1 %v9880_v24  ;;  %9499 = vmatpush3.bf16.msra.mxu0 %v9881_v7  ;;  %v11486_v60 = vcombine.low %v9920_v30, %v9920_v30 }
 0x253   :  { %v9170_v48 = vpop.f32.mrb[160].mxu1  ;;  %9536 = vmatprep.subr.bf16.mxu0 %v11471_v42  ;;  %v4356_v27 = vor.u32 %v4355_v32, %v12351_v51 }
 0x254   :  { %v3254_v31 = vadd.f32 %v9170_v48, %v11405_v57  ;;  %v3213_v45 = vpop.f32.mrb[161].mxu1  ;;  %9465 = vmatmul.mubr.msk.bf16.gmra.mrb[12].mxu0 %vm446_vm3, %v11356_v16  ;;  %v4438_v57 = vrot.slane %v12297_v13, 1 }
 0x255   :  { %v3252_v7 = vadd.f32 %v3213_v45, %v11411_v23  ;;  %v9171_v14 = vpop.f32.mrb[162].mxu1  ;;  %9468 = vmatprep.mubr.msk.bf16.mxu0 %vm446_vm3, %v11421_v8  ;;  %9479 = vmatpush3.bf16.msra.mxu1 %v9880_v24  ;;  %v4357_v24 = vrot.slane %v10424_v37, 1 }
 0x256   :  { %v11491_v34 = vadd.f32 %v9190_v38, %v3254_v31  ;;  %v3216_v43 = vpop.f32.mrb[163].mxu1  ;;  %9516 = vmatprep.subr.bf16.mxu1 %v11480_v19  ;;  %v4440_v38 = vshll.u32 %v11486_v60, 16  ;;  %v4472_v31 = vsel %vm11126_vm9, %v4356_v27, %v4438_v57  ;;  %v5427_v57 = vrot.slane %v10052_v6, 1 }
 0x257   :  { %v11497_v48 = vadd.f32 %v3346_v15, %v3252_v7  ;;  %v9194_v30 = vpop.f32.mrb[164].mxu0  ;;  %v5426_v6 = vrot.slane %v10231_v21, 1 }
 0x258   :  { %9445 = vmatmul.mubr.msk.bf16.gmra.mrb[12].mxu1 %vm446_vm3, %v11335_v4  ;;  %v3362_v23 = vpop.f32.mrb[165].mxu0 }
 0x259   :  { %v9195_v45 = vpop.f32.mrb[166].mxu0  ;;  %9448 = vmatprep.mubr.msk.bf16.mxu1 %vm446_vm3, %v11356_v16  ;;  %v4358_v16 = vor.u32 %v4357_v24, %v10421_v25 }
 0x25a   :  { %v3365_v32 = vpop.f32.mrb[167].mxu0  ;;  %v4442_v45 = vrot.slane %v4440_v38, 1 }
 0x25b   :  { %v9174_v14 = vpop.f32.mrb[164].mxu1 }
 0x25c   :  { %v3258_v15 = vadd.f32 %v9174_v14, %v11432_v33  ;;  %v3229_v7 = vpop.f32.mrb[165].mxu1  ;;  %9469 = vmatmul.mubr.msk.bf16.gmra.mrb[16].mxu0 %vm446_vm3, %v11442_v62  ;;  %v5441_v33 = vrot.slane %v11111_v35, 1 }
 0x25d   :  { %v3256_v4 = vadd.f32 %v3229_v7, %v11434_v59  ;;  %v9175_v43 = vpop.f32.mrb[166].mxu1  ;;  %9472 = vmatprep.mubr.msk.bf16.mxu0 %vm446_vm3, %v4472_v31 }
 0x25e   :  { %v11515_v32 = vadd.f32 %v9194_v30, %v3258_v15  ;;  %v3232_v27 = vpop.f32.mrb[167].mxu1  ;;  %v4473_v30 = vsel %vm11126_vm9, %v4358_v16, %v4442_v45  ;;  %v5440_v15 = vrot.slane %v11097_v47, 1 }
 0x25f   :  { %v11519_v14 = vadd.f32 %v3362_v23, %v3256_v4  ;;  %v9222_v13 = vpop.f32.mrb[168].mxu0  ;;  %v5460_v23 = vsel %vm5454_vm10, %v5427_v57, %v5441_v33  ;;  %v5429_v33 = vrot.slane %v10140_v3, 1 }
 0x260   :  { %9449 = vmatmul.mubr.msk.bf16.gmra.mrb[16].mxu1 %vm446_vm3, %v11421_v8  ;;  %v3592_v59 = vpop.f32.mrb[169].mxu0  ;;  %v5428_v8 = vrot.slane %v10101_v39, 1  ;;  %v5457_v57 = vsel %vm5454_vm10, %v5426_v6, %v5440_v15  ;;  %v9886_v6 = vld [vmem:[#allocation5 + $0x1a8] sm:$0xff]  }
 0x261   :  { %v9223_v7 = vpop.f32.mrb[170].mxu0  ;;  %9452 = vmatprep.mubr.msk.bf16.mxu1 %vm446_vm3, %v11442_v62  ;;  %v5442_v62 = vrot.slane %v11121_v26, 1 }
 0x262   :  { %v3595_v24 = vpop.f32.mrb[171].mxu0 }
 0x263   :  { %v9202_v4 = vpop.f32.mrb[168].mxu1 }
 0x264   :  { %v3525_v43 = vadd.f32 %v9202_v4, %v11450_v61  ;;  %v3460_v27 = vpop.f32.mrb[169].mxu1  ;;  %9473 = vmatmul.mubr.msk.bf16.gmra.mrb[20].mxu0 %vm446_vm3, %v4473_v30  ;;  %v5443_v61 = vrot.slane %v11148_v1, 1 }
 0x265   :  { %v3523_v5 = vadd.f32 %v3460_v27, %v11452_v0  ;;  %v9203_v16 = vpop.f32.mrb[170].mxu1  ;;  %9500 = vmatprep.mubr.msk.bf16.mxu0 %vm446_vm3, %v5460_v23  ;;  %v11545_v0 = vsel %vm5454_vm10, %v5428_v8, %v5442_v62  ;;  %v5430_v27 = vrot.slane %v10185_v54, 1  ;;  %v5444_v8 = vrot.slane %v11155_v50, 1 }
 0x266   :  { %v11536_v21 = vadd.f32 %v9222_v13, %v3525_v43  ;;  %v3463_v45 = vpop.f32.mrb[171].mxu1  ;;  %v11549_v4 = vsel %vm5454_vm10, %v5429_v33, %v5443_v61  ;;  %v5445_v16 = vrot.slane %v11185_v18, 1 }
 0x267   :  { %v11541_v7 = vadd.f32 %v3592_v59, %v3523_v5  ;;  %v9226_v30 = vpop.f32.mrb[172].mxu0  ;;  %v9885_v45 = vld [vmem:[#allocation5 + $0x138] sm:$0xff]  }
 0x268   :  { %9453 = vmatmul.mubr.msk.bf16.gmra.mrb[20].mxu1 %vm446_vm3, %v4472_v31  ;;  %v3608_v39 = vpop.f32.mrb[173].mxu0 }
 0x269   :  { %v9227_v24 = vpop.f32.mrb[174].mxu0  ;;  %9480 = vmatprep.mubr.msk.bf16.mxu1 %vm446_vm3, %v5457_v57 }
 0x26a   :  { %v3611_v13 = vpop.f32.mrb[175].mxu0 }
 0x26b   :  { %v9206_v3 = vpop.f32.mrb[172].mxu1 }
 0x26c   :  { %v3529_v15 = vadd.f32 %v9206_v3, %v11465_v40  ;;  %v3476_v59 = vpop.f32.mrb[173].mxu1  ;;  %9501 = vmatmul.mubr.msk.bf16.vlgmr.msra.gmra.mrb[24].mxu0 %vm446_vm3, %v11545_v0  ;;  %v5431_v40 = vrot.slane %v10056_v10, 1  ;;  %v11573_v10 = vsel %vm5454_vm10, %v5430_v27, %v5444_v8  ;;  %v5447_v27 = vrot.slane %v11227_v56, 1 }
 0x26d   :  { %v3527_v31 = vadd.f32 %v3476_v59, %v11469_v53  ;;  %v9207_v43 = vpop.f32.mrb[174].mxu1  ;;  %9537 = vmatpush3.bf16.msra.mxu0 %v11471_v42  ;;  %9504 = vmatprep.mubr.msk.bf16.mxu0 %vm446_vm3, %v11549_v4  ;;  %v11566_v42 = vld [vmem:[#allocation5 + $0x280] sm:$0xff]  }
 0x26e   :  { %v11560_v62 = vadd.f32 %v9226_v30, %v3529_v15  ;;  %v3479_v5 = vpop.f32.mrb[175].mxu1  ;;  %9538 = vmatprep.subr.bf16.mxu0 %v9886_v6  ;;  %v11576_v30 = vsel %vm5454_vm10, %v5431_v40, %v5445_v16  ;;  %v12374_v15 = vld [vmem:[#allocation14_spill] sm:$0xff] }
 0x26f   :  { %v11564_v53 = vadd.f32 %v3608_v39, %v3527_v31  ;;  %v9230_v57 = vpop.f32.mrb[176].mxu0  ;;  %v11578_v39 = vld [vmem:[#allocation5 + $0x210] sm:$0xff]   ;;  %v5432_v59 = vrot.slane %v12374_v15, 1 }
 0x270   :  { %9481 = vmatmul.mubr.msk.bf16.vlgmr.msra.gmra.mrb[24].mxu1 %vm446_vm3, %v5460_v23  ;;  %v3624_v33 = vpop.f32.mrb[177].mxu0 }
 0x271   :  { %9517 = vmatpush3.bf16.msra.mxu1 %v11480_v19  ;;  %v9231_v54 = vpop.f32.mrb[178].mxu0  ;;  %9484 = vmatprep.mubr.msk.bf16.mxu1 %vm446_vm3, %v11545_v0 }
 0x272   :  { %v3627_v61 = vpop.f32.mrb[179].mxu0  ;;  %9518 = vmatprep.subr.bf16.mxu1 %v9885_v45  ;;  %9539 = vmatpush3.bf16.msra.mxu0 %v9886_v6  ;;  %v5446_v6 = vrot.slane %v11192_v44, 1 }
 0x273   :  { %v9210_v24 = vpop.f32.mrb[176].mxu1  ;;  %9576 = vmatprep.subr.bf16.mxu0 %v11566_v42 }
 0x274   :  { %v3533_v19 = vadd.f32 %v9210_v24, %v11491_v34  ;;  %v3492_v23 = vpop.f32.mrb[177].mxu1  ;;  %9505 = vmatmul.mubr.msk.bf16.gmra.mrb[28].mxu0 %vm446_vm3, %v11573_v10  ;;  %v5433_v34 = vrot.slane %v10146_v22, 1  ;;  %v11601_v16 = vsel %vm5454_vm10, %v5432_v59, %v5446_v6 }
 0x275   :  { %v3531_v13 = vadd.f32 %v3492_v23, %v11497_v48  ;;  %v9211_v3 = vpop.f32.mrb[178].mxu1  ;;  %9508 = vmatprep.mubr.msk.bf16.mxu0 %vm446_vm3, %v11576_v30  ;;  %9519 = vmatpush3.bf16.msra.mxu1 %v9885_v45  ;;  %v5448_v23 = vrot.slane %v11295_v41, 1 }
 0x276   :  { %v11589_v31 = vadd.f32 %v9230_v57, %v3533_v19  ;;  %v3495_v43 = vpop.f32.mrb[179].mxu1  ;;  %9556 = vmatprep.subr.bf16.mxu1 %v11578_v39  ;;  %v11604_v22 = vsel %vm5454_vm10, %v5433_v34, %v5447_v27  ;;  %v5434_v19 = vrot.slane %v10214_v46, 1 }
 0x277   :  { %v11594_v8 = vadd.f32 %v3624_v33, %v3531_v13  ;;  %v9234_v48 = vpop.f32.mrb[180].mxu0 }
 0x278   :  { %9485 = vmatmul.mubr.msk.bf16.gmra.mrb[28].mxu1 %vm446_vm3, %v11549_v4  ;;  %v3640_v5 = vpop.f32.mrb[181].mxu0 }
 0x279   :  { %v9235_v40 = vpop.f32.mrb[182].mxu0  ;;  %9488 = vmatprep.mubr.msk.bf16.mxu1 %vm446_vm3, %v11573_v10 }
 0x27a   :  { %v3643_v45 = vpop.f32.mrb[183].mxu0 }
 0x27b   :  { %v9214_v57 = vpop.f32.mrb[180].mxu1 }
 0x27c   :  { %v3537_v33 = vadd.f32 %v9214_v57, %v11515_v32  ;;  %v3508_v54 = vpop.f32.mrb[181].mxu1  ;;  %9509 = vmatmul.mubr.msk.bf16.gmra.mrb[32].mxu0 %vm446_vm3, %v11601_v16 }
 0x27d   :  { %v3535_v61 = vadd.f32 %v3508_v54, %v11519_v14  ;;  %v9215_v24 = vpop.f32.mrb[182].mxu1  ;;  %9512 = vmatprep.mubr.msk.bf16.mxu0 %vm446_vm3, %v11604_v22  ;;  %v11623_v14 = vsel %vm5454_vm10, %v5434_v19, %v5448_v23 }
 0x27e   :  { %v11614_v13 = vadd.f32 %v9234_v48, %v3537_v33  ;;  %v3511_v3 = vpop.f32.mrb[183].mxu1 }
 0x27f   :  { %v11616_v15 = vadd.f32 %v3640_v5, %v3535_v61  ;;  %v9262_v32 = vpop.f32.mrb[184].mxu0 }
 0x280   :  { %9489 = vmatmul.mubr.msk.bf16.gmra.mrb[32].mxu1 %vm446_vm3, %v11576_v30  ;;  %v3856_v59 = vpop.f32.mrb[185].mxu0 }
 0x281   :  { %v9263_v6 = vpop.f32.mrb[186].mxu0  ;;  %9492 = vmatprep.mubr.msk.bf16.mxu1 %vm446_vm3, %v11601_v16 }
 0x282   :  { %v3859_v46 = vpop.f32.mrb[187].mxu0  ;;  %v9889_v6 = vld [vmem:[#allocation5 + $0x218] sm:$0xff]  }
 0x283   :  { %v9242_v43 = vpop.f32.mrb[184].mxu1 }
 0x284   :  { %v3789_v34 = vadd.f32 %v9242_v43, %v11536_v21  ;;  %v3724_v27 = vpop.f32.mrb[185].mxu1  ;;  %9513 = vmatmul.mubr.msk.bf16.gmra.mrb[36].mxu0 %vm446_vm3, %v11623_v14  ;;  %v11650_v43 = vld [vmem:[#allocation5 + $0x60] sm:$0xff]  }
 0x285   :  { %v3787_v48 = vadd.f32 %v3724_v27, %v11541_v7  ;;  %v9243_v5 = vpop.f32.mrb[186].mxu1  ;;  %9540 = vmatprep.mubr.msk.bf16.mxu0 %vm446_vm3, %v11549_v4  ;;  %v9890_v7 = vld [vmem:[#allocation5 + $0x288] sm:$0xff]   ;;  %v11657_v27 = vld [vmem:[#allocation5 + $0x2f0] sm:$0xff]  }
 0x286   :  { %v11631_v40 = vadd.f32 %v9262_v32, %v3789_v34  ;;  %v3727_v45 = vpop.f32.mrb[187].mxu1 }
 0x287   :  { %v11633_v57 = vadd.f32 %v3856_v59, %v3787_v48  ;;  %v9266_v33 = vpop.f32.mrb[188].mxu0 }
 0x288   :  { %9493 = vmatmul.mubr.msk.bf16.gmra.mrb[36].mxu1 %vm446_vm3, %v11604_v22  ;;  %v3872_v21 = vpop.f32.mrb[189].mxu0 }
 0x289   :  { %v9267_v54 = vpop.f32.mrb[190].mxu0  ;;  %9520 = vmatprep.mubr.msk.bf16.mxu1 %vm446_vm3, %v11545_v0 }
 0x28a   :  { %v3875_v61 = vpop.f32.mrb[191].mxu0  ;;  %v5435_v54 = vrot.slane %v10275_v49, 1 }
 0x28b   :  { %v9246_v24 = vpop.f32.mrb[188].mxu1  ;;  %v5449_v61 = vrot.slane %v11317_v36, 1 }
 0x28c   :  { %v3793_v19 = vadd.f32 %v9246_v24, %v11560_v62  ;;  %v3740_v23 = vpop.f32.mrb[189].mxu1  ;;  %9541 = vmatmul.mubr.msk.bf16.vlgmr.msra.gmra.mrb[40].mxu0 %vm446_vm3, %v11573_v10 }
 0x28d   :  { %v3791_v3 = vadd.f32 %v3740_v23, %v11564_v53  ;;  %v9247_v32 = vpop.f32.mrb[190].mxu1  ;;  %9577 = vmatpush3.bf16.msra.mxu0 %v11566_v42  ;;  %9544 = vmatprep.mubr.msk.bf16.mxu0 %vm446_vm3, %v11576_v30  ;;  %v11678_v23 = vsel %vm5454_vm10, %v5435_v54, %v5449_v61 }
 0x28e   :  { %v11646_v59 = vadd.f32 %v9266_v33, %v3793_v19  ;;  %v3743_v0 = vpop.f32.mrb[191].mxu1  ;;  %9578 = vmatprep.subr.bf16.mxu0 %v9890_v7 }
 0x28f   :  { %v11648_v46 = vadd.f32 %v3872_v21, %v3791_v3  ;;  %v9270_v62 = vpop.f32.mrb[192].mxu0  ;;  %v5450_v0 = vrot.slane %v11381_v12, 1 }
 0x290   :  { %9521 = vmatmul.mubr.msk.bf16.vlgmr.msra.gmra.mrb[40].mxu1 %vm446_vm3, %v11549_v4  ;;  %v3888_v53 = vpop.f32.mrb[193].mxu0 }
 0x291   :  { %9557 = vmatpush3.bf16.msra.mxu1 %v11578_v39  ;;  %v9271_v42 = vpop.f32.mrb[194].mxu0  ;;  %9524 = vmatprep.mubr.msk.bf16.mxu1 %vm446_vm3, %v11573_v10 }
 0x292   :  { %v3891_v34 = vpop.f32.mrb[195].mxu0  ;;  %9558 = vmatprep.subr.bf16.mxu1 %v9889_v6  ;;  %9579 = vmatpush3.bf16.msra.mxu0 %v9890_v7 }
 0x293   :  { %v9250_v48 = vpop.f32.mrb[192].mxu1  ;;  %9616 = vmatprep.subr.bf16.mxu0 %v11650_v43 }
 0x294   :  { %v3797_v5 = vadd.f32 %v9250_v48, %v11589_v31  ;;  %v3756_v45 = vpop.f32.mrb[193].mxu1  ;;  %9545 = vmatmul.mubr.msk.bf16.gmra.mrb[44].mxu0 %vm446_vm3, %v11601_v16 }
 0x295   :  { %v3795_v4 = vadd.f32 %v3756_v45, %v11594_v8  ;;  %v9251_v39 = vpop.f32.mrb[194].mxu1  ;;  %9548 = vmatprep.mubr.msk.bf16.mxu0 %vm446_vm3, %v11604_v22  ;;  %9559 = vmatpush3.bf16.msra.mxu1 %v9889_v6 }
 0x296   :  { %v11666_v33 = vadd.f32 %v9270_v62, %v3797_v5  ;;  %v3759_v21 = vpop.f32.mrb[195].mxu1  ;;  %9596 = vmatprep.subr.bf16.mxu1 %v11657_v27 }
 0x297   :  { %v11671_v31 = vadd.f32 %v3888_v53, %v3795_v4  ;;  %v9274_v7 = vpop.f32.mrb[196].mxu0  ;;  %v5436_v53 = vrot.slane %v10299_v63, 1 }
 0x298   :  { %9525 = vmatmul.mubr.msk.bf16.gmra.mrb[44].mxu1 %vm446_vm3, %v11576_v30  ;;  %v3904_v8 = vpop.f32.mrb[197].mxu0 }
 0x299   :  { %v9275_v24 = vpop.f32.mrb[198].mxu0  ;;  %9528 = vmatprep.mubr.msk.bf16.mxu1 %vm446_vm3, %v11601_v16 }
 0x29a   :  { %v3907_v19 = vpop.f32.mrb[199].mxu0 }
 0x29b   :  { %v9254_v49 = vpop.f32.mrb[196].mxu1 }
 0x29c   :  { %v3801_v3 = vadd.f32 %v9254_v49, %v11614_v13  ;;  %v3772_v32 = vpop.f32.mrb[197].mxu1  ;;  %9549 = vmatmul.mubr.msk.bf16.gmra.mrb[48].mxu0 %vm446_vm3, %v11623_v14 }
 0x29d   :  { %v3799_v6 = vadd.f32 %v3772_v32, %v11616_v15  ;;  %v9255_v62 = vpop.f32.mrb[198].mxu1  ;;  %9552 = vmatprep.mubr.msk.bf16.mxu0 %vm446_vm3, %v11678_v23  ;;  %v11697_v15 = vsel %vm5454_vm10, %v5436_v53, %v5450_v0 }
 0x29e   :  { %v11688_v42 = vadd.f32 %v9274_v7, %v3801_v3  ;;  %v3775_v34 = vpop.f32.mrb[199].mxu1 }
 0x29f   :  { %v11690_v48 = vadd.f32 %v3904_v8, %v3799_v6  ;;  %v9302_v13 = vpop.f32.mrb[200].mxu0 }
 0x2a0   :  { %9529 = vmatmul.mubr.msk.bf16.gmra.mrb[48].mxu1 %vm446_vm3, %v11604_v22  ;;  %v4120_v5 = vpop.f32.mrb[201].mxu0 }
 0x2a1   :  { %v9303_v45 = vpop.f32.mrb[202].mxu0  ;;  %9532 = vmatprep.mubr.msk.bf16.mxu1 %vm446_vm3, %v11623_v14 }
 0x2a2   :  { %v4123_v4 = vpop.f32.mrb[203].mxu0  ;;  %v11724_v45 = vld [vmem:[#allocation5 + $0x140] sm:$0xff]  }
 0x2a3   :  { %v9282_v39 = vpop.f32.mrb[200].mxu1 }
 0x2a4   :  { %v4053_v63 = vadd.f32 %v9282_v39, %v11631_v40  ;;  %v3988_v21 = vpop.f32.mrb[201].mxu1  ;;  %9553 = vmatmul.mubr.msk.bf16.gmra.mrb[52].mxu0 %vm446_vm3, %v11697_v15  ;;  %v11731_v39 = vld [vmem:[#allocation5 + $0xd0] sm:$0xff]  }
 0x2a5   :  { %v4051_v54 = vadd.f32 %v3988_v21, %v11633_v57  ;;  %v9283_v61 = vpop.f32.mrb[202].mxu1  ;;  %9580 = vmatprep.mubr.msk.bf16.mxu0 %vm446_vm3, %v11576_v30  ;;  %v9894_v57 = vld [vmem:[#allocation5 + $0x68] sm:$0xff]  }
 0x2a6   :  { %v11705_v7 = vadd.f32 %v9302_v13, %v4053_v63  ;;  %v3991_v8 = vpop.f32.mrb[203].mxu1  ;;  %v9893_v13 = vld [vmem:[#allocation5 + $0x2f8] sm:$0xff]   ;;  %v6491_v61 = vshrl.u32 %v11097_v47, 16 }
 0x2a7   :  { %v11707_v24 = vadd.f32 %v4120_v5, %v4051_v54  ;;  %v9306_v19 = vpop.f32.mrb[204].mxu0 }
 0x2a8   :  { %9533 = vmatmul.mubr.msk.bf16.gmra.mrb[52].mxu1 %vm446_vm3, %v11678_v23  ;;  %v4136_v40 = vpop.f32.mrb[205].mxu0 }
 0x2a9   :  { %v9307_v49 = vpop.f32.mrb[206].mxu0  ;;  %9560 = vmatprep.mubr.msk.bf16.mxu1 %vm446_vm3, %v11573_v10 }
 0x2aa   :  { %v4139_v3 = vpop.f32.mrb[207].mxu0 }
 0x2ab   :  { %v9286_v32 = vpop.f32.mrb[204].mxu1 }
 0x2ac   :  { %v4057_v0 = vadd.f32 %v9286_v32, %v11646_v59  ;;  %v4004_v6 = vpop.f32.mrb[205].mxu1  ;;  %9581 = vmatmul.mubr.msk.bf16.vlgmr.msra.gmra.mrb[56].mxu0 %vm446_vm3, %v11601_v16  ;;  %v12375_v32 = vld [vmem:[#allocation26_spill] sm:$0xff] }
 0x2ad   :  { %v4055_v62 = vadd.f32 %v4004_v6, %v11648_v46  ;;  %v9287_v53 = vpop.f32.mrb[206].mxu1  ;;  %9617 = vmatpush3.bf16.msra.mxu0 %v11650_v43  ;;  %9584 = vmatprep.mubr.msk.bf16.mxu0 %vm446_vm3, %v11604_v22  ;;  %v12376_v6 = vld [vmem:[#allocation27_spill] sm:$0xff] }
 0x2ae   :  { %v11720_v34 = vadd.f32 %v9306_v19, %v4057_v0  ;;  %v4007_v10 = vpop.f32.mrb[207].mxu1  ;;  %9618 = vmatprep.subr.bf16.mxu0 %v9894_v57  ;;  %v6435_v0 = vrot.slane %v12375_v32, 1  ;;  %v12377_v53 = vshll.u32 %v11097_v47, 16  ;;  %v12381_v32 = vld [vmem:[#allocation12_spill] sm:$0xff] }
 0x2af   :  { %v11722_v5 = vadd.f32 %v4136_v40, %v4055_v62  ;;  %v9310_v59 = vpop.f32.mrb[208].mxu0  ;;  %v5437_v40 = vrot.slane %v10329_v58, 1  ;;  %v6436_v62 = vrot.slane %v12376_v6, 2  ;;  %v6493_v58 = vrot.slane %v6491_v61, 1 }
 0x2b0   :  { %9561 = vmatmul.mubr.msk.bf16.vlgmr.msra.gmra.mrb[56].mxu1 %vm446_vm3, %v11576_v30  ;;  %v4152_v46 = vpop.f32.mrb[209].mxu0  ;;  %v6494_v10 = vrot.slane %v12377_v53, 2  ;;  %v6439_v6 = vrot.slane %v12381_v32, 2 }
 0x2b1   :  { %9597 = vmatpush3.bf16.msra.mxu1 %v11657_v27  ;;  %v9311_v43 = vpop.f32.mrb[210].mxu0  ;;  %9564 = vmatprep.mubr.msk.bf16.mxu1 %vm446_vm3, %v11601_v16 }
 0x2b2   :  { %v4155_v4 = vpop.f32.mrb[211].mxu0  ;;  %9598 = vmatprep.subr.bf16.mxu1 %v9893_v13  ;;  %9619 = vmatpush3.bf16.msra.mxu0 %v9894_v57  ;;  %v6495_v61 = vor.u32 %v6494_v10, %v6493_v58 }
 0x2b3   :  { %v9290_v63 = vpop.f32.mrb[208].mxu1  ;;  %9656 = vmatprep.subr.bf16.mxu0 %v11724_v45  ;;  %v5452_v4 = vrot.slane %v11467_v11, 1 }
 0x2b4   :  { %v4061_v21 = vadd.f32 %v9290_v63, %v11666_v33  ;;  %v4020_v54 = vpop.f32.mrb[209].mxu1  ;;  %9585 = vmatmul.mubr.msk.bf16.gmra.mrb[60].mxu0 %vm446_vm3, %v11623_v14  ;;  %v5451_v33 = vrot.slane %v11400_v29, 1 }
 0x2b5   :  { %v4059_v30 = vadd.f32 %v4020_v54, %v11671_v31  ;;  %v9291_v27 = vpop.f32.mrb[210].mxu1  ;;  %9588 = vmatprep.mubr.msk.bf16.mxu0 %vm446_vm3, %v11678_v23  ;;  %9599 = vmatpush3.bf16.msra.mxu1 %v9893_v13 }
 0x2b6   :  { %v11741_v8 = vadd.f32 %v9310_v59, %v4061_v21  ;;  %v4023_v19 = vpop.f32.mrb[211].mxu1  ;;  %9636 = vmatprep.subr.bf16.mxu1 %v11731_v39  ;;  %v11757_v59 = vsel %vm5454_vm10, %v5437_v40, %v5451_v33  ;;  %v6437_v27 = vor.u32 %v6436_v62, %v6435_v0 }
 0x2b7   :  { %v11746_v49 = vadd.f32 %v4152_v46, %v4059_v30  ;;  %v9314_v3 = vpop.f32.mrb[212].mxu0  ;;  %v6496_v46 = vshrl.u32 %v11111_v35, 16  ;;  %v5438_v30 = vrot.slane %v12358_v20, 1  ;;  %v12378_v19 = vld [vmem:[#allocation11_spill] sm:$0xff] }
 0x2b8   :  { %9565 = vmatmul.mubr.msk.bf16.gmra.mrb[60].mxu1 %vm446_vm3, %v11604_v22  ;;  %v4168_v31 = vpop.f32.mrb[213].mxu0  ;;  %v6438_v40 = vrot.slane %v12378_v19, 1 }
 0x2b9   :  { %v9315_v57 = vpop.f32.mrb[214].mxu0  ;;  %9568 = vmatprep.mubr.msk.bf16.mxu1 %vm446_vm3, %v11623_v14  ;;  %v6498_v53 = vrot.slane %v6496_v46, 1  ;;  %v6578_v46 = vsel %vm11770_vm12, %v6437_v27, %v6495_v61 }
 0x2ba   :  { %v4171_v13 = vpop.f32.mrb[215].mxu0 }
 0x2bb   :  { %v9294_v43 = vpop.f32.mrb[212].mxu1  ;;  %v12382_v13 = vshll.u32 %v11111_v35, 16  ;;  %v12383_v35 = vld [vmem:[#allocation15_spill] sm:$0xff] }
 0x2bc   :  { %v4065_v63 = vadd.f32 %v9294_v43, %v11688_v42  ;;  %v4036_v21 = vpop.f32.mrb[213].mxu1  ;;  %9589 = vmatmul.mubr.msk.bf16.gmra.mrb[64].mxu0 %vm446_vm3, %v11697_v15 }
 0x2bd   :  { %v4063_v54 = vadd.f32 %v4036_v21, %v11690_v48  ;;  %v9295_v47 = vpop.f32.mrb[214].mxu1  ;;  %9592 = vmatprep.mubr.msk.bf16.mxu0 %vm446_vm3, %v11757_v59  ;;  %v6501_v48 = vshrl.u32 %v11121_v26, 16  ;;  %v6499_v20 = vrot.slane %v12382_v13, 2 }
 0x2be   :  { %v11774_v42 = vadd.f32 %v9314_v3, %v4065_v63  ;;  %v4039_v57 = vpop.f32.mrb[215].mxu1  ;;  %v11787_v3 = vsel %vm5454_vm10, %v5438_v30, %v5452_v4  ;;  %v6441_v63 = vrot.slane %v12383_v35, 1  ;;  %v12385_v47 = vshll.u32 %v11121_v26, 16 }
 0x2bf   :  { %v11780_v0 = vadd.f32 %v4168_v31, %v4063_v54  ;;  %v9342_v62 = vpop.f32.mrb[216].mxu0  ;;  %v12384_v31 = vld [vmem:[#allocation16_spill] sm:$0xff]  ;;  %v6503_v54 = vrot.slane %v6501_v48, 1  ;;  %v6440_v57 = vor.u32 %v6439_v6, %v6438_v40  ;;  %v6500_v32 = vor.u32 %v6499_v20, %v6498_v53 }
 0x2c0   :  { %9569 = vmatmul.mubr.msk.bf16.gmra.mrb[64].mxu1 %vm446_vm3, %v11678_v23  ;;  %v4549_v58 = vpop.f32.mrb[217].mxu0  ;;  %v6442_v21 = vrot.slane %v12384_v31, 2  ;;  %v6504_v19 = vrot.slane %v12385_v47, 2  ;;  %v6511_v48 = vshrl.u32 %v11155_v50, 16 }
 0x2c1   :  { %v9343_v10 = vpop.f32.mrb[218].mxu0  ;;  %9572 = vmatprep.mubr.msk.bf16.mxu1 %vm446_vm3, %v11697_v15  ;;  %v11806_v20 = vsel %vm11770_vm12, %v6440_v57, %v6500_v32 }
 0x2c2   :  { %v4552_v43 = vpop.f32.mrb[219].mxu0  ;;  %v6506_v10 = vshrl.u32 %v11148_v1, 16  ;;  %v6443_v6 = vor.u32 %v6442_v21, %v6441_v63  ;;  %v6505_v53 = vor.u32 %v6504_v19, %v6503_v54  ;;  %v12389_v54 = vld [vmem:[#allocation23_spill] sm:$0xff]  ;;  %v6513_v57 = vrot.slane %v6511_v48, 1 }
 0x2c3   :  { %v9322_v13 = vpop.f32.mrb[216].mxu1  ;;  %v6448_v19 = vrot.slane %v12389_v54, 2 }
 0x2c4   :  { %v4317_v4 = vadd.f32 %v9322_v13, %v11705_v7  ;;  %v4252_v30 = vpop.f32.mrb[217].mxu1  ;;  %9593 = vmatmul.mubr.msk.bf16.gmra.mrb[68].mxu0 %vm446_vm3, %v11787_v3  ;;  %v6508_v35 = vrot.slane %v6506_v10, 1  ;;  %v12388_v13 = vld [vmem:[#allocation19_spill] sm:$0xff] }
 0x2c5   :  { %v4315_v27 = vadd.f32 %v4252_v30, %v11707_v24  ;;  %v9323_v61 = vpop.f32.mrb[218].mxu1  ;;  %9620 = vmatprep.mubr.msk.bf16.mxu0 %vm446_vm3, %v6578_v46  ;;  %v12386_v24 = vshll.u32 %v11148_v1, 16  ;;  %v6445_v63 = vrot.slane %v12388_v13, 2  ;;  %v12390_v1 = vshll.u32 %v11155_v50, 16  ;;  %v9898_v30 = vld [vmem:[#allocation5 + $0x148] sm:$0xff]  }
 0x2c6   :  { %v11802_v26 = vadd.f32 %v9342_v62, %v4317_v4  ;;  %v4255_v40 = vpop.f32.mrb[219].mxu1  ;;  %v12387_v62 = vld [vmem:[#allocation18_spill] sm:$0xff]  ;;  %v11824_v4 = vsel %vm11770_vm12, %v6443_v6, %v6505_v53 }
 0x2c7   :  { %v11808_v7 = vadd.f32 %v4549_v58, %v4315_v27  ;;  %v9346_v43 = vpop.f32.mrb[220].mxu0  ;;  %v6509_v31 = vrot.slane %v12386_v24, 2  ;;  %v6444_v47 = vrot.slane %v12387_v62, 1  ;;  %v6447_v58 = vrot.slane %v12363_v28, 1  ;;  %v9897_v62 = vld [vmem:[#allocation5 + $0xd8] sm:$0xff]  }
 0x2c8   :  { %9573 = vmatmul.mubr.msk.bf16.gmra.mrb[68].mxu1 %vm446_vm3, %v11757_v59  ;;  %v4565_v46 = vpop.f32.mrb[221].mxu0  ;;  %v6514_v32 = vrot.slane %v12390_v1, 2  ;;  %v6516_v40 = vshrl.u32 %v11185_v18, 16  ;;  %v12393_v1 = vld [vmem:[#allocation17_spill] sm:$0xff] }
 0x2c9   :  { %v9347_v21 = vpop.f32.mrb[222].mxu0  ;;  %9600 = vmatprep.mubr.msk.bf16.mxu1 %vm446_vm3, %v11601_v16  ;;  %v6510_v61 = vor.u32 %v6509_v31, %v6508_v35  ;;  %v6446_v28 = vor.u32 %v6445_v63, %v6444_v47  ;;  %v6449_v6 = vor.u32 %v6448_v19, %v6447_v58  ;;  %v11839_v63 = vld [vmem:[#allocation5 + $0x220] sm:$0xff]   ;;  %v12392_v19 = vld [vmem:[#allocation13_spill] sm:$0xff] }
 0x2ca   :  { %v4568_v10 = vpop.f32.mrb[223].mxu0  ;;  %v6515_v53 = vor.u32 %v6514_v32, %v6513_v57  ;;  %v6451_v57 = vrot.slane %v12392_v19, 2  ;;  %v6454_v32 = vrot.slane %v12393_v1, 2 }
 0x2cb   :  { %v9326_v27 = vpop.f32.mrb[220].mxu1  ;;  %v12394_v10 = vshll.u32 %v11192_v44, 16 }
 0x2cc   :  { %v4321_v16 = vadd.f32 %v9326_v27, %v11720_v34  ;;  %v4268_v24 = vpop.f32.mrb[221].mxu1  ;;  %9621 = vmatmul.mubr.msk.bf16.vlgmr.msra.gmra.mrb[72].mxu0 %vm446_vm3, %v11806_v20  ;;  %v6521_v34 = vshrl.u32 %v11192_v44, 16  ;;  %v11854_v54 = vsel %vm11770_vm12, %v6449_v6, %v6515_v53 }
 0x2cd   :  { %v4319_v50 = vadd.f32 %v4268_v24, %v11722_v5  ;;  %v9327_v48 = vpop.f32.mrb[222].mxu1  ;;  %9657 = vmatpush3.bf16.msra.mxu0 %v11724_v45  ;;  %9624 = vmatprep.mubr.msk.bf16.mxu0 %vm446_vm3, %v11824_v4  ;;  %v6518_v5 = vrot.slane %v6516_v40, 1  ;;  %v12391_v45 = vshll.u32 %v11185_v18, 16  ;;  %v6450_v18 = vrot.slane %v10069_v17, 1 }
 0x2ce   :  { %v11834_v35 = vadd.f32 %v9346_v43, %v4321_v16  ;;  %v4271_v31 = vpop.f32.mrb[223].mxu1  ;;  %9658 = vmatprep.subr.bf16.mxu0 %v9898_v30  ;;  %v6524_v27 = vrot.slane %v12394_v10, 2 }
 0x2cf   :  { %v11837_v13 = vadd.f32 %v4565_v46, %v4319_v50  ;;  %v9350_v47 = vpop.f32.mrb[224].mxu0  ;;  %v6519_v21 = vrot.slane %v12391_v45, 2  ;;  %v11850_v46 = vsel %vm11770_vm12, %v6446_v28, %v6510_v61  ;;  %v11862_v61 = vld [vmem:[#allocation5 + $0x1b0] sm:$0xff]   ;;  %v6452_v44 = vor.u32 %v6451_v57, %v6450_v18 }
 0x2d0   :  { %9601 = vmatmul.mubr.msk.bf16.vlgmr.msra.gmra.mrb[72].mxu1 %vm446_vm3, %v11604_v22  ;;  %v4581_v58 = vpop.f32.mrb[225].mxu0  ;;  %v6526_v28 = vshrl.u32 %v11227_v56, 16  ;;  %v6456_v45 = vrot.slane %v12336_v52, 1 }
 0x2d1   :  { %9637 = vmatpush3.bf16.msra.mxu1 %v11731_v39  ;;  %v9351_v43 = vpop.f32.mrb[226].mxu0  ;;  %9604 = vmatprep.mubr.msk.bf16.mxu1 %vm446_vm3, %v11623_v14  ;;  %v6453_v39 = vrot.slane %v10121_v55, 1  ;;  %v6523_v14 = vrot.slane %v6521_v34, 1 }
 0x2d2   :  { %v4584_v22 = vpop.f32.mrb[227].mxu0  ;;  %9638 = vmatprep.subr.bf16.mxu1 %v9897_v62  ;;  %9659 = vmatpush3.bf16.msra.mxu0 %v9898_v30  ;;  %v6520_v30 = vor.u32 %v6519_v21, %v6518_v5  ;;  %v12396_v21 = vld [vmem:[#allocation21_spill] sm:$0xff]  ;;  %v6528_v43 = vrot.slane %v6526_v28, 1 }
 0x2d3   :  { %v9330_v40 = vpop.f32.mrb[224].mxu1  ;;  %9696 = vmatprep.subr.bf16.mxu0 %v11839_v63  ;;  %v6455_v6 = vor.u32 %v6454_v32, %v6453_v39 }
 0x2d4   :  { %v4325_v17 = vadd.f32 %v9330_v40, %v11741_v8  ;;  %v4284_v16 = vpop.f32.mrb[225].mxu1  ;;  %9625 = vmatmul.mubr.msk.bf16.gmra.mrb[76].mxu0 %vm446_vm3, %v11850_v46  ;;  %v6525_v8 = vor.u32 %v6524_v27, %v6523_v14 }
 0x2d5   :  { %v4323_v55 = vadd.f32 %v4284_v16, %v11746_v49  ;;  %v9331_v24 = vpop.f32.mrb[226].mxu1  ;;  %9628 = vmatprep.mubr.msk.bf16.mxu0 %vm446_vm3, %v11854_v54  ;;  %9639 = vmatpush3.bf16.msra.mxu1 %v9897_v62  ;;  %v12395_v49 = vshll.u32 %v11227_v56, 16 }
 0x2d6   :  { %v11872_v50 = vadd.f32 %v9350_v47, %v4325_v17  ;;  %v4287_v48 = vpop.f32.mrb[227].mxu1  ;;  %9676 = vmatprep.subr.bf16.mxu1 %v11862_v61  ;;  %v11885_v47 = vsel %vm11770_vm12, %v6452_v44, %v6520_v30  ;;  %v11891_v56 = vsel %vm11770_vm12, %v6455_v6, %v6525_v8  ;;  %v5453_v17 = vrot.slane %v11486_v60, 1 }
 0x2d7   :  { %v11875_v53 = vadd.f32 %v4581_v58, %v4323_v55  ;;  %v9354_v31 = vpop.f32.mrb[228].mxu0  ;;  %v6529_v34 = vrot.slane %v12395_v49, 2  ;;  %v6457_v58 = vrot.slane %v12396_v21, 2 }
 0x2d8   :  { %9605 = vmatmul.mubr.msk.bf16.gmra.mrb[76].mxu1 %vm446_vm3, %v11678_v23  ;;  %v4597_v5 = vpop.f32.mrb[229].mxu0 }
 0x2d9   :  { %v9355_v62 = vpop.f32.mrb[230].mxu0  ;;  %9608 = vmatprep.mubr.msk.bf16.mxu1 %vm446_vm3, %v11697_v15  ;;  %v6458_v52 = vor.u32 %v6457_v58, %v6456_v45  ;;  %v6530_v39 = vor.u32 %v6529_v34, %v6528_v43  ;;  %v9902_v34 = vld [vmem:[#allocation5 + $0x228] sm:$0xff]  }
 0x2da   :  { %v4600_v18 = vpop.f32.mrb[231].mxu0 }
 0x2db   :  { %v9334_v23 = vpop.f32.mrb[228].mxu1  ;;  %v11911_v16 = vsel %vm11770_vm12, %v6458_v52, %v6530_v39  ;;  %v9901_v18 = vld [vmem:[#allocation5 + $0x1b8] sm:$0xff]   ;;  %v12399_v39 = vld [vmem:[#allocation25_spill] sm:$0xff] }
 0x2dc   :  { %v4329_v19 = vadd.f32 %v9334_v23, %v11774_v42  ;;  %v4300_v57 = vpop.f32.mrb[229].mxu1  ;;  %9629 = vmatmul.mubr.msk.bf16.gmra.mrb[80].mxu0 %vm446_vm3, %v11885_v47  ;;  %v6531_v23 = vshrl.u32 %v11295_v41, 16 }
 0x2dd   :  { %v4327_v15 = vadd.f32 %v4300_v57, %v11780_v0  ;;  %v9335_v22 = vpop.f32.mrb[230].mxu1  ;;  %9632 = vmatprep.mubr.msk.bf16.mxu0 %vm446_vm3, %v11891_v56  ;;  %v12397_v0 = vld [vmem:[#allocation37_spill] sm:$0xff]  ;;  %v11939_v57 = vld [vmem:[#allocation5 + $0x300] sm:$0xff]  }
 0x2de   :  { %v11899_v1 = vadd.f32 %v9354_v31, %v4329_v19  ;;  %v4303_v32 = vpop.f32.mrb[231].mxu1  ;;  %v5439_v40 = vrot.slane %v12397_v0, 1  ;;  %v12398_v22 = vld [vmem:[#allocation24_spill] sm:$0xff]  ;;  %v11950_v0 = vld [vmem:[#allocation5 + $0x290] sm:$0xff]  }
 0x2df   :  { %v11901_v14 = vadd.f32 %v4597_v5, %v4327_v15  ;;  %v9382_v10 = vpop.f32.mrb[232].mxu0  ;;  %v6459_v52 = vrot.slane %v12398_v22, 1  ;;  %v6460_v32 = vrot.slane %v12399_v39, 2 }
 0x2e0   :  { %9609 = vmatmul.mubr.msk.bf16.gmra.mrb[80].mxu1 %vm446_vm3, %v11757_v59  ;;  %v4815_v42 = vpop.f32.mrb[233].mxu0 }
 0x2e1   :  { %v9383_v27 = vpop.f32.mrb[234].mxu0  ;;  %9612 = vmatprep.mubr.msk.bf16.mxu1 %vm446_vm3, %v11787_v3  ;;  %v5496_v3 = vsel %vm5454_vm10, %v5439_v40, %v5453_v17  ;;  %v6536_v17 = vshrl.u32 %v11317_v36, 16 }
 0x2e2   :  { %v4818_v30 = vpop.f32.mrb[235].mxu0 }
 0x2e3   :  { %v9362_v55 = vpop.f32.mrb[232].mxu1 }
 0x2e4   :  { %v4747_v24 = vadd.f32 %v9362_v55, %v11802_v26  ;;  %v4682_v44 = vpop.f32.mrb[233].mxu1  ;;  %9633 = vmatmul.mubr.msk.bf16.gmra.mrb[84].mxu0 %vm446_vm3, %v11911_v16 }
 0x2e5   :  { %v4745_v59 = vadd.f32 %v4682_v44, %v11808_v7  ;;  %v9363_v28 = vpop.f32.mrb[234].mxu1  ;;  %9660 = vmatprep.mubr.msk.bf16.mxu0 %vm446_vm3, %v11824_v4  ;;  %v6461_v44 = vor.u32 %v6460_v32, %v6459_v52 }
 0x2e6   :  { %v11920_v48 = vadd.f32 %v9382_v10, %v4747_v24  ;;  %v4685_v6 = vpop.f32.mrb[235].mxu1  ;;  %v6533_v10 = vrot.slane %v6531_v23, 1 }
 0x2e7   :  { %v11922_v8 = vadd.f32 %v4815_v42, %v4745_v59  ;;  %v9386_v31 = vpop.f32.mrb[236].mxu0  ;;  %v12400_v42 = vshll.u32 %v11295_v41, 16  ;;  %v12401_v6 = vshll.u32 %v11317_v36, 16 }
 0x2e8   :  { %9613 = vmatmul.mubr.msk.bf16.gmra.mrb[84].mxu1 %vm446_vm3, %v5496_v3  ;;  %v4831_v26 = vpop.f32.mrb[237].mxu0 }
 0x2e9   :  { %v9387_v49 = vpop.f32.mrb[238].mxu0  ;;  %9640 = vmatprep.mubr.msk.bf16.mxu1 %vm446_vm3, %v11806_v20  ;;  %v6534_v27 = vrot.slane %v12400_v42, 2 }
 0x2ea   :  { %v4834_v7 = vpop.f32.mrb[239].mxu0  ;;  %v12402_v49 = vld [vmem:[#allocation28_spill] sm:$0xff] }
 0x2eb   :  { %v9366_v5 = vpop.f32.mrb[236].mxu1  ;;  %v6535_v59 = vor.u32 %v6534_v27, %v6533_v10  ;;  %v6462_v7 = vrot.slane %v12402_v49, 1 }
 0x2ec   :  { %v4751_v62 = vadd.f32 %v9366_v5, %v11834_v35  ;;  %v4698_v45 = vpop.f32.mrb[237].mxu1  ;;  %9661 = vmatmul.mubr.msk.bf16.vlgmr.msra.gmra.mrb[88].mxu0 %vm446_vm3, %v11850_v46 }
 0x2ed   :  { %v4749_v21 = vadd.f32 %v4698_v45, %v11837_v13  ;;  %v9367_v58 = vpop.f32.mrb[238].mxu1  ;;  %9697 = vmatpush3.bf16.msra.mxu0 %v11839_v63  ;;  %9664 = vmatprep.mubr.msk.bf16.mxu0 %vm446_vm3, %v11854_v54  ;;  %v11975_v45 = vsel %vm11770_vm12, %v6461_v44, %v6535_v59 }
 0x2ee   :  { %v11934_v43 = vadd.f32 %v9386_v31, %v4751_v62  ;;  %v4701_v20 = vpop.f32.mrb[239].mxu1  ;;  %9698 = vmatprep.subr.bf16.mxu0 %v9902_v34  ;;  %v6539_v31 = vrot.slane %v12401_v6, 2 }
 0x2ef   :  { %v11937_v35 = vadd.f32 %v4831_v26, %v4749_v21  ;;  %v9390_v19 = vpop.f32.mrb[240].mxu0 }
 0x2f0   :  { %9641 = vmatmul.mubr.msk.bf16.vlgmr.msra.gmra.mrb[88].mxu1 %vm446_vm3, %v11824_v4  ;;  %v4847_v13 = vpop.f32.mrb[241].mxu0 }
 0x2f1   :  { %9677 = vmatpush3.bf16.msra.mxu1 %v11862_v61  ;;  %v9391_v63 = vpop.f32.mrb[242].mxu0  ;;  %9644 = vmatprep.mubr.msk.bf16.mxu1 %vm446_vm3, %v11850_v46 }
 0x2f2   :  { %v4850_v15 = vpop.f32.mrb[243].mxu0  ;;  %9678 = vmatprep.subr.bf16.mxu1 %v9901_v18  ;;  %9699 = vmatpush3.bf16.msra.mxu0 %v9902_v34  ;;  %v12403_v34 = vld [vmem:[#allocation29_spill] sm:$0xff] }
 0x2f3   :  { %v9370_v4 = vpop.f32.mrb[240].mxu1  ;;  %9736 = vmatprep.subr.bf16.mxu0 %v11939_v57  ;;  %v6463_v5 = vrot.slane %v12403_v34, 2  ;;  %v12404_v34 = vld [vmem:[#allocation30_spill] sm:$0xff] }
 0x2f4   :  { %v4755_v61 = vadd.f32 %v9370_v4, %v11872_v50  ;;  %v4714_v40 = vpop.f32.mrb[241].mxu1  ;;  %9665 = vmatmul.mubr.msk.bf16.gmra.mrb[92].mxu0 %vm446_vm3, %v11885_v47 }
 0x2f5   :  { %v4753_v30 = vadd.f32 %v4714_v40, %v11875_v53  ;;  %v9371_v55 = vpop.f32.mrb[242].mxu1  ;;  %9668 = vmatprep.mubr.msk.bf16.mxu0 %vm446_vm3, %v11891_v56  ;;  %9679 = vmatpush3.bf16.msra.mxu1 %v9901_v18  ;;  %v6538_v53 = vrot.slane %v6536_v17, 1 }
 0x2f6   :  { %v11960_v41 = vadd.f32 %v9390_v19, %v4755_v61  ;;  %v4717_v24 = vpop.f32.mrb[243].mxu1  ;;  %9716 = vmatprep.subr.bf16.mxu1 %v11950_v0  ;;  %v6464_v19 = vor.u32 %v6463_v5, %v6462_v7  ;;  %v6465_v5 = vrot.slane %v12404_v34, 1 }
 0x2f7   :  { %v11963_v50 = vadd.f32 %v4847_v13, %v4753_v30  ;;  %v9394_v28 = vpop.f32.mrb[244].mxu0  ;;  %v6540_v36 = vor.u32 %v6539_v31, %v6538_v53  ;;  %v9905_v31 = vld [vmem:[#allocation5 + $0x298] sm:$0xff]  }
 0x2f8   :  { %9645 = vmatmul.mubr.msk.bf16.gmra.mrb[92].mxu1 %vm446_vm3, %v11854_v54  ;;  %v4863_v3 = vpop.f32.mrb[245].mxu0 }
 0x2f9   :  { %v9395_v26 = vpop.f32.mrb[246].mxu0  ;;  %9648 = vmatprep.mubr.msk.bf16.mxu1 %vm446_vm3, %v11885_v47 }
 0x2fa   :  { %v4866_v62 = vpop.f32.mrb[247].mxu0  ;;  %v6541_v26 = vshrl.u32 %v11381_v12, 16 }
 0x2fb   :  { %v9374_v21 = vpop.f32.mrb[244].mxu1  ;;  %v12405_v62 = vld [vmem:[#allocation31_spill] sm:$0xff] }
 0x2fc   :  { %v4759_v58 = vadd.f32 %v9374_v21, %v11899_v1  ;;  %v4730_v20 = vpop.f32.mrb[245].mxu1  ;;  %9669 = vmatmul.mubr.msk.bf16.gmra.mrb[96].mxu0 %vm446_vm3, %v11911_v16  ;;  %v6466_v21 = vrot.slane %v12405_v62, 2 }
 0x2fd   :  { %v4757_v18 = vadd.f32 %v4730_v20, %v11901_v14  ;;  %v9375_v23 = vpop.f32.mrb[246].mxu1  ;;  %9672 = vmatprep.mubr.msk.bf16.mxu0 %vm446_vm3, %v11975_v45  ;;  %v11993_v14 = vsel %vm11770_vm12, %v6464_v19, %v6540_v36  ;;  %v12406_v20 = vshll.u32 %v11381_v12, 16 }
 0x2fe   :  { %v11983_v13 = vadd.f32 %v9394_v28, %v4759_v58  ;;  %v4733_v63 = vpop.f32.mrb[247].mxu1  ;;  %v6543_v58 = vrot.slane %v6541_v26, 1 }
 0x2ff   :  { %v11985_v15 = vadd.f32 %v4863_v3, %v4757_v18  ;;  %v9422_v22 = vpop.f32.mrb[248].mxu0  ;;  %v6544_v36 = vrot.slane %v12406_v20, 2  ;;  %v6546_v63 = vshrl.u32 %v11400_v29, 16 }
 0x300   :  { %9649 = vmatmul.mubr.msk.bf16.gmra.mrb[96].mxu1 %vm446_vm3, %v11891_v56  ;;  %v5081_v1 = vpop.f32.mrb[249].mxu0 }
 0x301   :  { %v9423_v52 = vpop.f32.mrb[250].mxu0  ;;  %9652 = vmatprep.mubr.msk.bf16.mxu1 %vm446_vm3, %v11911_v16 }
 0x302   :  { %v5084_v39 = vpop.f32.mrb[251].mxu0  ;;  %v6545_v52 = vor.u32 %v6544_v36, %v6543_v58 }
 0x303   :  { %v9402_v32 = vpop.f32.mrb[248].mxu1 }
 0x304   :  { %v5013_v10 = vadd.f32 %v9402_v32, %v11920_v48  ;;  %v4948_v42 = vpop.f32.mrb[249].mxu1  ;;  %9673 = vmatmul.mubr.msk.bf16.gmra.mrb[100].mxu0 %vm446_vm3, %v11993_v14 }
 0x305   :  { %v5011_v27 = vadd.f32 %v4948_v42, %v11922_v8  ;;  %v9403_v4 = vpop.f32.mrb[250].mxu1  ;;  %9700 = vmatprep.mubr.msk.bf16.mxu0 %vm446_vm3, %v11854_v54  ;;  %v9906_v8 = vld [vmem:[#allocation5 + $0x308] sm:$0xff]   ;;  %v12407_v42 = vld [vmem:[#allocation33_spill] sm:$0xff] }
 0x306   :  { %v12001_v61 = vadd.f32 %v9422_v22, %v5013_v10  ;;  %v4951_v40 = vpop.f32.mrb[251].mxu1  ;;  %v6468_v10 = vrot.slane %v12372_v2, 1  ;;  %v6548_v4 = vrot.slane %v6546_v63, 1 }
 0x307   :  { %v12003_v17 = vadd.f32 %v5081_v1, %v5011_v27  ;;  %v9426_v30 = vpop.f32.mrb[252].mxu0  ;;  %v6467_v1 = vor.u32 %v6466_v21, %v6465_v5  ;;  %v6469_v27 = vrot.slane %v12407_v42, 2  ;;  %v12408_v40 = vshll.u32 %v11400_v29, 16 }
 0x308   :  { %9653 = vmatmul.mubr.msk.bf16.gmra.mrb[100].mxu1 %vm446_vm3, %v11975_v45  ;;  %v5097_v48 = vpop.f32.mrb[253].mxu0  ;;  %v12409_v42 = vshll.u32 %v11467_v11, 16 }
 0x309   :  { %v9427_v55 = vpop.f32.mrb[254].mxu0  ;;  %9680 = vmatprep.mubr.msk.bf16.mxu1 %vm446_vm3, %v11850_v46  ;;  %v6470_v29 = vor.u32 %v6469_v27, %v6468_v10 }
 0x30a   :  { %v5100_v24 = vpop.f32.mrb[255].mxu0  ;;  %v12051_v55 = vsel %vm11770_vm12, %v6467_v1, %v6545_v52  ;;  %v6551_v1 = vshrl.u32 %v11467_v11, 16  ;;  %v6554_v27 = vrot.slane %v12409_v42, 2 }
 0x30b   :  { %v9406_v44 = vpop.f32.mrb[252].mxu1 }
 0x30c   :  { %v5017_v59 = vadd.f32 %v9406_v44, %v11934_v43  ;;  %v4964_v28 = vpop.f32.mrb[253].mxu1  ;;  %9701 = vmatmul.mubr.msk.bf16.vlgmr.msra.gmra.mrb[104].mxu0 %vm446_vm3, %v11885_v47  ;;  %v6553_v10 = vrot.slane %v6551_v1, 1 }
 0x30d   :  { %v5015_v3 = vadd.f32 %v4964_v28, %v11937_v35  ;;  %v9407_v53 = vpop.f32.mrb[254].mxu1  ;;  %9737 = vmatpush3.bf16.msra.mxu0 %v11939_v57  ;;  %9704 = vmatprep.mubr.msk.bf16.mxu0 %vm446_vm3, %v11891_v56 }
 0x30e   :  { %v12016_v6 = vadd.f32 %v9426_v30, %v5017_v59  ;;  %v4967_v46 = vpop.f32.mrb[255].mxu1  ;;  %9738 = vmatprep.subr.bf16.mxu0 %v9906_v8  ;;  %v6549_v30 = vrot.slane %v12408_v40, 2  ;;  %v6555_v11 = vor.u32 %v6554_v27, %v6553_v10 }
 0x30f   :  { %v12019_v43 = vadd.f32 %v5097_v48, %v5015_v3  ;;  %v9430_v49 = vpop.f32.mrb[0].mxu0 }
 0x310   :  { %9681 = vmatmul.mubr.msk.bf16.vlgmr.msra.gmra.mrb[104].mxu1 %vm446_vm3, %v11854_v54  ;;  %v5113_v35 = vpop.f32.mrb[1].mxu0  ;;  %v6550_v28 = vor.u32 %v6549_v30, %v6548_v4 }
 0x311   :  { %9717 = vmatpush3.bf16.msra.mxu1 %v11950_v0  ;;  %v9431_v57 = vpop.f32.mrb[2].mxu0  ;;  %9684 = vmatprep.mubr.msk.bf16.mxu1 %vm446_vm3, %v11885_v47 }
 0x312   :  { %v5116_v7 = vpop.f32.mrb[3].mxu0  ;;  %9718 = vmatprep.subr.bf16.mxu1 %v9905_v31  ;;  %9739 = vmatpush3.bf16.msra.mxu0 %v9906_v8 }
 0x313   :  { %v9410_v18 = vpop.f32.mrb[0].mxu1 }
 0x314   :  { %v5021_v54 = vadd.f32 %v9410_v18, %v11960_v41  ;;  %v4980_v23 = vpop.f32.mrb[1].mxu1  ;;  %9705 = vmatmul.mubr.msk.bf16.gmra.mrb[108].mxu0 %vm446_vm3, %v11911_v16 }
 0x315   :  { %v5019_v0 = vadd.f32 %v4980_v23, %v11963_v50  ;;  %v9411_v19 = vpop.f32.mrb[2].mxu1  ;;  %9708 = vmatprep.mubr.msk.bf16.mxu0 %vm446_vm3, %v11975_v45  ;;  %9719 = vmatpush3.bf16.msra.mxu1 %v9905_v31 }
 0x316   :  { %v12037_v22 = vadd.f32 %v9430_v49, %v5021_v54  ;;  %v4983_v12 = vpop.f32.mrb[3].mxu1 }
 0x317   :  { %v12039_v39 = vadd.f32 %v5113_v35, %v5019_v0  ;;  %v9434_v41 = vpop.f32.mrb[4].mxu0 }
 0x318   :  { %9685 = vmatmul.mubr.msk.bf16.gmra.mrb[108].mxu1 %vm446_vm3, %v11891_v56  ;;  %v5129_v32 = vpop.f32.mrb[5].mxu0 }
 0x319   :  { %v9435_v50 = vpop.f32.mrb[6].mxu0  ;;  %9688 = vmatprep.mubr.msk.bf16.mxu1 %vm446_vm3, %v11911_v16 }
 0x31a   :  { %v5132_v48 = vpop.f32.mrb[7].mxu0  ;;  %v6472_v50 = vrot.slane %v12353_v9, 2 }
 0x31b   :  { %v9414_v24 = vpop.f32.mrb[4].mxu1 }
 0x31c   :  { %v5025_v8 = vadd.f32 %v9414_v24, %v11983_v13  ;;  %v4996_v44 = vpop.f32.mrb[5].mxu1  ;;  %9709 = vmatmul.mubr.msk.bf16.gmra.mrb[112].mxu0 %vm446_vm3, %v11993_v14 }
 0x31d   :  { %v5023_v2 = vadd.f32 %v4996_v44, %v11985_v15  ;;  %v9415_v59 = vpop.f32.mrb[6].mxu1  ;;  %9712 = vmatprep.mubr.msk.bf16.mxu0 %vm446_vm3, %v12051_v55  ;;  %v12069_v15 = vsel %vm11770_vm12, %v6470_v29, %v6550_v28  ;;  %v6559_v28 = vrot.slane %v4440_v38, 2 }
 0x31e   :  { %v12059_v3 = vadd.f32 %v9434_v41, %v5025_v8  ;;  %v4999_v53 = vpop.f32.mrb[7].mxu1  ;;  %v6475_v59 = vrot.slane %v10424_v37, 2 }
 0x31f   :  { %v12061_v46 = vadd.f32 %v5129_v32, %v5023_v2  ;;  %v9462_v31 = vpop.f32.mrb[8].mxu0  ;;  %v6471_v32 = vrot.slane %v12351_v51, 1  ;;  %v6556_v51 = vshrl.u32 %v11486_v60, 16 }
 0x320   :  { %9689 = vmatmul.mubr.msk.bf16.gmra.mrb[112].mxu1 %vm446_vm3, %v11975_v45  ;;  %v5347_v13 = vpop.f32.mrb[9].mxu0 }
 0x321   :  { %v9463_v26 = vpop.f32.mrb[10].mxu0  ;;  %9692 = vmatprep.mubr.msk.bf16.mxu1 %vm446_vm3, %v11993_v14  ;;  %v6473_v24 = vor.u32 %v6472_v50, %v6471_v32  ;;  %v6558_v29 = vrot.slane %v6556_v51, 1 }
 0x322   :  { %v5350_v49 = vpop.f32.mrb[11].mxu0 }
 0x323   :  { %v9442_v35 = vpop.f32.mrb[8].mxu1  ;;  %v6560_v49 = vor.u32 %v6559_v28, %v6558_v29 }
 0x324   :  { %v5279_v57 = vadd.f32 %v9442_v35, %v12001_v61  ;;  %v5214_v7 = vpop.f32.mrb[9].mxu1  ;;  %9713 = vmatmul.mubr.msk.bf16.gmra.mrb[116].mxu0 %vm446_vm3, %v12069_v15 }
 0x325   :  { %v5277_v34 = vadd.f32 %v5214_v7, %v12003_v17  ;;  %v9443_v5 = vpop.f32.mrb[10].mxu1  ;;  %9740 = vmatprep.mubr.msk.bf16.mxu0 %vm446_vm3, %v11891_v56 }
 0x326   :  { %v12077_v62 = vadd.f32 %v9462_v31, %v5279_v57  ;;  %v5217_v21 = vpop.f32.mrb[11].mxu1  ;;  %v6590_v31 = vsel %vm11770_vm12, %v6473_v24, %v6555_v11 }
 0x327   :  { %v12079_v58 = vadd.f32 %v5347_v13, %v5277_v34  ;;  %v9466_v20 = vpop.f32.mrb[12].mxu0 }
 0x328   :  { %9693 = vmatmul.mubr.msk.bf16.gmra.mrb[116].mxu1 %vm446_vm3, %v12051_v55  ;;  %v5363_v61 = vpop.f32.mrb[13].mxu0 }
 0x329   :  { %v9467_v36 = vpop.f32.mrb[14].mxu0  ;;  %9720 = vmatprep.mubr.msk.bf16.mxu1 %vm446_vm3, %v11885_v47 }
 0x32a   :  { %v5366_v18 = vpop.f32.mrb[15].mxu0 }
 0x32b   :  { %v9446_v17 = vpop.f32.mrb[12].mxu1 }
 0x32c   :  { %v5283_v54 = vadd.f32 %v9446_v17, %v12016_v6  ;;  %v5230_v23 = vpop.f32.mrb[13].mxu1  ;;  %9741 = vmatmul.mubr.msk.bf16.vlgmr.msra.gmra.mrb[120].mxu0 %vm446_vm3, %v11911_v16 }
 0x32d   :  { %v5281_v0 = vadd.f32 %v5230_v23, %v12019_v43  ;;  %v9447_v19 = vpop.f32.mrb[14].mxu1  ;;  %9744 = vmatprep.mubr.msk.bf16.mxu0 %vm446_vm3, %v11975_v45 }
 0x32e   :  { %v12091_v63 = vadd.f32 %v9466_v20, %v5283_v54  ;;  %v5233_v12 = vpop.f32.mrb[15].mxu1 }
 0x32f   :  { %v12094_v47 = vadd.f32 %v5363_v61, %v5281_v0  ;;  %v9470_v52 = vpop.f32.mrb[16].mxu0 }
 0x330   :  { %9721 = vmatmul.mubr.msk.bf16.vlgmr.msra.gmra.mrb[120].mxu1 %vm446_vm3, %v11891_v56  ;;  %v5379_v6 = vpop.f32.mrb[17].mxu0 }
 0x331   :  { %v9471_v41 = vpop.f32.mrb[18].mxu0  ;;  %9724 = vmatprep.mubr.msk.bf16.mxu1 %vm446_vm3, %v11911_v16 }
 0x332   :  { %v5382_v43 = vpop.f32.mrb[19].mxu0 }
 0x333   :  { %v9450_v4 = vpop.f32.mrb[16].mxu1 }
 0x334   :  { %v5287_v40 = vadd.f32 %v9450_v4, %v12037_v22  ;;  %v5246_v30 = vpop.f32.mrb[17].mxu1  ;;  %9745 = vmatmul.mubr.msk.bf16.gmra.mrb[124].mxu0 %vm446_vm3, %v11993_v14 }
 0x335   :  { %v5285_v56 = vadd.f32 %v5246_v30, %v12039_v39  ;;  %v9451_v48 = vpop.f32.mrb[18].mxu1  ;;  %9748 = vmatprep.mubr.msk.bf16.mxu0 %vm446_vm3, %v12051_v55  ;;  %v6474_v39 = vrot.slane %v10421_v25, 1 }
 0x336   :  { %v5420_v9 = vadd.f32 %v9470_v52, %v5287_v40  ;;  %v5249_v16 = vpop.f32.mrb[19].mxu1 }
 0x337   :  { %v5418_v8 = vadd.f32 %v5379_v6, %v5285_v56  ;;  %v9474_v44 = vpop.f32.mrb[20].mxu0  ;;  %v6476_v37 = vor.u32 %v6475_v59, %v6474_v39 }
 0x338   :  { %9725 = vmatmul.mubr.msk.bf16.gmra.mrb[124].mxu1 %vm446_vm3, %v11975_v45  ;;  %v5395_v22 = vpop.f32.mrb[21].mxu0 }
 0x339   :  { %v9475_v2 = vpop.f32.mrb[22].mxu0  ;;  %9728 = vmatprep.mubr.msk.bf16.mxu1 %vm446_vm3, %v11993_v14 }
 0x33a   :  { %v5398_v53 = vpop.f32.mrb[23].mxu0 }
 0x33b   :  { %v9454_v13 = vpop.f32.mrb[20].mxu1 }
 0x33c   :  { %v5291_v45 = vadd.f32 %v9454_v13, %v12059_v3  ;;  %v5262_v26 = vpop.f32.mrb[21].mxu1  ;;  %9749 = vmatmul.mubr.msk.bf16.gmra.mrb[128].mxu0 %vm446_vm3, %v12069_v15 }
 0x33d   :  { %v5289_v14 = vadd.f32 %v5262_v26, %v12061_v46  ;;  %v9455_v25 = vpop.f32.mrb[22].mxu1  ;;  %9752 = vmatprep.mubr.msk.bf16.mxu0 %vm446_vm3, %v6590_v31  ;;  %v6591_v46 = vsel %vm11770_vm12, %v6476_v37, %v6560_v49 }
 0x33e   :  { %v5424_v60 = vadd.f32 %v9474_v44, %v5291_v45  ;;  %v5265_v38 = vpop.f32.mrb[23].mxu1 }
 0x33f   :  { %v5422_v35 = vadd.f32 %v5395_v22, %v5289_v14  ;;  %v9502_v57 = vpop.f32.mrb[24].mxu0 }
 0x340   :  { %9729 = vmatmul.mubr.msk.bf16.gmra.mrb[128].mxu1 %vm446_vm3, %v12051_v55  ;;  %v5696_v7 = vpop.f32.mrb[25].mxu0 }
 0x341   :  { %v9503_v3 = vpop.f32.mrb[26].mxu0  ;;  %9732 = vmatprep.mubr.msk.bf16.mxu1 %vm446_vm3, %v12069_v15 }
 0x342   :  { %v5699_v34 = vpop.f32.mrb[27].mxu0 }
 0x343   :  { %v9482_v5 = vpop.f32.mrb[24].mxu1 }
 0x344   :  { %v5629_v21 = vadd.f32 %v9482_v5, %v12077_v62  ;;  %v5564_v20 = vpop.f32.mrb[25].mxu1  ;;  %9753 = vmatmul.mubr.msk.bf16.gmra.mrb[132].mxu0 %vm446_vm3, %v6591_v46 }
 0x345   :  { %v5627_v61 = vadd.f32 %v5564_v20, %v12079_v58  ;;  %v9483_v36 = vpop.f32.mrb[26].mxu1 }
 0x346   :  { %v5761_v18 = vadd.f32 %v9502_v57, %v5629_v21  ;;  %v5567_v55 = vpop.f32.mrb[27].mxu1 }
 0x347   :  { %v5759_v17 = vadd.f32 %v5696_v7, %v5627_v61  ;;  %v9506_v54 = vpop.f32.mrb[28].mxu0 }
 0x348   :  { %9733 = vmatmul.mubr.msk.bf16.gmra.mrb[132].mxu1 %vm446_vm3, %v6590_v31  ;;  %v5712_v15 = vpop.f32.mrb[29].mxu0 }
 0x349   :  { %v9507_v23 = vpop.f32.mrb[30].mxu0 }
 0x34a   :  { %v5715_v33 = vpop.f32.mrb[31].mxu0 }
 0x34b   :  { %v9486_v0 = vpop.f32.mrb[28].mxu1 }
 0x34c   :  { %v5633_v19 = vadd.f32 %v9486_v0, %v12091_v63  ;;  %v5580_v12 = vpop.f32.mrb[29].mxu1 }
 0x34d   :  { %v5631_v62 = vadd.f32 %v5580_v12, %v12094_v47  ;;  %v9487_v1 = vpop.f32.mrb[30].mxu1 }
 0x34e   :  { %v5765_v52 = vadd.f32 %v9506_v54, %v5633_v19  ;;  %v5583_v6 = vpop.f32.mrb[31].mxu1 }
 0x34f   :  { %v5763_v58 = vadd.f32 %v5712_v15, %v5631_v62  ;;  %v9510_v41 = vpop.f32.mrb[32].mxu0 }
 0x350   :  { %v5728_v43 = vpop.f32.mrb[33].mxu0 }
 0x351   :  { %v9511_v32 = vpop.f32.mrb[34].mxu0 }
 0x352   :  { %v5731_v50 = vpop.f32.mrb[35].mxu0 }
 0x353   :  { %v9490_v10 = vpop.f32.mrb[32].mxu1 }
 0x354   :  { %v5637_v42 = vadd.f32 %v9490_v10, %v5420_v9  ;;  %v5596_v27 = vpop.f32.mrb[33].mxu1 }
 0x355   :  { %v5635_v4 = vadd.f32 %v5596_v27, %v5418_v8  ;;  %v9491_v40 = vpop.f32.mrb[34].mxu1 }
 0x356   :  { %v5769_v30 = vadd.f32 %v9510_v41, %v5637_v42  ;;  %v5599_v56 = vpop.f32.mrb[35].mxu1 }
 0x357   :  { %v5767_v48 = vadd.f32 %v5728_v43, %v5635_v4  ;;  %v9514_v63 = vpop.f32.mrb[36].mxu0 }
 0x358   :  { %v5744_v51 = vpop.f32.mrb[37].mxu0 }
 0x359   :  { %v9515_v16 = vpop.f32.mrb[38].mxu0 }
 0x35a   :  { %v5747_v47 = vpop.f32.mrb[39].mxu0 }
 0x35b   :  { %v9494_v24 = vpop.f32.mrb[36].mxu1 }
 0x35c   :  { %v5641_v11 = vadd.f32 %v9494_v24, %v5424_v60  ;;  %v5612_v44 = vpop.f32.mrb[37].mxu1 }
 0x35d   :  { %v5639_v22 = vadd.f32 %v5612_v44, %v5422_v35  ;;  %v9495_v2 = vpop.f32.mrb[38].mxu1 }
 0x35e   :  { %v5773_v39 = vadd.f32 %v9514_v63, %v5641_v11  ;;  %v5615_v59 = vpop.f32.mrb[39].mxu1 }
 0x35f   :  { %v5771_v29 = vadd.f32 %v5744_v51, %v5639_v22  ;;  %v9542_v28 = vpop.f32.mrb[40].mxu0 }
 0x360   :  { %v5960_v9 = vpop.f32.mrb[41].mxu0 }
 0x361   :  { %v9543_v53 = vpop.f32.mrb[42].mxu0 }
 0x362   :  { %v5963_v8 = vpop.f32.mrb[43].mxu0 }
 0x363   :  { %v9522_v31 = vpop.f32.mrb[40].mxu1 }
 0x364   :  { %v5893_v13 = vadd.f32 %v9522_v31, %v5761_v18  ;;  %v5828_v45 = vpop.f32.mrb[41].mxu1 }
 0x365   :  { %v5891_v26 = vadd.f32 %v5828_v45, %v5759_v17  ;;  %v9523_v14 = vpop.f32.mrb[42].mxu1 }
 0x366   :  { %v6025_v25 = vadd.f32 %v9542_v28, %v5893_v13  ;;  %v5831_v37 = vpop.f32.mrb[43].mxu1 }
 0x367   :  { %v6023_v49 = vadd.f32 %v5960_v9, %v5891_v26  ;;  %v9546_v38 = vpop.f32.mrb[44].mxu0 }
 0x368   :  { %v5976_v60 = vpop.f32.mrb[45].mxu0 }
 0x369   :  { %v9547_v57 = vpop.f32.mrb[46].mxu0 }
 0x36a   :  { %v5979_v35 = vpop.f32.mrb[47].mxu0 }
 0x36b   :  { %v9526_v7 = vpop.f32.mrb[44].mxu1 }
 0x36c   :  { %v5897_v3 = vadd.f32 %v9526_v7, %v5765_v52  ;;  %v5844_v46 = vpop.f32.mrb[45].mxu1 }
 0x36d   :  { %v5895_v34 = vadd.f32 %v5844_v46, %v5763_v58  ;;  %v9527_v5 = vpop.f32.mrb[46].mxu1 }
 0x36e   :  { %v6029_v21 = vadd.f32 %v9546_v38, %v5897_v3  ;;  %v5847_v20 = vpop.f32.mrb[47].mxu1 }
 0x36f   :  { %v6027_v61 = vadd.f32 %v5976_v60, %v5895_v34  ;;  %v9550_v36 = vpop.f32.mrb[48].mxu0 }
 0x370   :  { %v5992_v18 = vpop.f32.mrb[49].mxu0 }
 0x371   :  { %v9551_v55 = vpop.f32.mrb[50].mxu0 }
 0x372   :  { %v5995_v17 = vpop.f32.mrb[51].mxu0 }
 0x373   :  { %v9530_v54 = vpop.f32.mrb[48].mxu1 }
 0x374   :  { %v5901_v15 = vadd.f32 %v9530_v54, %v5769_v30  ;;  %v5860_v23 = vpop.f32.mrb[49].mxu1 }
 0x375   :  { %v5899_v33 = vadd.f32 %v5860_v23, %v5767_v48  ;;  %v9531_v0 = vpop.f32.mrb[50].mxu1 }
 0x376   :  { %v6033_v19 = vadd.f32 %v9550_v36, %v5901_v15  ;;  %v5863_v12 = vpop.f32.mrb[51].mxu1 }
 0x377   :  { %v6031_v62 = vadd.f32 %v5992_v18, %v5899_v33  ;;  %v9554_v1 = vpop.f32.mrb[52].mxu0 }
 0x378   :  { %v6008_v52 = vpop.f32.mrb[53].mxu0 }
 0x379   :  { %v9555_v6 = vpop.f32.mrb[54].mxu0 }
 0x37a   :  { %v6011_v58 = vpop.f32.mrb[55].mxu0 }
 0x37b   :  { %v9534_v41 = vpop.f32.mrb[52].mxu1 }
 0x37c   :  { %v5905_v43 = vadd.f32 %v9534_v41, %v5773_v39  ;;  %v5876_v32 = vpop.f32.mrb[53].mxu1 }
 0x37d   :  { %v5903_v50 = vadd.f32 %v5876_v32, %v5771_v29  ;;  %v9535_v10 = vpop.f32.mrb[54].mxu1 }
 0x37e   :  { %v6037_v42 = vadd.f32 %v9554_v1, %v5905_v43  ;;  %v5879_v27 = vpop.f32.mrb[55].mxu1 }
 0x37f   :  { %v6035_v4 = vadd.f32 %v6008_v52, %v5903_v50  ;;  %v9582_v40 = vpop.f32.mrb[56].mxu0  ;;  %v9998_v27 = vmov 0.0|0.0  }
 0x380   :  { %v6224_v30 = vpop.f32.mrb[57].mxu0  ;;  %7681 = vst.msk [vmem:[#allocation7 + $0x1c] sm:$0xf] %vm7616_vm13, %v9998_v27  ;;  %7683 = vst.msk [vmem:[#allocation7 + $0x24] sm:$0xf] %vm7616_vm13, %v9998_v27 }
 0x381   :  { %v9583_v56 = vpop.f32.mrb[58].mxu0  ;;  %7685 = vst.msk [vmem:[#allocation7 + $0x2c] sm:$0xf] %vm7616_vm13, %v9998_v27  ;;  %7687 = vst.msk [vmem:[#allocation7 + $0x34] sm:$0xf] %vm7616_vm13, %v9998_v27 }
 0x382   :  { %v6227_v48 = vpop.f32.mrb[59].mxu0  ;;  %7689 = vst.msk [vmem:[#allocation7 + $0x3c] sm:$0xf] %vm7616_vm13, %v9998_v27  ;;  %7691 = vst.msk [vmem:[#allocation7 + $0x44] sm:$0xf] %vm7616_vm13, %v9998_v27 }
 0x383   :  { %v9562_v63 = vpop.f32.mrb[56].mxu1  ;;  %7693 = vst.msk [vmem:[#allocation7 + $0x4c] sm:$0xf] %vm7616_vm13, %v9998_v27  ;;  %7695 = vst.msk [vmem:[#allocation7 + $0x54] sm:$0xf] %vm7616_vm13, %v9998_v27 }
 0x384   :  { %v6157_v51 = vadd.f32 %v9562_v63, %v6025_v25  ;;  %v6092_v16 = vpop.f32.mrb[57].mxu1 }
 0x385   :  { %v6155_v47 = vadd.f32 %v6092_v16, %v6023_v49  ;;  %v9563_v24 = vpop.f32.mrb[58].mxu1 }
 0x386   :  { %v6289_v11 = vadd.f32 %v9582_v40, %v6157_v51  ;;  %v6095_v44 = vpop.f32.mrb[59].mxu1 }
 0x387   :  { %v6287_v22 = vadd.f32 %v6224_v30, %v6155_v47  ;;  %v9586_v2 = vpop.f32.mrb[60].mxu0 }
 0x388   :  { %v6240_v39 = vpop.f32.mrb[61].mxu0 }
 0x389   :  { %v9587_v59 = vpop.f32.mrb[62].mxu0 }
 0x38a   :  { %v6243_v29 = vpop.f32.mrb[63].mxu0 }
 0x38b   :  { %v9566_v28 = vpop.f32.mrb[60].mxu1 }
 0x38c   :  { %v6161_v9 = vadd.f32 %v9566_v28, %v6029_v21  ;;  %v6108_v53 = vpop.f32.mrb[61].mxu1 }
 0x38d   :  { %v6159_v8 = vadd.f32 %v6108_v53, %v6027_v61  ;;  %v9567_v31 = vpop.f32.mrb[62].mxu1 }
 0x38e   :  { %v12138_v13 = vadd.f32 %v9586_v2, %v6161_v9  ;;  %v6111_v45 = vpop.f32.mrb[63].mxu1 }
 0x38f   :  { %v12140_v26 = vadd.f32 %v6240_v39, %v6159_v8  ;;  %v9590_v14 = vpop.f32.mrb[64].mxu0 }
 0x390   :  { %v6256_v25 = vpop.f32.mrb[65].mxu0 }
 0x391   :  { %v9591_v37 = vpop.f32.mrb[66].mxu0 }
 0x392   :  { %v6259_v49 = vpop.f32.mrb[67].mxu0 }
 0x393   :  { %v9570_v38 = vpop.f32.mrb[64].mxu1 }
 0x394   :  { %v6165_v60 = vadd.f32 %v9570_v38, %v6033_v19  ;;  %v6124_v57 = vpop.f32.mrb[65].mxu1 }
 0x395   :  { %v6163_v35 = vadd.f32 %v6124_v57, %v6031_v62  ;;  %v9571_v7 = vpop.f32.mrb[66].mxu1 }
 0x396   :  { %v12142_v3 = vadd.f32 %v9590_v14, %v6165_v60  ;;  %v6127_v46 = vpop.f32.mrb[67].mxu1 }
 0x397   :  { %v12144_v34 = vadd.f32 %v6256_v25, %v6163_v35  ;;  %v9594_v5 = vpop.f32.mrb[68].mxu0 }
 0x398   :  { %v6272_v21 = vpop.f32.mrb[69].mxu0 }
 0x399   :  { %v9595_v20 = vpop.f32.mrb[70].mxu0 }
 0x39a   :  { %v6275_v61 = vpop.f32.mrb[71].mxu0 }
 0x39b   :  { %v9574_v36 = vpop.f32.mrb[68].mxu1 }
 0x39c   :  { %v6169_v18 = vadd.f32 %v9574_v36, %v6037_v42  ;;  %v6140_v55 = vpop.f32.mrb[69].mxu1  ;;  %v9997_v42 = vmov 0  }
 0x39d   :  { %v6167_v17 = vadd.f32 %v6140_v55, %v6035_v4  ;;  %v9575_v54 = vpop.f32.mrb[70].mxu1  ;;  %7617 = vst.msk [vmem:[#allocation7] sm:$0xf] %vm7616_vm13, %v9997_v42  ;;  %7618 = vst.msk [vmem:[#allocation7 + $0x4] sm:$0xf] %vm7616_vm13, %v9997_v42 }
 0x39e   :  { %v12146_v15 = vadd.f32 %v9594_v5, %v6169_v18  ;;  %v6143_v23 = vpop.f32.mrb[71].mxu1  ;;  %7619 = vst.msk [vmem:[#allocation7 + $0x8] sm:$0xf] %vm7616_vm13, %v9997_v42  ;;  %7620 = vst.msk [vmem:[#allocation7 + $0xc] sm:$0xf] %vm7616_vm13, %v9997_v42 }
 0x39f   :  { %v12148_v33 = vadd.f32 %v6272_v21, %v6167_v17  ;;  %v9622_v0 = vpop.f32.mrb[72].mxu0  ;;  %7621 = vst.msk [vmem:[#allocation7 + $0x10] sm:$0xf] %vm7616_vm13, %v9997_v42  ;;  %7622 = vst.msk [vmem:[#allocation7 + $0x14] sm:$0xf] %vm7616_vm13, %v9997_v42 }
 0x3a0   :  { %v6667_v19 = vpop.f32.mrb[73].mxu0  ;;  %7697 = vst.msk [vmem:[#allocation7 + $0x58] sm:$0xf] %vm7616_vm13, %v9997_v42  ;;  %7698 = vst.msk [vmem:[#allocation7 + $0x5c] sm:$0xf] %vm7616_vm13, %v9997_v42 }
 0x3a1   :  { %v9623_v12 = vpop.f32.mrb[74].mxu0  ;;  %7699 = vst.msk [vmem:[#allocation7 + $0x60] sm:$0xf] %vm7616_vm13, %v9997_v42  ;;  %7700 = vst.msk [vmem:[#allocation7 + $0x64] sm:$0xf] %vm7616_vm13, %v9997_v42 }
 0x3a2   :  { %v6670_v62 = vpop.f32.mrb[75].mxu0  ;;  %7701 = vst.msk [vmem:[#allocation7 + $0x68] sm:$0xf] %vm7616_vm13, %v9997_v42  ;;  %7702 = vst.msk [vmem:[#allocation7 + $0x6c] sm:$0xf] %vm7616_vm13, %v9997_v42 }
 0x3a3   :  { %v9602_v1 = vpop.f32.mrb[72].mxu1 }
 0x3a4   :  { %v6421_v52 = vadd.f32 %v9602_v1, %v6289_v11  ;;  %v6356_v6 = vpop.f32.mrb[73].mxu1 }
 0x3a5   :  { %v6419_v58 = vadd.f32 %v6356_v6, %v6287_v22  ;;  %v9603_v41 = vpop.f32.mrb[74].mxu1 }
 0x3a6   :  { %v12150_v43 = vadd.f32 %v9622_v0, %v6421_v52  ;;  %v6359_v32 = vpop.f32.mrb[75].mxu1 }
 0x3a7   :  { %v12152_v50 = vadd.f32 %v6667_v19, %v6419_v58  ;;  %v9626_v10 = vpop.f32.mrb[76].mxu0 }
 0x3a8   :  { %v6683_v4 = vpop.f32.mrb[77].mxu0 }
 0x3a9   :  { %v9627_v40 = vpop.f32.mrb[78].mxu0 }
 0x3aa   :  { %v6686_v30 = vpop.f32.mrb[79].mxu0 }
 0x3ab   :  { %v9606_v56 = vpop.f32.mrb[76].mxu1 }
 0x3ac   :  { %v6425_v48 = vadd.f32 %v9606_v56, %v12138_v13  ;;  %v6372_v63 = vpop.f32.mrb[77].mxu1 }
 0x3ad   :  { %v6423_v51 = vadd.f32 %v6372_v63, %v12140_v26  ;;  %v9607_v16 = vpop.f32.mrb[78].mxu1 }
 0x3ae   :  { %v6736_v47 = vadd.f32 %v9626_v10, %v6425_v48  ;;  %v6375_v24 = vpop.f32.mrb[79].mxu1 }
 0x3af   :  { %v6734_v11 = vadd.f32 %v6683_v4, %v6423_v51  ;;  %v9630_v44 = vpop.f32.mrb[80].mxu0 }
 0x3b0   :  { %v6699_v22 = vpop.f32.mrb[81].mxu0 }
 0x3b1   :  { %v9631_v2 = vpop.f32.mrb[82].mxu0 }
 0x3b2   :  { %v6702_v39 = vpop.f32.mrb[83].mxu0 }
 0x3b3   :  { %v9610_v59 = vpop.f32.mrb[80].mxu1 }
 0x3b4   :  { %v6429_v29 = vadd.f32 %v9610_v59, %v12142_v3  ;;  %v6388_v28 = vpop.f32.mrb[81].mxu1 }
 0x3b5   :  { %v6427_v9 = vadd.f32 %v6388_v28, %v12144_v34  ;;  %v9611_v53 = vpop.f32.mrb[82].mxu1 }
 0x3b6   :  { %v6740_v8 = vadd.f32 %v9630_v44, %v6429_v29  ;;  %v6391_v31 = vpop.f32.mrb[83].mxu1 }
 0x3b7   :  { %v6738_v13 = vadd.f32 %v6699_v22, %v6427_v9  ;;  %v9634_v45 = vpop.f32.mrb[84].mxu0 }
 0x3b8   :  { %v6715_v26 = vpop.f32.mrb[85].mxu0 }
 0x3b9   :  { %v9635_v14 = vpop.f32.mrb[86].mxu0 }
 0x3ba   :  { %v6718_v25 = vpop.f32.mrb[87].mxu0 }
 0x3bb   :  { %v9614_v37 = vpop.f32.mrb[84].mxu1 }
 0x3bc   :  { %v6433_v49 = vadd.f32 %v9614_v37, %v12146_v15  ;;  %v6404_v38 = vpop.f32.mrb[85].mxu1 }
 0x3bd   :  { %v6431_v60 = vadd.f32 %v6404_v38, %v12148_v33  ;;  %v9615_v57 = vpop.f32.mrb[86].mxu1 }
 0x3be   :  { %v6744_v35 = vadd.f32 %v9634_v45, %v6433_v49  ;;  %v6407_v7 = vpop.f32.mrb[87].mxu1 }
 0x3bf   :  { %v6742_v3 = vadd.f32 %v6715_v26, %v6431_v60  ;;  %v9662_v46 = vpop.f32.mrb[88].mxu0 }
 0x3c0   :  { %v6933_v34 = vpop.f32.mrb[89].mxu0 }
 0x3c1   :  { %v9663_v5 = vpop.f32.mrb[90].mxu0 }
 0x3c2   :  { %v6936_v21 = vpop.f32.mrb[91].mxu0 }
 0x3c3   :  { %v9642_v20 = vpop.f32.mrb[88].mxu1 }
 0x3c4   :  { %v6865_v61 = vadd.f32 %v9642_v20, %v12150_v43  ;;  %v6800_v36 = vpop.f32.mrb[89].mxu1 }
 0x3c5   :  { %v6863_v18 = vadd.f32 %v6800_v36, %v12152_v50  ;;  %v9643_v55 = vpop.f32.mrb[90].mxu1 }
 0x3c6   :  { %v6998_v17 = vadd.f32 %v9662_v46, %v6865_v61  ;;  %v6803_v54 = vpop.f32.mrb[91].mxu1 }
 0x3c7   :  { %v6996_v15 = vadd.f32 %v6933_v34, %v6863_v18  ;;  %v9666_v23 = vpop.f32.mrb[92].mxu0 }
 0x3c8   :  { %v6949_v33 = vpop.f32.mrb[93].mxu0 }
 0x3c9   :  { %v9667_v0 = vpop.f32.mrb[94].mxu0 }
 0x3ca   :  { %v6952_v19 = vpop.f32.mrb[95].mxu0 }
 0x3cb   :  { %v9646_v12 = vpop.f32.mrb[92].mxu1 }
 0x3cc   :  { %v6869_v62 = vadd.f32 %v9646_v12, %v6736_v47  ;;  %v6816_v1 = vpop.f32.mrb[93].mxu1 }
 0x3cd   :  { %v6867_v52 = vadd.f32 %v6816_v1, %v6734_v11  ;;  %v9647_v6 = vpop.f32.mrb[94].mxu1 }
 0x3ce   :  { %v7002_v58 = vadd.f32 %v9666_v23, %v6869_v62  ;;  %v6819_v41 = vpop.f32.mrb[95].mxu1 }
 0x3cf   :  { %v7000_v32 = vadd.f32 %v6949_v33, %v6867_v52  ;;  %v9670_v43 = vpop.f32.mrb[96].mxu0 }
 0x3d0   :  { %v6965_v10 = vpop.f32.mrb[97].mxu0 }
 0x3d1   :  { %v9671_v42 = vpop.f32.mrb[98].mxu0 }
 0x3d2   :  { %v6968_v50 = vpop.f32.mrb[99].mxu0 }
 0x3d3   :  { %v9650_v27 = vpop.f32.mrb[96].mxu1 }
 0x3d4   :  { %v6873_v4 = vadd.f32 %v9650_v27, %v6740_v8  ;;  %v6832_v40 = vpop.f32.mrb[97].mxu1 }
 0x3d5   :  { %v6871_v30 = vadd.f32 %v6832_v40, %v6738_v13  ;;  %v9651_v56 = vpop.f32.mrb[98].mxu1 }
 0x3d6   :  { %v7006_v48 = vadd.f32 %v9670_v43, %v6873_v4  ;;  %v6835_v63 = vpop.f32.mrb[99].mxu1 }
 0x3d7   :  { %v7004_v51 = vadd.f32 %v6965_v10, %v6871_v30  ;;  %v9674_v16 = vpop.f32.mrb[100].mxu0 }
 0x3d8   :  { %v6981_v47 = vpop.f32.mrb[101].mxu0 }
 0x3d9   :  { %v9675_v24 = vpop.f32.mrb[102].mxu0 }
 0x3da   :  { %v6984_v11 = vpop.f32.mrb[103].mxu0 }
 0x3db   :  { %v9654_v44 = vpop.f32.mrb[100].mxu1  ;;  %v12189_v11 = vld [vmem:[%s12226_s2] ss:$0 sm:$0xff]  ;;  %s9999_s2 = smov [#allocation7]  }
 0x3dc   :  { %v6877_v22 = vadd.f32 %v9654_v44, %v6744_v35  ;;  %v6848_v2 = vpop.f32.mrb[101].mxu1  ;;  %s7708_s11 = sshll.u32 %s9999_s2, 4  ;;  %s7709_s11 = int_to_ptr.vmem [resolvable:$true] %s7708_s11 }
 0x3dd   :  { %v6875_v39 = vadd.f32 %v6848_v2, %v6742_v3  ;;  %v9655_v59 = vpop.f32.mrb[102].mxu1  ;;  %s9965_s12 = scalar_lea.vmem %s7709_s11, 1792  ;;  %p9970_p3 = scmp.lt.s32.totalorder %s7709_s11, %s7709_s11 }
 0x3de   :  { %v7010_v29 = vadd.f32 %v9674_v16, %v6877_v22  ;;  %v6851_v28 = vpop.f32.mrb[103].mxu1  ;;  %p9966_p2 = scmp.ne.s32.totalorder %s7709_s11, %s9965_s12  ;;  %p9971_p4 = scmp.lt.s32.totalorder %s9965_s12, %s9965_s12 }
 0x3df   :  { %v7008_v9 = vadd.f32 %v6981_v47, %v6875_v39  ;;  %v9702_v53 = vpop.f32.mrb[104].mxu0 }
 0x3e0   :  { %v7199_v8 = vpop.f32.mrb[105].mxu0  ;;  %p9972_p5 = por %p9971_p4, %p9970_p3 }
 0x3e1   :  { %v9703_v31 = vpop.f32.mrb[106].mxu0 }
 0x3e2   :  { %v7202_v13 = vpop.f32.mrb[107].mxu0  ;;  %p9973_p6 = pnand %p9972_p5, %p9966_p2 }
 0x3e3   :  { %v9682_v45 = vpop.f32.mrb[104].mxu1 }
 0x3e4   :  { %v7131_v26 = vadd.f32 %v9682_v45, %v6998_v17  ;;  %v7066_v14 = vpop.f32.mrb[105].mxu1 }
 0x3e5   :  { %v7129_v25 = vadd.f32 %v7066_v14, %v6996_v15  ;;  %v9683_v37 = vpop.f32.mrb[106].mxu1 }
 0x3e6   :  { %v7264_v49 = vadd.f32 %v9702_v53, %v7131_v26  ;;  %v7069_v38 = vpop.f32.mrb[107].mxu1 }
 0x3e7   :  { %v7262_v60 = vadd.f32 %v7199_v8, %v7129_v25  ;;  %v9706_v57 = vpop.f32.mrb[108].mxu0 }
 0x3e8   :  { %v7215_v35 = vpop.f32.mrb[109].mxu0 }
 0x3e9   :  { %v9707_v7 = vpop.f32.mrb[110].mxu0 }
 0x3ea   :  { %v7218_v3 = vpop.f32.mrb[111].mxu0 }
 0x3eb   :  { %v9686_v46 = vpop.f32.mrb[108].mxu1 }
 0x3ec   :  { %v7135_v34 = vadd.f32 %v9686_v46, %v7002_v58  ;;  %v7082_v5 = vpop.f32.mrb[109].mxu1 }
 0x3ed   :  { %v7133_v21 = vadd.f32 %v7082_v5, %v7000_v32  ;;  %v9687_v20 = vpop.f32.mrb[110].mxu1 }
 0x3ee   :  { %v7268_v61 = vadd.f32 %v9706_v57, %v7135_v34  ;;  %v7085_v36 = vpop.f32.mrb[111].mxu1 }
 0x3ef   :  { %v7266_v18 = vadd.f32 %v7215_v35, %v7133_v21  ;;  %v9710_v55 = vpop.f32.mrb[112].mxu0 }
 0x3f0   :  { %v7231_v17 = vpop.f32.mrb[113].mxu0 }
 0x3f1   :  { %v9711_v54 = vpop.f32.mrb[114].mxu0 }
 0x3f2   :  { %v7234_v15 = vpop.f32.mrb[115].mxu0 }
 0x3f3   :  { %v9690_v23 = vpop.f32.mrb[112].mxu1 }
 0x3f4   :  { %v7139_v33 = vadd.f32 %v9690_v23, %v7006_v48  ;;  %v7098_v0 = vpop.f32.mrb[113].mxu1 }
 0x3f5   :  { %v7137_v19 = vadd.f32 %v7098_v0, %v7004_v51  ;;  %v9691_v12 = vpop.f32.mrb[114].mxu1 }
 0x3f6   :  { %v7272_v62 = vadd.f32 %v9710_v55, %v7139_v33  ;;  %v7101_v1 = vpop.f32.mrb[115].mxu1 }
 0x3f7   :  { %v7270_v52 = vadd.f32 %v7231_v17, %v7137_v19  ;;  %v9714_v6 = vpop.f32.mrb[116].mxu0 }
 0x3f8   :  { %v7247_v58 = vpop.f32.mrb[117].mxu0 }
 0x3f9   :  { %v9715_v41 = vpop.f32.mrb[118].mxu0 }
 0x3fa   :  { %v7250_v32 = vpop.f32.mrb[119].mxu0 }
 0x3fb   :  { %v9694_v43 = vpop.f32.mrb[116].mxu1 }
 0x3fc   :  { %v7143_v10 = vadd.f32 %v9694_v43, %v7010_v29  ;;  %v7114_v42 = vpop.f32.mrb[117].mxu1 }
 0x3fd   :  { %v7141_v50 = vadd.f32 %v7114_v42, %v7008_v9  ;;  %v9695_v27 = vpop.f32.mrb[118].mxu1 }
 0x3fe   :  { %v12182_v4 = vadd.f32 %v9714_v6, %v7143_v10  ;;  %v7117_v40 = vpop.f32.mrb[119].mxu1 }
 0x3ff   :  { %v12184_v30 = vadd.f32 %v7247_v58, %v7141_v50  ;;  %v9742_v56 = vpop.f32.mrb[120].mxu0 }
 0x400   :  { %v7465_v48 = vpop.f32.mrb[121].mxu0 }
 0x401   :  { %v9743_v63 = vpop.f32.mrb[122].mxu0 }
 0x402   :  { %v7468_v51 = vpop.f32.mrb[123].mxu0 }
 0x403   :  { %v9722_v16 = vpop.f32.mrb[120].mxu1 }
 0x404   :  { %v7397_v47 = vadd.f32 %v9722_v16, %v7264_v49  ;;  %v7332_v24 = vpop.f32.mrb[121].mxu1 }
 0x405   :  { %v7395_v44 = vadd.f32 %v7332_v24, %v7262_v60  ;;  %v9723_v22 = vpop.f32.mrb[122].mxu1 }
 0x406   :  { %v7530_v2 = vadd.f32 %v9742_v56, %v7397_v47  ;;  %v7335_v39 = vpop.f32.mrb[123].mxu1 }
 0x407   :  { %v7528_v59 = vadd.f32 %v7465_v48, %v7395_v44  ;;  %v9746_v29 = vpop.f32.mrb[124].mxu0 }
 0x408   :  { %v7553_v28 = vadd.f32 %v12189_v11, %v7530_v2  ;;  %v7481_v9 = vpop.f32.mrb[125].mxu0 }
 0x409   :  { %v7551_v53 = vadd.f32 %v12189_v11, %v7528_v59  ;;  %v9747_v8 = vpop.f32.mrb[126].mxu0 }
 0x40a   :  { %v7569_v31 = vmax.f32 %v7553_v28, 0.0  ;;  %v7484_v13 = vpop.f32.mrb[127].mxu0 }
 0x40b   :  { %v7567_v45 = vmax.f32 %v7551_v53, 0.0  ;;  %v9726_v26 = vpop.f32.mrb[124].mxu1 }
 0x40c   :  { %v8272_v14 = vpack.c.bf16 %v7569_v31, %v7569_v31  ;;  %v7401_v25 = vadd.f32 %v9726_v26, %v7268_v61  ;;  %v7348_v37 = vpop.f32.mrb[125].mxu1 }
 0x40d   :  { %v8270_v49 = vpack.c.bf16 %v7567_v45, %v7567_v45  ;;  %v7399_v38 = vadd.f32 %v7348_v37, %v7266_v18  ;;  %v9727_v60 = vpop.f32.mrb[126].mxu1 }
 0x40e   :  { %7682 = vst.msk [vmem:[#allocation7 + $0x20] sm:$0xf] %vm7616_vm13, %v8272_v14  ;;  %v7534_v57 = vadd.f32 %v9746_v29, %v7401_v25  ;;  %v7351_v35 = vpop.f32.mrb[127].mxu1 }
 0x40f   :  { %7680 = vst.msk [vmem:[#allocation7 + $0x18] sm:$0xf] %vm7616_vm13, %v8270_v49  ;;  %v7532_v7 = vadd.f32 %v7481_v9, %v7399_v38  ;;  %v9750_v3 = vpop.f32.mrb[128].mxu0 }
 0x410   :  { %v7557_v46 = vadd.f32 %v12189_v11, %v7534_v57  ;;  %v7497_v34 = vpop.f32.mrb[129].mxu0 }
 0x411   :  { %v7555_v5 = vadd.f32 %v12189_v11, %v7532_v7  ;;  %v9751_v21 = vpop.f32.mrb[130].mxu0 }
 0x412   :  { %v7573_v20 = vmax.f32 %v7557_v46, 0.0  ;;  %v7500_v61 = vpop.f32.mrb[131].mxu0 }
 0x413   :  { %v7571_v36 = vmax.f32 %v7555_v5, 0.0  ;;  %v9730_v55 = vpop.f32.mrb[128].mxu1 }
 0x414   :  { %v8276_v18 = vpack.c.bf16 %v7573_v20, %v7573_v20  ;;  %v7405_v17 = vadd.f32 %v9730_v55, %v7272_v62  ;;  %v7364_v54 = vpop.f32.mrb[129].mxu1 }
 0x415   :  { %v8274_v15 = vpack.c.bf16 %v7571_v36, %v7571_v36  ;;  %v7403_v23 = vadd.f32 %v7364_v54, %v7270_v52  ;;  %v9731_v33 = vpop.f32.mrb[130].mxu1 }
 0x416   :  { %7686 = vst.msk [vmem:[#allocation7 + $0x30] sm:$0xf] %vm7616_vm13, %v8276_v18  ;;  %v7538_v0 = vadd.f32 %v9750_v3, %v7405_v17  ;;  %v7367_v19 = vpop.f32.mrb[131].mxu1 }
 0x417   :  { %7684 = vst.msk [vmem:[#allocation7 + $0x28] sm:$0xf] %vm7616_vm13, %v8274_v15  ;;  %v7536_v12 = vadd.f32 %v7497_v34, %v7403_v23  ;;  %v9754_v1 = vpop.f32.mrb[132].mxu0 }
 0x418   :  { %v7561_v6 = vadd.f32 %v12189_v11, %v7538_v0  ;;  %v7513_v58 = vpop.f32.mrb[133].mxu0 }
 0x419   :  { %v7559_v41 = vadd.f32 %v12189_v11, %v7536_v12  ;;  %v9755_v32 = vpop.f32.mrb[134].mxu0 }
 0x41a   :  { %v7577_v43 = vmax.f32 %v7561_v6, 0.0  ;;  %v7516_v62 = vpop.f32.mrb[135].mxu0 }
 0x41b   :  { %v7575_v10 = vmax.f32 %v7559_v41, 0.0  ;;  %v9734_v42 = vpop.f32.mrb[132].mxu1 }
 0x41c   :  { %v8280_v52 = vpack.c.bf16 %v7577_v43, %v7577_v43  ;;  %v7409_v50 = vadd.f32 %v9734_v42, %v12182_v4  ;;  %v7380_v27 = vpop.f32.mrb[133].mxu1 }
 0x41d   :  { %v8278_v40 = vpack.c.bf16 %v7575_v10, %v7575_v10  ;;  %v7407_v56 = vadd.f32 %v7380_v27, %v12184_v30  ;;  %v9735_v48 = vpop.f32.mrb[134].mxu1 }
 0x41e   :  { %7690 = vst.msk [vmem:[#allocation7 + $0x40] sm:$0xf] %vm7616_vm13, %v8280_v52  ;;  %v7542_v63 = vadd.f32 %v9754_v1, %v7409_v50  ;;  %v7383_v51 = vpop.f32.mrb[135].mxu1 }
 0x41f   :  { %7688 = vst.msk [vmem:[#allocation7 + $0x38] sm:$0xf] %vm7616_vm13, %v8278_v40  ;;  %v7540_v16 = vadd.f32 %v7513_v58, %v7407_v56 }
 0x420   :  { %v7565_v47 = vadd.f32 %v12189_v11, %v7542_v63 }
 0x421   :  { %v7563_v24 = vadd.f32 %v12189_v11, %v7540_v16 }
 0x422   :  { %v7581_v44 = vmax.f32 %v7565_v47, 0.0 }
 0x423   :  { %v7579_v4 = vmax.f32 %v7563_v24, 0.0 }
 0x424   :  { %v8284_v22 = vpack.c.bf16 %v7581_v44, %v7581_v44 }
 0x425   :  { %v8282_v2 = vpack.c.bf16 %v7579_v4, %v7579_v4 }
 0x426   :  { %7694 = vst.msk [vmem:[#allocation7 + $0x50] sm:$0xf] %vm7616_vm13, %v8284_v22 }
 0x427   :  { %7692 = vst.msk [vmem:[#allocation7 + $0x48] sm:$0xf] %vm7616_vm13, %v8282_v2 }
 0x428   :  { %9976 = shalt.err (!%p9973_p6)
}
 0x429   :  { %s9977_s15 = scalar_lea.hbm %s12227_s3, 1792 }
 0x42a   :  { %p9978_p7 = scmp.ne.s32.totalorder %s12227_s3, %s9977_s15  ;;  %p9981_p8 = scmp.lt.u32.totalorder %s9977_s15, %s12227_s3 }
 0x42c   :  { %p9983_p9 = pnand %p9981_p8, %p9978_p7 }
 0x42e   :  { %9986 = shalt.err (!%p9983_p9)
}
 0x42f   :  { %7714 = dma.vmem_to_hbm [thread:$0]  %s7709_s11, 1792, %s12227_s3, [#allocation4], %s9994_s22, %s9994_s22, %s9995_s23  }
 0x430   :  { %9991 = dma.done.wait [#allocation4], 1792  }
 0x431   :  { %9992 = vsyncadd [#allocation4], 4294965504 }
 0x432   :  { %7718 = vsyncpa [#allocation3], 1 }
 0x433   :  { %7719 = vsyncpa [#allocation6], 1 }
 0x434   :  { %7720 = vsyncpa [#allocation4], 1 }

</bundles_post_ra>
